<compile_context>
chip_gen: v7x
topology: tpu7x:2x2x1
jax: 0.10.0
libtpu: 0.0.40
codegen_flags: <defaults>
</compile_context>

<pallas_src>
import math
import functools

import jax
import jax.numpy as jnp
from jax import lax
from jax.experimental import pallas as pl
from jax.experimental.pallas import tpu as pltpu

F32 = jnp.float32
BF16 = jnp.bfloat16


# ----------------------------- in-kernel helpers -----------------------------

def _erf(x):
    # Abramowitz & Stegun 7.1.26 rational approximation, |err| < 1.5e-7 vs libm erf.
    # Exact divide on purpose: an approx reciprocal here would ruin the error bound.
    # TODO(synk): PyTorch uses libm erf for exact GELU; this polynomial is f32-accurate.
    a1, a2, a3, a4, a5 = 0.254829592, -0.284496736, 1.421413741, -1.453152027, 1.061405429
    p = 0.3275911
    ax = jnp.abs(x)
    t = 1.0 / (1.0 + p * ax)
    poly = t * (a1 + t * (a2 + t * (a3 + t * (a4 + t * a5))))
    y = 1.0 - poly * jnp.exp(-ax * ax)
    return jnp.where(x >= 0, y, -y)


def _gelu_exact(x):
    # activation='gelu' in nn.TransformerEncoderLayer == exact (erf) GELU.
    return 0.5 * x * (1.0 + _erf(x * (1.0 / math.sqrt(2.0))))


def _layer_norm(x, w, b, eps=1e-5):
    mu = jnp.mean(x, axis=-1, keepdims=True)
    var = jnp.mean(jnp.square(x - mu), axis=-1, keepdims=True)
    return (x - mu) * lax.rsqrt(var + eps) * w + b


# --------------------------------- kernel ------------------------------------

def _transformer_kernel(
    x_ref, pe_ref, win_ref, bin_ref,
    wqkv_ref, bqkv_ref, wo_ref, bo_ref,
    ln1_w_ref, ln1_b_ref, lin1_w_ref, lin1_b_ref,
    lin2_w_ref, lin2_b_ref, ln2_w_ref, ln2_b_ref,
    head_w_ref, head_b_ref,
    out_ref,
    *, d_model, nhead, num_layers, bb, seq_len,
):
    D, S = d_model, seq_len
    hd = D // nhead
    M = bb * S
    G = bb * nhead

    # ---- input projection + positional encoding (dropout == identity, eval mode) ----
    h = jnp.dot(x_ref[...].astype(BF16), win_ref[...],
                preferred_element_type=F32) + bin_ref[...]            # (M, D) f32
    h = (h.reshape(bb, S, D) + pe_ref[...]).reshape(M, D)             # broadcast PE over bb

    def split_heads(x2d_bf16):
        # (M, D) -> (bb*nhead, S, hd); head becomes the leading batch dim.
        return jnp.swapaxes(x2d_bf16.reshape(bb, S, nhead, hd), 1, 2).reshape(G, S, hd)

    # TODO(synk): for large num_layers / d_model, stream per-layer weights with an
    # 'arbitrary' layer grid axis (or emit_pipeline) and carry h in VMEM scratch
    # instead of holding every layer resident and unrolling this Python loop.
    for l in range(num_layers):
        # ---- multi-head self-attention: ONE fused QKV matmul, heads split after ----
        qkv = jnp.dot(h.astype(BF16), wqkv_ref[l],
                      preferred_element_type=F32) + bqkv_ref[l]       # (M, 3D) f32
        # 1/sqrt(head_dim) is already folded into the Q weights/bias (wrapper).
        q = split_heads(qkv[:, 0 * D:1 * D].astype(BF16))             # (G, S, hd)
        k = split_heads(qkv[:, 1 * D:2 * D].astype(BF16))
        v = split_heads(qkv[:, 2 * D:3 * D].astype(BF16))

        s = jnp.einsum('gqh,gkh->gqk', q, k, preferred_element_type=F32)   # (G, S, S)
        s = s - jnp.max(s, axis=-1, keepdims=True)
        p = jnp.exp(s)
        p = p * pl.reciprocal(jnp.sum(p, axis=-1, keepdims=True), approx=True)

        o = jnp.einsum('gqk,gkh->gqh', p.astype(BF16), v,
                       preferred_element_type=F32)                    # (G, S, hd) f32
        # merge heads back into lanes, then ONE (M, D) @ (D, D) out-projection
        o2d = jnp.swapaxes(o.astype(BF16).reshape(bb, nhead, S, hd), 1, 2).reshape(M, D)
        attn = jnp.dot(o2d, wo_ref[l], preferred_element_type=F32) + bo_ref[l]

        # post-norm residual 1
        h = _layer_norm(h + attn, ln1_w_ref[l], ln1_b_ref[l])

        # ---- feed-forward (exact-erf GELU) ----
        z = jnp.dot(h.astype(BF16), lin1_w_ref[l],
                    preferred_element_type=F32) + lin1_b_ref[l]
        z = _gelu_exact(z)
        z = jnp.dot(z.astype(BF16), lin2_w_ref[l],
                    preferred_element_type=F32) + lin2_b_ref[l]

        # post-norm residual 2
        h = _layer_norm(h + z, ln2_w_ref[l], ln2_b_ref[l])

    # ---- last timestep of each sequence -> fused (cls | reg) lane-padded head ----
    last = h.reshape(bb, S, D)[:, S - 1, :]                           # (bb, D)
    out = jnp.dot(last.astype(BF16), head_w_ref[...],
                  preferred_element_type=F32) + head_b_ref[...]
    out_ref[...] = out.astype(out_ref.dtype)                          # (bb, head_pad)


# ------------------------------ parameter setup ------------------------------

def sinusoidal_pe(seq_len, d_model):
    # Same values as PositionalEncoding.pe[:seq_len].
    position = jnp.arange(seq_len, dtype=jnp.float32)[:, None]
    div_term = jnp.exp(jnp.arange(0, d_model, 2, dtype=jnp.float32)
                       * (-math.log(10000.0) / d_model))
    pe = jnp.zeros((seq_len, d_model), jnp.float32)
    pe = pe.at[:, 0::2].set(jnp.sin(position * div_term))
    pe = pe.at[:, 1::2].set(jnp.cos(position * div_term))
    return pe


def init_torch_params(key, *, input_size, d_model, nhead, num_layers,
                      num_classes, data_vector_size):
    """Random parameters in PyTorch layout (Linear weight = (out, in))."""
    keys = jax.random.split(key, 8 + 8 * num_layers)
    ki = iter(keys)

    def w(shape, scale=0.05):
        return jax.random.normal(next(ki), shape, jnp.float32) * scale

    params = {
        "in_proj_w": w((d_model, input_size)), "in_proj_b": w((d_model,)),
        "cls_w": w((num_classes, d_model)), "cls_b": w((num_classes,)),
        "reg_w": w((data_vector_size, d_model)), "reg_b": w((data_vector_size,)),
        "layers": [],
    }
    for _ in range(num_layers):
        params["layers"].append({
            "attn_in_w": w((3 * d_model, d_model)),   # MHA in_proj_weight
            "attn_in_b": w((3 * d_model,)),
            "attn_out_w": w((d_model, d_model)),      # out_proj.weight
            "attn_out_b": w((d_model,)),
            "ln1_w": jnp.ones((d_model,), jnp.float32),
            "ln1_b": jnp.zeros((d_model,), jnp.float32),
            "lin1_w": w((4 * d_model, d_model)), "lin1_b": w((4 * d_model,)),
            "lin2_w": w((d_model, 4 * d_model)), "lin2_b": w((d_model,)),
            "ln2_w": jnp.ones((d_model,), jnp.float32),
            "ln2_b": jnp.zeros((d_model,), jnp.float32),
        })
    return params


def _prepare_kernel_params(p, *, d_model, nhead, num_layers, num_classes,
                           data_vector_size, seq_len, head_pad):
    """One-time wrapper-side layout work: transposes, fused (D,3D) QKV weight with the
    score scale folded into Q, bf16 matmul weights, fused lane-padded output head."""
    D = d_model
    hd = D // nhead
    scale = 1.0 / math.sqrt(hd)
    layers = p["layers"]

    pe = sinusoidal_pe(seq_len, D)                                    # (S, D) f32

    win = p["in_proj_w"].T.astype(BF16)                               # (input_size, D)
    bin_ = p["in_proj_b"].reshape(1, D)

    def qkv_w(l):
        w = l["attn_in_w"]                                            # (3D, D)
        wq = w[:D].T * scale                                          # fold 1/sqrt(hd)
        wk = w[D:2 * D].T
        wv = w[2 * D:].T
        return jnp.concatenate([wq, wk, wv], axis=1)                  # (D, 3D)

    def qkv_b(l):
        b = l["attn_in_b"]
        return jnp.concatenate([b[:D] * scale, b[D:2 * D], b[2 * D:]]).reshape(1, 3 * D)

    wqkv = jnp.stack([qkv_w(l) for l in layers]).astype(BF16)         # (L, D, 3D)
    bqkv = jnp.stack([qkv_b(l) for l in layers])                      # (L, 1, 3D)

    wo = jnp.stack([l["attn_out_w"].T for l in layers]).astype(BF16)  # (L, D, D)
    bo = jnp.stack([l["attn_out_b"].reshape(1, D) for l in layers])

    ln1_w = jnp.stack([l["ln1_w"].reshape(1, D) for l in layers])
    ln1_b = jnp.stack([l["ln1_b"].reshape(1, D) for l in layers])
    ln2_w = jnp.stack([l["ln2_w"].reshape(1, D) for l in layers])
    ln2_b = jnp.stack([l["ln2_b"].reshape(1, D) for l in layers])

    lin1_w = jnp.stack([l["lin1_w"].T for l in layers]).astype(BF16)  # (L, D, 4D)
    lin1_b = jnp.stack([l["lin1_b"].reshape(1, 4 * D) for l in layers])
    lin2_w = jnp.stack([l["lin2_w"].T for l in layers]).astype(BF16)  # (L, 4D, D)
    lin2_b = jnp.stack([l["lin2_b"].reshape(1, D) for l in layers])

    # fused classification + regression head, padded to a lane-dense width
    hw = jnp.concatenate([p["cls_w"].T, p["reg_w"].T], axis=1)        # (D, C+V)
    hb = jnp.concatenate([p["cls_b"], p["reg_b"]])                    # (C+V,)
    head_w = jnp.zeros((D, head_pad), jnp.float32).at[:, :hw.shape[1]].set(hw).astype(BF16)
    head_b = jnp.zeros((1, head_pad), jnp.float32).at[0, :hb.shape[0]].set(hb)

    return (pe, win, bin_, wqkv, bqkv, wo, bo,
            ln1_w, ln1_b, lin1_w, lin1_b, lin2_w, lin2_b, ln2_w, ln2_b,
            head_w, head_b)


# --------------------------------- wrapper -----------------------------------

def _full_spec(shape):
    n = len(shape)
    return pl.BlockSpec(shape, lambda i, _n=n: (0,) * _n)


def transformer_predictor_forward(x, params, *, d_model, nhead, num_layers,
                                  num_classes, data_vector_size, batch_block=None):
    B, S, input_size = x.shape
    bb = B if batch_block is None else batch_block          # sequences per grid step
    assert B % bb == 0
    # (8,128) BlockSpec rule: the block must equal the full extent or be a multiple of
    # 8 on the sublane axis.  For throughput pick bb so that bb*S >= 128 (v5e) /
    # >= 256 (v6e/v7x) and B // bb >= 2 so both v7x TensorCores get a grid step.
    assert bb == B or bb % 8 == 0, "batch_block must equal B or be a multiple of 8"
    head_pad = ((num_classes + data_vector_size + 127) // 128) * 128

    (pe, win, bin_, wqkv, bqkv, wo, bo,
     ln1_w, ln1_b, lin1_w, lin1_b, lin2_w, lin2_b, ln2_w, ln2_b,
     head_w, head_b) = _prepare_kernel_params(
        params, d_model=d_model, nhead=nhead, num_layers=num_layers,
        num_classes=num_classes, data_vector_size=data_vector_size,
        seq_len=S, head_pad=head_pad)

    x2d = x.reshape(B * S, input_size)                       # fold batch into M rows

    kernel = functools.partial(_transformer_kernel, d_model=d_model, nhead=nhead,
                               num_layers=num_layers, bb=bb, seq_len=S)

    in_arrays = (x2d, pe, win, bin_, wqkv, bqkv, wo, bo,
                 ln1_w, ln1_b, lin1_w, lin1_b, lin2_w, lin2_b, ln2_w, ln2_b,
                 head_w, head_b)

    in_specs = [pl.BlockSpec((bb * S, input_size), lambda i: (i, 0))]
    in_specs += [_full_spec(a.shape) for a in in_arrays[1:]]

    grid_spec = pltpu.PrefetchScalarGridSpec(
        num_scalar_prefetch=0,
        grid=(B // bb,),
        in_specs=in_specs,
        out_specs=pl.BlockSpec((bb, head_pad), lambda i: (i, 0)),
    )

    # ---- advisory cost estimate + explicit VMEM sizing (safe for v7x's 64 MiB) ----
    M, G, ff = bb * S, bb * nhead, 4 * d_model
    flops = 2 * B * S * (
        input_size * d_model
        + num_layers * (3 * d_model * d_model       # fused QKV
                        + 2 * S * d_model           # scores + PV
                        + d_model * d_model         # out projection
                        + 2 * d_model * ff)         # FFN
    ) + 2 * B * d_model * head_pad
    transcendentals = B * num_layers * (nhead * S * S + 2 * S * ff)
    weight_bytes = sum(int(a.size) * a.dtype.itemsize for a in in_arrays[1:])
    bytes_accessed = int(x2d.size * 4 + B * head_pad * 4 + weight_bytes)

    act_bytes = 4 * (4 * M * d_model + 3 * M * d_model + 2 * G * S * S
                     + 2 * M * ff + bb * head_pad)
    io_bytes = 2 * 4 * (M * input_size + bb * head_pad)      # double-buffered blocks
    vmem_limit = int(min(64 * 2**20,
                         max(8 * 2**20, 2 * (weight_bytes + act_bytes + io_bytes))))

    fused = pl.pallas_call(
        kernel,
        out_shape=jax.ShapeDtypeStruct((B, head_pad), jnp.float32),
        grid_spec=grid_spec,
        compiler_params=pltpu.CompilerParams(
            dimension_semantics=("parallel",),
            vmem_limit_bytes=vmem_limit),
        cost_estimate=pl.CostEstimate(flops=int(flops),
                                      transcendentals=int(transcendentals),
                                      bytes_accessed=bytes_accessed),
    )(*in_arrays)

    class_pred = fused[:, :num_classes]
    data_pred = fused[:, num_classes:num_classes + data_vector_size]
    return class_pred, data_pred


# ----------------------------------- main -------------------------------------

if __name__ == "__main__":
    B, S = 2, 8
    input_size, d_model, nhead, num_layers = 16, 32, 4, 2
    num_classes, data_vector_size = 4, 16

    key = jax.random.PRNGKey(0)
    kx, kp = jax.random.split(key)
    x = jax.random.normal(kx, (B, S, input_size), jnp.float32)
    params = init_torch_params(kp, input_size=input_size, d_model=d_model, nhead=nhead,
                               num_layers=num_layers, num_classes=num_classes,
                               data_vector_size=data_vector_size)

    cls_pred, data_pred = transformer_predictor_forward(
        x, params, d_model=d_model, nhead=nhead, num_layers=num_layers,
        num_classes=num_classes, data_vector_size=data_vector_size)

    jax.block_until_ready((cls_pred, data_pred))
    assert cls_pred.shape == (B, num_classes)
    assert data_pred.shape == (B, data_vector_size)
    assert bool(jnp.all(jnp.isfinite(cls_pred))) and bool(jnp.all(jnp.isfinite(data_pred)))
    print("KERNEL_OK")
</pallas_src>

<mosaic_0001>
module attributes {stable_mosaic.version = 11 : i64} {
  func.func @_transformer_kernel(%arg0: i32, %arg1: memref<16x16xf32, #tpu.memory_space<vmem>>, %arg2: memref<8x32xf32, #tpu.memory_space<vmem>>, %arg3: memref<16x32xbf16, #tpu.memory_space<vmem>>, %arg4: memref<1x32xf32, #tpu.memory_space<vmem>>, %arg5: memref<2x32x96xbf16, #tpu.memory_space<vmem>>, %arg6: memref<2x1x96xf32, #tpu.memory_space<vmem>>, %arg7: memref<2x32x32xbf16, #tpu.memory_space<vmem>>, %arg8: memref<2x1x32xf32, #tpu.memory_space<vmem>>, %arg9: memref<2x1x32xf32, #tpu.memory_space<vmem>>, %arg10: memref<2x1x32xf32, #tpu.memory_space<vmem>>, %arg11: memref<2x32x128xbf16, #tpu.memory_space<vmem>>, %arg12: memref<2x1x128xf32, #tpu.memory_space<vmem>>, %arg13: memref<2x128x32xbf16, #tpu.memory_space<vmem>>, %arg14: memref<2x1x32xf32, #tpu.memory_space<vmem>>, %arg15: memref<2x1x32xf32, #tpu.memory_space<vmem>>, %arg16: memref<2x1x32xf32, #tpu.memory_space<vmem>>, %arg17: memref<32x128xbf16, #tpu.memory_space<vmem>>, %arg18: memref<1x128xf32, #tpu.memory_space<vmem>>, %arg19: memref<2x128xf32, #tpu.memory_space<vmem>>) attributes {dimension_semantics = [#tpu.dimension_semantics<parallel>], iteration_bounds = array<i64: 1>, scalar_prefetch = 0 : i64, scratch_operands = 0 : i64, tpu.core_type = #tpu.core_type<tc>, window_params = [{transform_indices = @transform_0, window_bounds = array<i64: 16, 16>}, {pipeline_mode = #tpu.pipeline_mode<synchronous>, transform_indices = @transform_1, window_bounds = array<i64: 8, 32>}, {pipeline_mode = #tpu.pipeline_mode<synchronous>, transform_indices = @transform_2, window_bounds = array<i64: 16, 32>}, {pipeline_mode = #tpu.pipeline_mode<synchronous>, transform_indices = @transform_3, window_bounds = array<i64: 1, 32>}, {pipeline_mode = #tpu.pipeline_mode<synchronous>, transform_indices = @transform_4, window_bounds = array<i64: 2, 32, 96>}, {pipeline_mode = #tpu.pipeline_mode<synchronous>, transform_indices = @transform_5, window_bounds = array<i64: 2, 1, 96>}, {pipeline_mode = #tpu.pipeline_mode<synchronous>, transform_indices = @transform_6, window_bounds = array<i64: 2, 32, 32>}, {pipeline_mode = #tpu.pipeline_mode<synchronous>, transform_indices = @transform_7, window_bounds = array<i64: 2, 1, 32>}, {pipeline_mode = #tpu.pipeline_mode<synchronous>, transform_indices = @transform_8, window_bounds = array<i64: 2, 1, 32>}, {pipeline_mode = #tpu.pipeline_mode<synchronous>, transform_indices = @transform_9, window_bounds = array<i64: 2, 1, 32>}, {pipeline_mode = #tpu.pipeline_mode<synchronous>, transform_indices = @transform_10, window_bounds = array<i64: 2, 32, 128>}, {pipeline_mode = #tpu.pipeline_mode<synchronous>, transform_indices = @transform_11, window_bounds = array<i64: 2, 1, 128>}, {pipeline_mode = #tpu.pipeline_mode<synchronous>, transform_indices = @transform_12, window_bounds = array<i64: 2, 128, 32>}, {pipeline_mode = #tpu.pipeline_mode<synchronous>, transform_indices = @transform_13, window_bounds = array<i64: 2, 1, 32>}, {pipeline_mode = #tpu.pipeline_mode<synchronous>, transform_indices = @transform_14, window_bounds = array<i64: 2, 1, 32>}, {pipeline_mode = #tpu.pipeline_mode<synchronous>, transform_indices = @transform_15, window_bounds = array<i64: 2, 1, 32>}, {pipeline_mode = #tpu.pipeline_mode<synchronous>, transform_indices = @transform_16, window_bounds = array<i64: 32, 128>}, {pipeline_mode = #tpu.pipeline_mode<synchronous>, transform_indices = @transform_17, window_bounds = array<i64: 1, 128>}, {transform_indices = @transform_18, window_bounds = array<i64: 2, 128>}]} {
    %c0 = arith.constant 0 : index
    %c0_0 = arith.constant 0 : index
    %0 = vector.load %arg1[%c0, %c0_0] : memref<16x16xf32, #tpu.memory_space<vmem>>, vector<16x16xf32>
    %1 = arith.truncf %0 : vector<16x16xf32> to vector<16x16xbf16>
    %c0_1 = arith.constant 0 : index
    %c0_2 = arith.constant 0 : index
    %2 = vector.load %arg3[%c0_1, %c0_2] : memref<16x32xbf16, #tpu.memory_space<vmem>>, vector<16x32xbf16>
    %cst = arith.constant dense<0.000000e+00> : vector<16x32xf32>
    %3 = tpu.matmul %1, %2, %cst {dimension_numbers = #tpu.dot_dimension_numbers<[1], [0], [0], [1], [0, 0, 1, 1], [], []>} : vector<16x16xbf16>, vector<16x32xbf16>, vector<16x32xf32> -> vector<16x32xf32>
    %c0_3 = arith.constant 0 : index
    %c0_4 = arith.constant 0 : index
    %4 = vector.load %arg4[%c0_3, %c0_4] : memref<1x32xf32, #tpu.memory_space<vmem>>, vector<1x32xf32>
    %5 = vector.broadcast %4 : vector<1x32xf32> to vector<16x32xf32>
    %6 = arith.addf %3, %5 : vector<16x32xf32>
    %7 = vector.shape_cast %6 : vector<16x32xf32> to vector<2x8x32xf32>
    %c0_5 = arith.constant 0 : index
    %c0_6 = arith.constant 0 : index
    %8 = vector.load %arg2[%c0_5, %c0_6] : memref<8x32xf32, #tpu.memory_space<vmem>>, vector<8x32xf32>
    %9 = vector.shape_cast %8 : vector<8x32xf32> to vector<1x8x32xf32>
    %10 = vector.broadcast %9 : vector<1x8x32xf32> to vector<2x8x32xf32>
    %11 = arith.addf %7, %10 : vector<2x8x32xf32>
    %12 = vector.shape_cast %11 : vector<2x8x32xf32> to vector<16x32xf32>
    %13 = arith.truncf %12 : vector<16x32xf32> to vector<16x32xbf16>
    %c0_7 = arith.constant 0 : index
    %c0_8 = arith.constant 0 : index
    %c0_9 = arith.constant 0 : index
    %14 = vector.load %arg5[%c0_7, %c0_8, %c0_9] : memref<2x32x96xbf16, #tpu.memory_space<vmem>>, vector<1x32x96xbf16>
    %15 = vector.shape_cast %14 : vector<1x32x96xbf16> to vector<32x96xbf16>
    %cst_10 = arith.constant dense<0.000000e+00> : vector<16x96xf32>
    %16 = tpu.matmul %13, %15, %cst_10 {dimension_numbers = #tpu.dot_dimension_numbers<[1], [0], [0], [1], [0, 0, 1, 1], [], []>} : vector<16x32xbf16>, vector<32x96xbf16>, vector<16x96xf32> -> vector<16x96xf32>
    %c0_11 = arith.constant 0 : index
    %c0_12 = arith.constant 0 : index
    %c0_13 = arith.constant 0 : index
    %17 = vector.load %arg6[%c0_11, %c0_12, %c0_13] : memref<2x1x96xf32, #tpu.memory_space<vmem>>, vector<1x1x96xf32>
    %18 = vector.shape_cast %17 : vector<1x1x96xf32> to vector<1x96xf32>
    %19 = vector.broadcast %18 : vector<1x96xf32> to vector<16x96xf32>
    %20 = arith.addf %16, %19 : vector<16x96xf32>
    %21 = vector.extract_strided_slice %20 {offsets = [0, 0], sizes = [16, 32], strides = [1, 1]} : vector<16x96xf32> to vector<16x32xf32>
    %22 = arith.truncf %21 : vector<16x32xf32> to vector<16x32xbf16>
    %23 = vector.shape_cast %22 : vector<16x32xbf16> to vector<2x8x4x8xbf16>
    %24 = tpu.transpose %23, [0, 2, 1, 3] : vector<2x8x4x8xbf16> -> vector<2x4x8x8xbf16>
    %25 = vector.shape_cast %24 : vector<2x4x8x8xbf16> to vector<8x8x8xbf16>
    %26 = vector.extract_strided_slice %20 {offsets = [0, 32], sizes = [16, 32], strides = [1, 1]} : vector<16x96xf32> to vector<16x32xf32>
    %27 = arith.truncf %26 : vector<16x32xf32> to vector<16x32xbf16>
    %28 = vector.shape_cast %27 : vector<16x32xbf16> to vector<2x8x4x8xbf16>
    %29 = tpu.transpose %28, [0, 2, 1, 3] : vector<2x8x4x8xbf16> -> vector<2x4x8x8xbf16>
    %30 = vector.shape_cast %29 : vector<2x4x8x8xbf16> to vector<8x8x8xbf16>
    %31 = vector.extract_strided_slice %20 {offsets = [0, 64], sizes = [16, 32], strides = [1, 1]} : vector<16x96xf32> to vector<16x32xf32>
    %32 = arith.truncf %31 : vector<16x32xf32> to vector<16x32xbf16>
    %33 = vector.shape_cast %32 : vector<16x32xbf16> to vector<2x8x4x8xbf16>
    %34 = tpu.transpose %33, [0, 2, 1, 3] : vector<2x8x4x8xbf16> -> vector<2x4x8x8xbf16>
    %35 = vector.shape_cast %34 : vector<2x4x8x8xbf16> to vector<8x8x8xbf16>
    "tpu.trace_start"() <{level = 10 : i32, message = "gqh,gkh->gqk"}> : () -> ()
    %cst_14 = arith.constant dense<0.000000e+00> : vector<8x8x8xf32>
    %36 = tpu.matmul %25, %30, %cst_14 {dimension_numbers = #tpu.dot_dimension_numbers<[2], [2], [1], [1], [0, 0, 0, 1, 1, 1], [0], [0]>} : vector<8x8x8xbf16>, vector<8x8x8xbf16>, vector<8x8x8xf32> -> vector<8x8x8xf32>
    "tpu.trace_stop"() : () -> ()
    %cst_15 = arith.constant dense<0xFF800000> : vector<8x8xf32>
    %37 = vector.multi_reduction <maximumf>, %36, %cst_15 [2] : vector<8x8x8xf32> to vector<8x8xf32>
    %38 = vector.shape_cast %37 : vector<8x8xf32> to vector<8x8x1xf32>
    %39 = vector.broadcast %38 : vector<8x8x1xf32> to vector<8x8x8xf32>
    %40 = arith.subf %36, %39 : vector<8x8x8xf32>
    %41 = math.exp %40 : vector<8x8x8xf32>
    %cst_16 = arith.constant dense<0.000000e+00> : vector<8x8xf32>
    %42 = vector.multi_reduction <add>, %41, %cst_16 [2] : vector<8x8x8xf32> to vector<8x8xf32>
    %43 = vector.shape_cast %42 : vector<8x8xf32> to vector<8x8x1xf32>
    %44 = tpu.reciprocal %43 {approx = true} : vector<8x8x1xf32> -> vector<8x8x1xf32>
    %45 = vector.broadcast %44 : vector<8x8x1xf32> to vector<8x8x8xf32>
    %46 = arith.mulf %41, %45 : vector<8x8x8xf32>
    %47 = arith.truncf %46 : vector<8x8x8xf32> to vector<8x8x8xbf16>
    "tpu.trace_start"() <{level = 10 : i32, message = "gqk,gkh->gqh"}> : () -> ()
    %cst_17 = arith.constant dense<0.000000e+00> : vector<8x8x8xf32>
    %48 = tpu.matmul %47, %35, %cst_17 {dimension_numbers = #tpu.dot_dimension_numbers<[2], [1], [1], [2], [0, 0, 0, 1, 1, 2], [0], [0]>} : vector<8x8x8xbf16>, vector<8x8x8xbf16>, vector<8x8x8xf32> -> vector<8x8x8xf32>
    "tpu.trace_stop"() : () -> ()
    %49 = arith.truncf %48 : vector<8x8x8xf32> to vector<8x8x8xbf16>
    %50 = vector.shape_cast %49 : vector<8x8x8xbf16> to vector<2x4x8x8xbf16>
    %51 = tpu.transpose %50, [0, 2, 1, 3] : vector<2x4x8x8xbf16> -> vector<2x8x4x8xbf16>
    %52 = vector.shape_cast %51 : vector<2x8x4x8xbf16> to vector<16x32xbf16>
    %c0_18 = arith.constant 0 : index
    %c0_19 = arith.constant 0 : index
    %c0_20 = arith.constant 0 : index
    %53 = vector.load %arg7[%c0_18, %c0_19, %c0_20] : memref<2x32x32xbf16, #tpu.memory_space<vmem>>, vector<1x32x32xbf16>
    %54 = vector.shape_cast %53 : vector<1x32x32xbf16> to vector<32x32xbf16>
    %cst_21 = arith.constant dense<0.000000e+00> : vector<16x32xf32>
    %55 = tpu.matmul %52, %54, %cst_21 {dimension_numbers = #tpu.dot_dimension_numbers<[1], [0], [0], [1], [0, 0, 1, 1], [], []>} : vector<16x32xbf16>, vector<32x32xbf16>, vector<16x32xf32> -> vector<16x32xf32>
    %c0_22 = arith.constant 0 : index
    %c0_23 = arith.constant 0 : index
    %c0_24 = arith.constant 0 : index
    %56 = vector.load %arg8[%c0_22, %c0_23, %c0_24] : memref<2x1x32xf32, #tpu.memory_space<vmem>>, vector<1x1x32xf32>
    %57 = vector.shape_cast %56 : vector<1x1x32xf32> to vector<1x32xf32>
    %58 = vector.broadcast %57 : vector<1x32xf32> to vector<16x32xf32>
    %59 = arith.addf %55, %58 : vector<16x32xf32>
    %60 = arith.addf %12, %59 : vector<16x32xf32>
    %c0_25 = arith.constant 0 : index
    %c0_26 = arith.constant 0 : index
    %c0_27 = arith.constant 0 : index
    %61 = vector.load %arg9[%c0_25, %c0_26, %c0_27] : memref<2x1x32xf32, #tpu.memory_space<vmem>>, vector<1x1x32xf32>
    %62 = vector.shape_cast %61 : vector<1x1x32xf32> to vector<1x32xf32>
    %c0_28 = arith.constant 0 : index
    %c0_29 = arith.constant 0 : index
    %c0_30 = arith.constant 0 : index
    %63 = vector.load %arg10[%c0_28, %c0_29, %c0_30] : memref<2x1x32xf32, #tpu.memory_space<vmem>>, vector<1x1x32xf32>
    %64 = vector.shape_cast %63 : vector<1x1x32xf32> to vector<1x32xf32>
    %cst_31 = arith.constant dense<0.000000e+00> : vector<16xf32>
    %65 = vector.multi_reduction <add>, %60, %cst_31 [1] : vector<16x32xf32> to vector<16xf32>
    %66 = vector.shape_cast %65 : vector<16xf32> to vector<16x1xf32>
    %cst_32 = arith.constant 3.200000e+01 : f32
    %67 = vector.broadcast %cst_32 : f32 to vector<16x1xf32>
    %68 = arith.divf %66, %67 : vector<16x1xf32>
    %69 = vector.broadcast %68 : vector<16x1xf32> to vector<16x32xf32>
    %70 = arith.subf %60, %69 : vector<16x32xf32>
    %71 = arith.mulf %70, %70 : vector<16x32xf32>
    %cst_33 = arith.constant dense<0.000000e+00> : vector<16xf32>
    %72 = vector.multi_reduction <add>, %71, %cst_33 [1] : vector<16x32xf32> to vector<16xf32>
    %73 = vector.shape_cast %72 : vector<16xf32> to vector<16x1xf32>
    %cst_34 = arith.constant 3.200000e+01 : f32
    %74 = vector.broadcast %cst_34 : f32 to vector<16x1xf32>
    %75 = arith.divf %73, %74 : vector<16x1xf32>
    %76 = vector.broadcast %68 : vector<16x1xf32> to vector<16x32xf32>
    %77 = arith.subf %60, %76 : vector<16x32xf32>
    %cst_35 = arith.constant 9.99999974E-6 : f32
    %78 = vector.broadcast %cst_35 : f32 to vector<16x1xf32>
    %79 = arith.addf %75, %78 : vector<16x1xf32>
    %80 = math.rsqrt %79 : vector<16x1xf32>
    %81 = vector.broadcast %80 : vector<16x1xf32> to vector<16x32xf32>
    %82 = arith.mulf %77, %81 : vector<16x32xf32>
    %83 = vector.broadcast %62 : vector<1x32xf32> to vector<16x32xf32>
    %84 = arith.mulf %82, %83 : vector<16x32xf32>
    %85 = vector.broadcast %64 : vector<1x32xf32> to vector<16x32xf32>
    %86 = arith.addf %84, %85 : vector<16x32xf32>
    %87 = arith.truncf %86 : vector<16x32xf32> to vector<16x32xbf16>
    %c0_36 = arith.constant 0 : index
    %c0_37 = arith.constant 0 : index
    %c0_38 = arith.constant 0 : index
    %88 = vector.load %arg11[%c0_36, %c0_37, %c0_38] : memref<2x32x128xbf16, #tpu.memory_space<vmem>>, vector<1x32x128xbf16>
    %89 = vector.shape_cast %88 : vector<1x32x128xbf16> to vector<32x128xbf16>
    %cst_39 = arith.constant dense<0.000000e+00> : vector<16x128xf32>
    %90 = tpu.matmul %87, %89, %cst_39 {dimension_numbers = #tpu.dot_dimension_numbers<[1], [0], [0], [1], [0, 0, 1, 1], [], []>} : vector<16x32xbf16>, vector<32x128xbf16>, vector<16x128xf32> -> vector<16x128xf32>
    %c0_40 = arith.constant 0 : index
    %c0_41 = arith.constant 0 : index
    %c0_42 = arith.constant 0 : index
    %91 = vector.load %arg12[%c0_40, %c0_41, %c0_42] : memref<2x1x128xf32, #tpu.memory_space<vmem>>, vector<1x1x128xf32>
    %92 = vector.shape_cast %91 : vector<1x1x128xf32> to vector<1x128xf32>
    %93 = vector.broadcast %92 : vector<1x128xf32> to vector<16x128xf32>
    %94 = arith.addf %90, %93 : vector<16x128xf32>
    %cst_43 = arith.constant 5.000000e-01 : f32
    %95 = vector.broadcast %cst_43 : f32 to vector<16x128xf32>
    %96 = arith.mulf %95, %94 : vector<16x128xf32>
    %cst_44 = arith.constant 0.707106769 : f32
    %97 = vector.broadcast %cst_44 : f32 to vector<16x128xf32>
    %98 = arith.mulf %94, %97 : vector<16x128xf32>
    %99 = math.absf %98 : vector<16x128xf32>
    %cst_45 = arith.constant 0.327591091 : f32
    %100 = vector.broadcast %cst_45 : f32 to vector<16x128xf32>
    %101 = arith.mulf %100, %99 : vector<16x128xf32>
    %cst_46 = arith.constant 1.000000e+00 : f32
    %102 = vector.broadcast %cst_46 : f32 to vector<16x128xf32>
    %103 = arith.addf %102, %101 : vector<16x128xf32>
    %cst_47 = arith.constant 1.000000e+00 : f32
    %104 = vector.broadcast %cst_47 : f32 to vector<16x128xf32>
    %105 = arith.divf %104, %103 : vector<16x128xf32>
    %cst_48 = arith.constant 1.06140542 : f32
    %106 = vector.broadcast %cst_48 : f32 to vector<16x128xf32>
    %107 = arith.mulf %105, %106 : vector<16x128xf32>
    %cst_49 = arith.constant -1.45315206 : f32
    %108 = vector.broadcast %cst_49 : f32 to vector<16x128xf32>
    %109 = arith.addf %108, %107 : vector<16x128xf32>
    %110 = arith.mulf %105, %109 : vector<16x128xf32>
    %cst_50 = arith.constant 1.42141378 : f32
    %111 = vector.broadcast %cst_50 : f32 to vector<16x128xf32>
    %112 = arith.addf %111, %110 : vector<16x128xf32>
    %113 = arith.mulf %105, %112 : vector<16x128xf32>
    %cst_51 = arith.constant -0.284496725 : f32
    %114 = vector.broadcast %cst_51 : f32 to vector<16x128xf32>
    %115 = arith.addf %114, %113 : vector<16x128xf32>
    %116 = arith.mulf %105, %115 : vector<16x128xf32>
    %cst_52 = arith.constant 0.254829586 : f32
    %117 = vector.broadcast %cst_52 : f32 to vector<16x128xf32>
    %118 = arith.addf %117, %116 : vector<16x128xf32>
    %119 = arith.mulf %105, %118 : vector<16x128xf32>
    %cst_53 = arith.constant 0.000000e+00 : f32
    %120 = vector.broadcast %cst_53 : f32 to vector<16x128xf32>
    %121 = arith.subf %120, %99 : vector<16x128xf32>
    %122 = arith.mulf %121, %99 : vector<16x128xf32>
    %123 = math.exp %122 : vector<16x128xf32>
    %124 = arith.mulf %119, %123 : vector<16x128xf32>
    %cst_54 = arith.constant 1.000000e+00 : f32
    %125 = vector.broadcast %cst_54 : f32 to vector<16x128xf32>
    %126 = arith.subf %125, %124 : vector<16x128xf32>
    %cst_55 = arith.constant 0.000000e+00 : f32
    %127 = vector.broadcast %cst_55 : f32 to vector<16x128xf32>
    %128 = arith.cmpf oge, %98, %127 : vector<16x128xf32>
    %cst_56 = arith.constant 0.000000e+00 : f32
    %129 = vector.broadcast %cst_56 : f32 to vector<16x128xf32>
    %130 = arith.subf %129, %126 : vector<16x128xf32>
    %131 = arith.select %128, %126, %130 : vector<16x128xi1>, vector<16x128xf32>
    %cst_57 = arith.constant 1.000000e+00 : f32
    %132 = vector.broadcast %cst_57 : f32 to vector<16x128xf32>
    %133 = arith.addf %132, %131 : vector<16x128xf32>
    %134 = arith.mulf %96, %133 : vector<16x128xf32>
    %135 = arith.truncf %134 : vector<16x128xf32> to vector<16x128xbf16>
    %c0_58 = arith.constant 0 : index
    %c0_59 = arith.constant 0 : index
    %c0_60 = arith.constant 0 : index
    %136 = vector.load %arg13[%c0_58, %c0_59, %c0_60] : memref<2x128x32xbf16, #tpu.memory_space<vmem>>, vector<1x128x32xbf16>
    %137 = vector.shape_cast %136 : vector<1x128x32xbf16> to vector<128x32xbf16>
    %cst_61 = arith.constant dense<0.000000e+00> : vector<16x32xf32>
    %138 = tpu.matmul %135, %137, %cst_61 {dimension_numbers = #tpu.dot_dimension_numbers<[1], [0], [0], [1], [0, 0, 1, 1], [], []>} : vector<16x128xbf16>, vector<128x32xbf16>, vector<16x32xf32> -> vector<16x32xf32>
    %c0_62 = arith.constant 0 : index
    %c0_63 = arith.constant 0 : index
    %c0_64 = arith.constant 0 : index
    %139 = vector.load %arg14[%c0_62, %c0_63, %c0_64] : memref<2x1x32xf32, #tpu.memory_space<vmem>>, vector<1x1x32xf32>
    %140 = vector.shape_cast %139 : vector<1x1x32xf32> to vector<1x32xf32>
    %141 = vector.broadcast %140 : vector<1x32xf32> to vector<16x32xf32>
    %142 = arith.addf %138, %141 : vector<16x32xf32>
    %143 = arith.addf %86, %142 : vector<16x32xf32>
    %c0_65 = arith.constant 0 : index
    %c0_66 = arith.constant 0 : index
    %c0_67 = arith.constant 0 : index
    %144 = vector.load %arg15[%c0_65, %c0_66, %c0_67] : memref<2x1x32xf32, #tpu.memory_space<vmem>>, vector<1x1x32xf32>
    %145 = vector.shape_cast %144 : vector<1x1x32xf32> to vector<1x32xf32>
    %c0_68 = arith.constant 0 : index
    %c0_69 = arith.constant 0 : index
    %c0_70 = arith.constant 0 : index
    %146 = vector.load %arg16[%c0_68, %c0_69, %c0_70] : memref<2x1x32xf32, #tpu.memory_space<vmem>>, vector<1x1x32xf32>
    %147 = vector.shape_cast %146 : vector<1x1x32xf32> to vector<1x32xf32>
    %cst_71 = arith.constant dense<0.000000e+00> : vector<16xf32>
    %148 = vector.multi_reduction <add>, %143, %cst_71 [1] : vector<16x32xf32> to vector<16xf32>
    %149 = vector.shape_cast %148 : vector<16xf32> to vector<16x1xf32>
    %cst_72 = arith.constant 3.200000e+01 : f32
    %150 = vector.broadcast %cst_72 : f32 to vector<16x1xf32>
    %151 = arith.divf %149, %150 : vector<16x1xf32>
    %152 = vector.broadcast %151 : vector<16x1xf32> to vector<16x32xf32>
    %153 = arith.subf %143, %152 : vector<16x32xf32>
    %154 = arith.mulf %153, %153 : vector<16x32xf32>
    %cst_73 = arith.constant dense<0.000000e+00> : vector<16xf32>
    %155 = vector.multi_reduction <add>, %154, %cst_73 [1] : vector<16x32xf32> to vector<16xf32>
    %156 = vector.shape_cast %155 : vector<16xf32> to vector<16x1xf32>
    %cst_74 = arith.constant 3.200000e+01 : f32
    %157 = vector.broadcast %cst_74 : f32 to vector<16x1xf32>
    %158 = arith.divf %156, %157 : vector<16x1xf32>
    %159 = vector.broadcast %151 : vector<16x1xf32> to vector<16x32xf32>
    %160 = arith.subf %143, %159 : vector<16x32xf32>
    %cst_75 = arith.constant 9.99999974E-6 : f32
    %161 = vector.broadcast %cst_75 : f32 to vector<16x1xf32>
    %162 = arith.addf %158, %161 : vector<16x1xf32>
    %163 = math.rsqrt %162 : vector<16x1xf32>
    %164 = vector.broadcast %163 : vector<16x1xf32> to vector<16x32xf32>
    %165 = arith.mulf %160, %164 : vector<16x32xf32>
    %166 = vector.broadcast %145 : vector<1x32xf32> to vector<16x32xf32>
    %167 = arith.mulf %165, %166 : vector<16x32xf32>
    %168 = vector.broadcast %147 : vector<1x32xf32> to vector<16x32xf32>
    %169 = arith.addf %167, %168 : vector<16x32xf32>
    %170 = arith.truncf %169 : vector<16x32xf32> to vector<16x32xbf16>
    %c1 = arith.constant 1 : index
    %c0_76 = arith.constant 0 : index
    %c0_77 = arith.constant 0 : index
    %171 = vector.load %arg5[%c1, %c0_76, %c0_77] : memref<2x32x96xbf16, #tpu.memory_space<vmem>>, vector<1x32x96xbf16>
    %172 = vector.shape_cast %171 : vector<1x32x96xbf16> to vector<32x96xbf16>
    %cst_78 = arith.constant dense<0.000000e+00> : vector<16x96xf32>
    %173 = tpu.matmul %170, %172, %cst_78 {dimension_numbers = #tpu.dot_dimension_numbers<[1], [0], [0], [1], [0, 0, 1, 1], [], []>} : vector<16x32xbf16>, vector<32x96xbf16>, vector<16x96xf32> -> vector<16x96xf32>
    %c1_79 = arith.constant 1 : index
    %c0_80 = arith.constant 0 : index
    %c0_81 = arith.constant 0 : index
    %174 = vector.load %arg6[%c1_79, %c0_80, %c0_81] : memref<2x1x96xf32, #tpu.memory_space<vmem>>, vector<1x1x96xf32>
    %175 = vector.shape_cast %174 : vector<1x1x96xf32> to vector<1x96xf32>
    %176 = vector.broadcast %175 : vector<1x96xf32> to vector<16x96xf32>
    %177 = arith.addf %173, %176 : vector<16x96xf32>
    %178 = vector.extract_strided_slice %177 {offsets = [0, 0], sizes = [16, 32], strides = [1, 1]} : vector<16x96xf32> to vector<16x32xf32>
    %179 = arith.truncf %178 : vector<16x32xf32> to vector<16x32xbf16>
    %180 = vector.shape_cast %179 : vector<16x32xbf16> to vector<2x8x4x8xbf16>
    %181 = tpu.transpose %180, [0, 2, 1, 3] : vector<2x8x4x8xbf16> -> vector<2x4x8x8xbf16>
    %182 = vector.shape_cast %181 : vector<2x4x8x8xbf16> to vector<8x8x8xbf16>
    %183 = vector.extract_strided_slice %177 {offsets = [0, 32], sizes = [16, 32], strides = [1, 1]} : vector<16x96xf32> to vector<16x32xf32>
    %184 = arith.truncf %183 : vector<16x32xf32> to vector<16x32xbf16>
    %185 = vector.shape_cast %184 : vector<16x32xbf16> to vector<2x8x4x8xbf16>
    %186 = tpu.transpose %185, [0, 2, 1, 3] : vector<2x8x4x8xbf16> -> vector<2x4x8x8xbf16>
    %187 = vector.shape_cast %186 : vector<2x4x8x8xbf16> to vector<8x8x8xbf16>
    %188 = vector.extract_strided_slice %177 {offsets = [0, 64], sizes = [16, 32], strides = [1, 1]} : vector<16x96xf32> to vector<16x32xf32>
    %189 = arith.truncf %188 : vector<16x32xf32> to vector<16x32xbf16>
    %190 = vector.shape_cast %189 : vector<16x32xbf16> to vector<2x8x4x8xbf16>
    %191 = tpu.transpose %190, [0, 2, 1, 3] : vector<2x8x4x8xbf16> -> vector<2x4x8x8xbf16>
    %192 = vector.shape_cast %191 : vector<2x4x8x8xbf16> to vector<8x8x8xbf16>
    "tpu.trace_start"() <{level = 10 : i32, message = "gqh,gkh->gqk"}> : () -> ()
    %cst_82 = arith.constant dense<0.000000e+00> : vector<8x8x8xf32>
    %193 = tpu.matmul %182, %187, %cst_82 {dimension_numbers = #tpu.dot_dimension_numbers<[2], [2], [1], [1], [0, 0, 0, 1, 1, 1], [0], [0]>} : vector<8x8x8xbf16>, vector<8x8x8xbf16>, vector<8x8x8xf32> -> vector<8x8x8xf32>
    "tpu.trace_stop"() : () -> ()
    %cst_83 = arith.constant dense<0xFF800000> : vector<8x8xf32>
    %194 = vector.multi_reduction <maximumf>, %193, %cst_83 [2] : vector<8x8x8xf32> to vector<8x8xf32>
    %195 = vector.shape_cast %194 : vector<8x8xf32> to vector<8x8x1xf32>
    %196 = vector.broadcast %195 : vector<8x8x1xf32> to vector<8x8x8xf32>
    %197 = arith.subf %193, %196 : vector<8x8x8xf32>
    %198 = math.exp %197 : vector<8x8x8xf32>
    %cst_84 = arith.constant dense<0.000000e+00> : vector<8x8xf32>
    %199 = vector.multi_reduction <add>, %198, %cst_84 [2] : vector<8x8x8xf32> to vector<8x8xf32>
    %200 = vector.shape_cast %199 : vector<8x8xf32> to vector<8x8x1xf32>
    %201 = tpu.reciprocal %200 {approx = true} : vector<8x8x1xf32> -> vector<8x8x1xf32>
    %202 = vector.broadcast %201 : vector<8x8x1xf32> to vector<8x8x8xf32>
    %203 = arith.mulf %198, %202 : vector<8x8x8xf32>
    %204 = arith.truncf %203 : vector<8x8x8xf32> to vector<8x8x8xbf16>
    "tpu.trace_start"() <{level = 10 : i32, message = "gqk,gkh->gqh"}> : () -> ()
    %cst_85 = arith.constant dense<0.000000e+00> : vector<8x8x8xf32>
    %205 = tpu.matmul %204, %192, %cst_85 {dimension_numbers = #tpu.dot_dimension_numbers<[2], [1], [1], [2], [0, 0, 0, 1, 1, 2], [0], [0]>} : vector<8x8x8xbf16>, vector<8x8x8xbf16>, vector<8x8x8xf32> -> vector<8x8x8xf32>
    "tpu.trace_stop"() : () -> ()
    %206 = arith.truncf %205 : vector<8x8x8xf32> to vector<8x8x8xbf16>
    %207 = vector.shape_cast %206 : vector<8x8x8xbf16> to vector<2x4x8x8xbf16>
    %208 = tpu.transpose %207, [0, 2, 1, 3] : vector<2x4x8x8xbf16> -> vector<2x8x4x8xbf16>
    %209 = vector.shape_cast %208 : vector<2x8x4x8xbf16> to vector<16x32xbf16>
    %c1_86 = arith.constant 1 : index
    %c0_87 = arith.constant 0 : index
    %c0_88 = arith.constant 0 : index
    %210 = vector.load %arg7[%c1_86, %c0_87, %c0_88] : memref<2x32x32xbf16, #tpu.memory_space<vmem>>, vector<1x32x32xbf16>
    %211 = vector.shape_cast %210 : vector<1x32x32xbf16> to vector<32x32xbf16>
    %cst_89 = arith.constant dense<0.000000e+00> : vector<16x32xf32>
    %212 = tpu.matmul %209, %211, %cst_89 {dimension_numbers = #tpu.dot_dimension_numbers<[1], [0], [0], [1], [0, 0, 1, 1], [], []>} : vector<16x32xbf16>, vector<32x32xbf16>, vector<16x32xf32> -> vector<16x32xf32>
    %c1_90 = arith.constant 1 : index
    %c0_91 = arith.constant 0 : index
    %c0_92 = arith.constant 0 : index
    %213 = vector.load %arg8[%c1_90, %c0_91, %c0_92] : memref<2x1x32xf32, #tpu.memory_space<vmem>>, vector<1x1x32xf32>
    %214 = vector.shape_cast %213 : vector<1x1x32xf32> to vector<1x32xf32>
    %215 = vector.broadcast %214 : vector<1x32xf32> to vector<16x32xf32>
    %216 = arith.addf %212, %215 : vector<16x32xf32>
    %217 = arith.addf %169, %216 : vector<16x32xf32>
    %c1_93 = arith.constant 1 : index
    %c0_94 = arith.constant 0 : index
    %c0_95 = arith.constant 0 : index
    %218 = vector.load %arg9[%c1_93, %c0_94, %c0_95] : memref<2x1x32xf32, #tpu.memory_space<vmem>>, vector<1x1x32xf32>
    %219 = vector.shape_cast %218 : vector<1x1x32xf32> to vector<1x32xf32>
    %c1_96 = arith.constant 1 : index
    %c0_97 = arith.constant 0 : index
    %c0_98 = arith.constant 0 : index
    %220 = vector.load %arg10[%c1_96, %c0_97, %c0_98] : memref<2x1x32xf32, #tpu.memory_space<vmem>>, vector<1x1x32xf32>
    %221 = vector.shape_cast %220 : vector<1x1x32xf32> to vector<1x32xf32>
    %cst_99 = arith.constant dense<0.000000e+00> : vector<16xf32>
    %222 = vector.multi_reduction <add>, %217, %cst_99 [1] : vector<16x32xf32> to vector<16xf32>
    %223 = vector.shape_cast %222 : vector<16xf32> to vector<16x1xf32>
    %cst_100 = arith.constant 3.200000e+01 : f32
    %224 = vector.broadcast %cst_100 : f32 to vector<16x1xf32>
    %225 = arith.divf %223, %224 : vector<16x1xf32>
    %226 = vector.broadcast %225 : vector<16x1xf32> to vector<16x32xf32>
    %227 = arith.subf %217, %226 : vector<16x32xf32>
    %228 = arith.mulf %227, %227 : vector<16x32xf32>
    %cst_101 = arith.constant dense<0.000000e+00> : vector<16xf32>
    %229 = vector.multi_reduction <add>, %228, %cst_101 [1] : vector<16x32xf32> to vector<16xf32>
    %230 = vector.shape_cast %229 : vector<16xf32> to vector<16x1xf32>
    %cst_102 = arith.constant 3.200000e+01 : f32
    %231 = vector.broadcast %cst_102 : f32 to vector<16x1xf32>
    %232 = arith.divf %230, %231 : vector<16x1xf32>
    %233 = vector.broadcast %225 : vector<16x1xf32> to vector<16x32xf32>
    %234 = arith.subf %217, %233 : vector<16x32xf32>
    %cst_103 = arith.constant 9.99999974E-6 : f32
    %235 = vector.broadcast %cst_103 : f32 to vector<16x1xf32>
    %236 = arith.addf %232, %235 : vector<16x1xf32>
    %237 = math.rsqrt %236 : vector<16x1xf32>
    %238 = vector.broadcast %237 : vector<16x1xf32> to vector<16x32xf32>
    %239 = arith.mulf %234, %238 : vector<16x32xf32>
    %240 = vector.broadcast %219 : vector<1x32xf32> to vector<16x32xf32>
    %241 = arith.mulf %239, %240 : vector<16x32xf32>
    %242 = vector.broadcast %221 : vector<1x32xf32> to vector<16x32xf32>
    %243 = arith.addf %241, %242 : vector<16x32xf32>
    %244 = arith.truncf %243 : vector<16x32xf32> to vector<16x32xbf16>
    %c1_104 = arith.constant 1 : index
    %c0_105 = arith.constant 0 : index
    %c0_106 = arith.constant 0 : index
    %245 = vector.load %arg11[%c1_104, %c0_105, %c0_106] : memref<2x32x128xbf16, #tpu.memory_space<vmem>>, vector<1x32x128xbf16>
    %246 = vector.shape_cast %245 : vector<1x32x128xbf16> to vector<32x128xbf16>
    %cst_107 = arith.constant dense<0.000000e+00> : vector<16x128xf32>
    %247 = tpu.matmul %244, %246, %cst_107 {dimension_numbers = #tpu.dot_dimension_numbers<[1], [0], [0], [1], [0, 0, 1, 1], [], []>} : vector<16x32xbf16>, vector<32x128xbf16>, vector<16x128xf32> -> vector<16x128xf32>
    %c1_108 = arith.constant 1 : index
    %c0_109 = arith.constant 0 : index
    %c0_110 = arith.constant 0 : index
    %248 = vector.load %arg12[%c1_108, %c0_109, %c0_110] : memref<2x1x128xf32, #tpu.memory_space<vmem>>, vector<1x1x128xf32>
    %249 = vector.shape_cast %248 : vector<1x1x128xf32> to vector<1x128xf32>
    %250 = vector.broadcast %249 : vector<1x128xf32> to vector<16x128xf32>
    %251 = arith.addf %247, %250 : vector<16x128xf32>
    %cst_111 = arith.constant 5.000000e-01 : f32
    %252 = vector.broadcast %cst_111 : f32 to vector<16x128xf32>
    %253 = arith.mulf %252, %251 : vector<16x128xf32>
    %cst_112 = arith.constant 0.707106769 : f32
    %254 = vector.broadcast %cst_112 : f32 to vector<16x128xf32>
    %255 = arith.mulf %251, %254 : vector<16x128xf32>
    %256 = math.absf %255 : vector<16x128xf32>
    %cst_113 = arith.constant 0.327591091 : f32
    %257 = vector.broadcast %cst_113 : f32 to vector<16x128xf32>
    %258 = arith.mulf %257, %256 : vector<16x128xf32>
    %cst_114 = arith.constant 1.000000e+00 : f32
    %259 = vector.broadcast %cst_114 : f32 to vector<16x128xf32>
    %260 = arith.addf %259, %258 : vector<16x128xf32>
    %cst_115 = arith.constant 1.000000e+00 : f32
    %261 = vector.broadcast %cst_115 : f32 to vector<16x128xf32>
    %262 = arith.divf %261, %260 : vector<16x128xf32>
    %cst_116 = arith.constant 1.06140542 : f32
    %263 = vector.broadcast %cst_116 : f32 to vector<16x128xf32>
    %264 = arith.mulf %262, %263 : vector<16x128xf32>
    %cst_117 = arith.constant -1.45315206 : f32
    %265 = vector.broadcast %cst_117 : f32 to vector<16x128xf32>
    %266 = arith.addf %265, %264 : vector<16x128xf32>
    %267 = arith.mulf %262, %266 : vector<16x128xf32>
    %cst_118 = arith.constant 1.42141378 : f32
    %268 = vector.broadcast %cst_118 : f32 to vector<16x128xf32>
    %269 = arith.addf %268, %267 : vector<16x128xf32>
    %270 = arith.mulf %262, %269 : vector<16x128xf32>
    %cst_119 = arith.constant -0.284496725 : f32
    %271 = vector.broadcast %cst_119 : f32 to vector<16x128xf32>
    %272 = arith.addf %271, %270 : vector<16x128xf32>
    %273 = arith.mulf %262, %272 : vector<16x128xf32>
    %cst_120 = arith.constant 0.254829586 : f32
    %274 = vector.broadcast %cst_120 : f32 to vector<16x128xf32>
    %275 = arith.addf %274, %273 : vector<16x128xf32>
    %276 = arith.mulf %262, %275 : vector<16x128xf32>
    %cst_121 = arith.constant 0.000000e+00 : f32
    %277 = vector.broadcast %cst_121 : f32 to vector<16x128xf32>
    %278 = arith.subf %277, %256 : vector<16x128xf32>
    %279 = arith.mulf %278, %256 : vector<16x128xf32>
    %280 = math.exp %279 : vector<16x128xf32>
    %281 = arith.mulf %276, %280 : vector<16x128xf32>
    %cst_122 = arith.constant 1.000000e+00 : f32
    %282 = vector.broadcast %cst_122 : f32 to vector<16x128xf32>
    %283 = arith.subf %282, %281 : vector<16x128xf32>
    %cst_123 = arith.constant 0.000000e+00 : f32
    %284 = vector.broadcast %cst_123 : f32 to vector<16x128xf32>
    %285 = arith.cmpf oge, %255, %284 : vector<16x128xf32>
    %cst_124 = arith.constant 0.000000e+00 : f32
    %286 = vector.broadcast %cst_124 : f32 to vector<16x128xf32>
    %287 = arith.subf %286, %283 : vector<16x128xf32>
    %288 = arith.select %285, %283, %287 : vector<16x128xi1>, vector<16x128xf32>
    %cst_125 = arith.constant 1.000000e+00 : f32
    %289 = vector.broadcast %cst_125 : f32 to vector<16x128xf32>
    %290 = arith.addf %289, %288 : vector<16x128xf32>
    %291 = arith.mulf %253, %290 : vector<16x128xf32>
    %292 = arith.truncf %291 : vector<16x128xf32> to vector<16x128xbf16>
    %c1_126 = arith.constant 1 : index
    %c0_127 = arith.constant 0 : index
    %c0_128 = arith.constant 0 : index
    %293 = vector.load %arg13[%c1_126, %c0_127, %c0_128] : memref<2x128x32xbf16, #tpu.memory_space<vmem>>, vector<1x128x32xbf16>
    %294 = vector.shape_cast %293 : vector<1x128x32xbf16> to vector<128x32xbf16>
    %cst_129 = arith.constant dense<0.000000e+00> : vector<16x32xf32>
    %295 = tpu.matmul %292, %294, %cst_129 {dimension_numbers = #tpu.dot_dimension_numbers<[1], [0], [0], [1], [0, 0, 1, 1], [], []>} : vector<16x128xbf16>, vector<128x32xbf16>, vector<16x32xf32> -> vector<16x32xf32>
    %c1_130 = arith.constant 1 : index
    %c0_131 = arith.constant 0 : index
    %c0_132 = arith.constant 0 : index
    %296 = vector.load %arg14[%c1_130, %c0_131, %c0_132] : memref<2x1x32xf32, #tpu.memory_space<vmem>>, vector<1x1x32xf32>
    %297 = vector.shape_cast %296 : vector<1x1x32xf32> to vector<1x32xf32>
    %298 = vector.broadcast %297 : vector<1x32xf32> to vector<16x32xf32>
    %299 = arith.addf %295, %298 : vector<16x32xf32>
    %300 = arith.addf %243, %299 : vector<16x32xf32>
    %c1_133 = arith.constant 1 : index
    %c0_134 = arith.constant 0 : index
    %c0_135 = arith.constant 0 : index
    %301 = vector.load %arg15[%c1_133, %c0_134, %c0_135] : memref<2x1x32xf32, #tpu.memory_space<vmem>>, vector<1x1x32xf32>
    %302 = vector.shape_cast %301 : vector<1x1x32xf32> to vector<1x32xf32>
    %c1_136 = arith.constant 1 : index
    %c0_137 = arith.constant 0 : index
    %c0_138 = arith.constant 0 : index
    %303 = vector.load %arg16[%c1_136, %c0_137, %c0_138] : memref<2x1x32xf32, #tpu.memory_space<vmem>>, vector<1x1x32xf32>
    %304 = vector.shape_cast %303 : vector<1x1x32xf32> to vector<1x32xf32>
    %cst_139 = arith.constant dense<0.000000e+00> : vector<16xf32>
    %305 = vector.multi_reduction <add>, %300, %cst_139 [1] : vector<16x32xf32> to vector<16xf32>
    %306 = vector.shape_cast %305 : vector<16xf32> to vector<16x1xf32>
    %cst_140 = arith.constant 3.200000e+01 : f32
    %307 = vector.broadcast %cst_140 : f32 to vector<16x1xf32>
    %308 = arith.divf %306, %307 : vector<16x1xf32>
    %309 = vector.broadcast %308 : vector<16x1xf32> to vector<16x32xf32>
    %310 = arith.subf %300, %309 : vector<16x32xf32>
    %311 = arith.mulf %310, %310 : vector<16x32xf32>
    %cst_141 = arith.constant dense<0.000000e+00> : vector<16xf32>
    %312 = vector.multi_reduction <add>, %311, %cst_141 [1] : vector<16x32xf32> to vector<16xf32>
    %313 = vector.shape_cast %312 : vector<16xf32> to vector<16x1xf32>
    %cst_142 = arith.constant 3.200000e+01 : f32
    %314 = vector.broadcast %cst_142 : f32 to vector<16x1xf32>
    %315 = arith.divf %313, %314 : vector<16x1xf32>
    %316 = vector.broadcast %308 : vector<16x1xf32> to vector<16x32xf32>
    %317 = arith.subf %300, %316 : vector<16x32xf32>
    %cst_143 = arith.constant 9.99999974E-6 : f32
    %318 = vector.broadcast %cst_143 : f32 to vector<16x1xf32>
    %319 = arith.addf %315, %318 : vector<16x1xf32>
    %320 = math.rsqrt %319 : vector<16x1xf32>
    %321 = vector.broadcast %320 : vector<16x1xf32> to vector<16x32xf32>
    %322 = arith.mulf %317, %321 : vector<16x32xf32>
    %323 = vector.broadcast %302 : vector<1x32xf32> to vector<16x32xf32>
    %324 = arith.mulf %322, %323 : vector<16x32xf32>
    %325 = vector.broadcast %304 : vector<1x32xf32> to vector<16x32xf32>
    %326 = arith.addf %324, %325 : vector<16x32xf32>
    %327 = vector.shape_cast %326 : vector<16x32xf32> to vector<2x8x32xf32>
    %328 = vector.extract_strided_slice %327 {offsets = [0, 7, 0], sizes = [2, 1, 32], strides = [1, 1, 1]} : vector<2x8x32xf32> to vector<2x1x32xf32>
    %329 = vector.shape_cast %328 : vector<2x1x32xf32> to vector<2x32xf32>
    %330 = arith.truncf %329 : vector<2x32xf32> to vector<2x32xbf16>
    %c0_144 = arith.constant 0 : index
    %c0_145 = arith.constant 0 : index
    %331 = vector.load %arg17[%c0_144, %c0_145] : memref<32x128xbf16, #tpu.memory_space<vmem>>, vector<32x128xbf16>
    %cst_146 = arith.constant dense<0.000000e+00> : vector<2x128xf32>
    %332 = tpu.matmul %330, %331, %cst_146 {dimension_numbers = #tpu.dot_dimension_numbers<[1], [0], [0], [1], [0, 0, 1, 1], [], []>} : vector<2x32xbf16>, vector<32x128xbf16>, vector<2x128xf32> -> vector<2x128xf32>
    %c0_147 = arith.constant 0 : index
    %c0_148 = arith.constant 0 : index
    %333 = vector.load %arg18[%c0_147, %c0_148] : memref<1x128xf32, #tpu.memory_space<vmem>>, vector<1x128xf32>
    %334 = vector.broadcast %333 : vector<1x128xf32> to vector<2x128xf32>
    %335 = arith.addf %332, %334 : vector<2x128xf32>
    %c0_149 = arith.constant 0 : index
    %c0_150 = arith.constant 0 : index
    %336 = vector.load %arg19[%c0_149, %c0_150] : memref<2x128xf32, #tpu.memory_space<vmem>>, vector<2x128xf32>
    tpu.vector_store %arg19[%c0_149, %c0_150], %335 {strides = array<i32>} : memref<2x128xf32, #tpu.memory_space<vmem>>, vector<2x128xf32>,
    return
  }
  func.func @transform_0(%arg0: i32) -> (i32, i32) {
    %c0_i32 = arith.constant 0 : i32
    %c0_i32_0 = arith.constant 0 : i32
    return %arg0, %c0_i32 : i32, i32
  }
  func.func @transform_1(%arg0: i32) -> (i32, i32) {
    %c0_i32 = arith.constant 0 : i32
    %c0_i32_0 = arith.constant 0 : i32
    %c0_i32_1 = arith.constant 0 : i32
    return %c0_i32, %c0_i32_0 : i32, i32
  }
  func.func @transform_2(%arg0: i32) -> (i32, i32) {
    %c0_i32 = arith.constant 0 : i32
    %c0_i32_0 = arith.constant 0 : i32
    %c0_i32_1 = arith.constant 0 : i32
    return %c0_i32, %c0_i32_0 : i32, i32
  }
  func.func @transform_3(%arg0: i32) -> (i32, i32) {
    %c0_i32 = arith.constant 0 : i32
    %c0_i32_0 = arith.constant 0 : i32
    %c0_i32_1 = arith.constant 0 : i32
    return %c0_i32, %c0_i32_0 : i32, i32
  }
  func.func @transform_4(%arg0: i32) -> (i32, i32, i32) {
    %c0_i32 = arith.constant 0 : i32
    %c0_i32_0 = arith.constant 0 : i32
    %c0_i32_1 = arith.constant 0 : i32
    %c0_i32_2 = arith.constant 0 : i32
    return %c0_i32, %c0_i32_0, %c0_i32_1 : i32, i32, i32
  }
  func.func @transform_5(%arg0: i32) -> (i32, i32, i32) {
    %c0_i32 = arith.constant 0 : i32
    %c0_i32_0 = arith.constant 0 : i32
    %c0_i32_1 = arith.constant 0 : i32
    %c0_i32_2 = arith.constant 0 : i32
    return %c0_i32, %c0_i32_0, %c0_i32_1 : i32, i32, i32
  }
  func.func @transform_6(%arg0: i32) -> (i32, i32, i32) {
    %c0_i32 = arith.constant 0 : i32
    %c0_i32_0 = arith.constant 0 : i32
    %c0_i32_1 = arith.constant 0 : i32
    %c0_i32_2 = arith.constant 0 : i32
    return %c0_i32, %c0_i32_0, %c0_i32_1 : i32, i32, i32
  }
  func.func @transform_7(%arg0: i32) -> (i32, i32, i32) {
    %c0_i32 = arith.constant 0 : i32
    %c0_i32_0 = arith.constant 0 : i32
    %c0_i32_1 = arith.constant 0 : i32
    %c0_i32_2 = arith.constant 0 : i32
    return %c0_i32, %c0_i32_0, %c0_i32_1 : i32, i32, i32
  }
  func.func @transform_8(%arg0: i32) -> (i32, i32, i32) {
    %c0_i32 = arith.constant 0 : i32
    %c0_i32_0 = arith.constant 0 : i32
    %c0_i32_1 = arith.constant 0 : i32
    %c0_i32_2 = arith.constant 0 : i32
    return %c0_i32, %c0_i32_0, %c0_i32_1 : i32, i32, i32
  }
  func.func @transform_9(%arg0: i32) -> (i32, i32, i32) {
    %c0_i32 = arith.constant 0 : i32
    %c0_i32_0 = arith.constant 0 : i32
    %c0_i32_1 = arith.constant 0 : i32
    %c0_i32_2 = arith.constant 0 : i32
    return %c0_i32, %c0_i32_0, %c0_i32_1 : i32, i32, i32
  }
  func.func @transform_10(%arg0: i32) -> (i32, i32, i32) {
    %c0_i32 = arith.constant 0 : i32
    %c0_i32_0 = arith.constant 0 : i32
    %c0_i32_1 = arith.constant 0 : i32
    %c0_i32_2 = arith.constant 0 : i32
    return %c0_i32, %c0_i32_0, %c0_i32_1 : i32, i32, i32
  }
  func.func @transform_11(%arg0: i32) -> (i32, i32, i32) {
    %c0_i32 = arith.constant 0 : i32
    %c0_i32_0 = arith.constant 0 : i32
    %c0_i32_1 = arith.constant 0 : i32
    %c0_i32_2 = arith.constant 0 : i32
    return %c0_i32, %c0_i32_0, %c0_i32_1 : i32, i32, i32
  }
  func.func @transform_12(%arg0: i32) -> (i32, i32, i32) {
    %c0_i32 = arith.constant 0 : i32
    %c0_i32_0 = arith.constant 0 : i32
    %c0_i32_1 = arith.constant 0 : i32
    %c0_i32_2 = arith.constant 0 : i32
    return %c0_i32, %c0_i32_0, %c0_i32_1 : i32, i32, i32
  }
  func.func @transform_13(%arg0: i32) -> (i32, i32, i32) {
    %c0_i32 = arith.constant 0 : i32
    %c0_i32_0 = arith.constant 0 : i32
    %c0_i32_1 = arith.constant 0 : i32
    %c0_i32_2 = arith.constant 0 : i32
    return %c0_i32, %c0_i32_0, %c0_i32_1 : i32, i32, i32
  }
  func.func @transform_14(%arg0: i32) -> (i32, i32, i32) {
    %c0_i32 = arith.constant 0 : i32
    %c0_i32_0 = arith.constant 0 : i32
    %c0_i32_1 = arith.constant 0 : i32
    %c0_i32_2 = arith.constant 0 : i32
    return %c0_i32, %c0_i32_0, %c0_i32_1 : i32, i32, i32
  }
  func.func @transform_15(%arg0: i32) -> (i32, i32, i32) {
    %c0_i32 = arith.constant 0 : i32
    %c0_i32_0 = arith.constant 0 : i32
    %c0_i32_1 = arith.constant 0 : i32
    %c0_i32_2 = arith.constant 0 : i32
    return %c0_i32, %c0_i32_0, %c0_i32_1 : i32, i32, i32
  }
  func.func @transform_16(%arg0: i32) -> (i32, i32) {
    %c0_i32 = arith.constant 0 : i32
    %c0_i32_0 = arith.constant 0 : i32
    %c0_i32_1 = arith.constant 0 : i32
    return %c0_i32, %c0_i32_0 : i32, i32
  }
  func.func @transform_17(%arg0: i32) -> (i32, i32) {
    %c0_i32 = arith.constant 0 : i32
    %c0_i32_0 = arith.constant 0 : i32
    %c0_i32_1 = arith.constant 0 : i32
    return %c0_i32, %c0_i32_0 : i32, i32
  }
  func.func @transform_18(%arg0: i32) -> (i32, i32) {
    %c0_i32 = arith.constant 0 : i32
    %c0_i32_0 = arith.constant 0 : i32
    return %arg0, %c0_i32 : i32, i32
  }
}

</mosaic_0001>

<bundles_post_ra>
// kernel: tpu_custom_call.1
= control target key start
LH: loop header
LB: loop body
LE: loop exit
PB: predicated region body
PF: predicated region fallthrough
CT: control target
= control target key end

     0   :  { %s6970_s0 = inlined_call_operand.vmem [shape: f32[16,16], index: 0, kind: input, shape index: {}]   ;;  %s6971_s1 = inlined_call_operand.vmem [shape: f32[8,32], index: 1, kind: input, shape index: {}]   ;;  %s6972_s2 = inlined_call_operand.vmem [shape: bf16[16,32], index: 2, kind: input, shape index: {}]   ;;  %s6973_s3 = inlined_call_operand.vmem [shape: f32[1,32], index: 3, kind: input, shape index: {}]   ;;  %s6974_s4 = inlined_call_operand.vmem [shape: bf16[2,32,96], index: 4, kind: input, shape index: {}]   ;;  %s6975_s5 = inlined_call_operand.vmem [shape: f32[2,1,96], index: 5, kind: input, shape index: {}]   ;;  %s6976_s6 = inlined_call_operand.vmem [shape: bf16[2,32,32], index: 6, kind: input, shape index: {}]   ;;  %s6977_s7 = inlined_call_operand.vmem [shape: f32[2,1,32], index: 7, kind: input, shape index: {}]   ;;  %s6978_s8 = inlined_call_operand.vmem [shape: f32[2,1,32], index: 8, kind: input, shape index: {}]   ;;  %s6979_s9 = inlined_call_operand.vmem [shape: f32[2,1,32], index: 9, kind: input, shape index: {}]   ;;  %s6980_s10 = inlined_call_operand.vmem [shape: bf16[2,32,128], index: 10, kind: input, shape index: {}]   ;;  %s6981_s11 = inlined_call_operand.vmem [shape: f32[2,1,128], index: 11, kind: input, shape index: {}]   ;;  %s6982_s12 = inlined_call_operand.vmem [shape: bf16[2,128,32], index: 12, kind: input, shape index: {}]   ;;  %s6983_s13 = inlined_call_operand.vmem [shape: f32[2,1,32], index: 13, kind: input, shape index: {}]   ;;  %s6984_s14 = inlined_call_operand.vmem [shape: f32[2,1,32], index: 14, kind: input, shape index: {}]   ;;  %s6985_s15 = inlined_call_operand.vmem [shape: f32[2,1,32], index: 15, kind: input, shape index: {}]   ;;  %s6986_s16 = inlined_call_operand.vmem [shape: bf16[32,128], index: 16, kind: input, shape index: {}]   ;;  %s6987_s17 = inlined_call_operand.vmem [shape: f32[1,128], index: 17, kind: input, shape index: {}]   ;;  %s6988_s18 = inlined_call_operand.hbm [shape: f32[2,128], index: 18, kind: output, shape index: {}]  }
   0x1   :  { %6990 = sst [smem:[#allocation5_spill]] %s6970_s0 }
   0x2   :  { %6991 = sst [smem:[#allocation6_spill]] %s6971_s1 }
   0x3   :  { %6992 = sst [smem:[#allocation7_spill]] %s6972_s2 }
   0x4   :  { %s6993_s29 = sld [smem:[#allocation7_spill]]  ;;  %v5871_v1 = vmov 0.0   ;;  %s6994_s19 = sld [smem:[#allocation5_spill]]  ;;  %vm79_vm0 = vcmask 130048   ;;  %vm5872_vm1 = vmmov 0  }
   0x5   :  { %5412 = vmatprep.subr.bf16.mxu0 %v5871_v1  ;;  %5432 = vmatprep.subr.bf16.mxu1 %v5871_v1 }
   0x6   :  { %5414 = vmatprep.mubr.msk.bf16.mxu0 %vm5872_vm1, %v5871_v1  ;;  %5434 = vmatprep.mubr.msk.bf16.mxu1 %vm5872_vm1, %v5871_v1 }
   0xa   :  { %v5720_v0 = vld [vmem:[%s6993_s29] sm:$0xff]   ;;  %v62_v3 = vld [vmem:[%s6994_s19 + $0x8] sm:$0xff] }
   0xb   :  { %v61_v2 = vld [vmem:[%s6994_s19] sm:$0xff]  ;;  %5413 = vmatpush3.bf16.msra.mxu0 %v5720_v0 }
   0xc   :  { %v63_v4 = vpack.c.bf16 %v62_v3, %v61_v2  ;;  %5418 = vmatprep.subr.bf16.mxu0 %v5871_v1 }
   0xe   :  { %5415 = vmatmul.mubr.msk.bf16.vlgmr.msra.gmra.mrb[0].mxu0 %vm79_vm0, %v63_v4 }
   0xf   :  { %5422 = vmatprep.mubr.msk.bf16.mxu0 %vm5872_vm1, %v5871_v1 }
  0x10   :  { %23 = vsyncpa [#allocation3], 0  ;;  %v5721_v5 = vld [vmem:[%s6974_s4] sm:$0xff]   ;;  %v5722_v6 = vld [vmem:[%s6974_s4 + $0x8] sm:$0xff]   ;;  %s6995_s28 = sld [smem:[#allocation6_spill]]  ;;  %vm151_vm2 = vcmask 261120   ;;  %v230_v31 = vlaneseq }
  0x11   :  { %5419 = vmatpush3.bf16.msra.mxu0 %v5721_v5  ;;  %v5158_v7 = vld [vmem:[%s6973_s3] ss:$0 sm:$0xff]  ;;  %s5873_s30 = smov 104   ;;  %s5874_s0 = smov 120   ;;  %v5877_v29 = vmov 1983009808  }
  0x12   :  { %5420 = vmatprep.subr.bf16.mxu0 %v5871_v1  ;;  %v5161_v18 = vld [vmem:[%s6975_s5] ss:$0 sm:$0xff]  ;;  %s5875_s19 = smov 96   ;;  %s5876_s1 = smov 112   ;;  %v228_v30 = vunpack.c.l.s4 %v5877_v29  ;;  %v231_v34 = vshrl.u32 %v230_v31, 7  ;;  %v5879_v53 = vmov 0  }
  0x13   :  { %v5878_v37 = vmov 1934713408   ;;  %v6072_v54 = vpack.i.b16 %v5879_v53, %v5879_v53  ;;  %vm1042_vm3 = vcmask 64512   ;;  %s5880_s20 = smov 64   ;;  %vm1510_vm4 = vcmask 1043456   ;;  %s5881_s24 = smov 16  }
  0x14   :  { %v229_v33 = vunpack.c.0.s8 %v228_v30  ;;  %v259_v38 = vunpack.c.l.s4 %v5878_v37  ;;  %s5882_s25 = smov 8   ;;  %s5883_s26 = smov 24   ;;  %vm2199_vm5 = vcmask 195584   ;;  %vm5085_vm10 = vcmask 1041409  }
  0x15   :  { %5421 = vmatpush3.bf16.msra.mxu0 %v5722_v6 }
  0x16   :  { %5426 = vmatprep.subr.bf16.mxu0 %v5871_v1  ;;  %v124_v11 = vld [vmem:[%s6995_s28] sm:$0xff]  ;;  %v6055_v42 = vsub.s32 %v229_v33, %v231_v34  ;;  %v260_v45 = vunpack.c.0.s8 %v259_v38 }
  0x18   :  { %v6074_v56 = vsub.s32 %v260_v45, %v231_v34 }
  0xe1   :  { %v117_v8 = vpop.f32.mrb[0].mxu0 }
  0xe2   :  { %v118_v9 = vadd.f32 %v5158_v7, %v117_v8  ;;  %v5416_v10 = vpop.f32.mrb[1].mxu0 }
  0xe3   :  { %v120_v12 = vpop.f32.mrb[2].mxu0 }
  0xe4   :  { %v121_v13 = vadd.f32 %v5158_v7, %v120_v12  ;;  %v5417_v14 = vpop.f32.mrb[3].mxu0  ;;  %v6013_v15 = vadd.f32 %v124_v11, %v118_v9 }
  0xe6   :  { %v6015_v16 = vadd.f32 %v124_v11, %v121_v13 }
  0xe8   :  { %v127_v17 = vpack.c.bf16 %v6015_v16, %v6013_v15 }
  0xea   :  { %5423 = vmatmul.mubr.msk.bf16.vlgmr.msra.gmra.mrb[4].mxu0 %vm151_vm2, %v127_v17 }
  0xeb   :  { %5428 = vmatprep.mubr.msk.bf16.mxu0 %vm5872_vm1, %v5871_v1 }
 0x1bd   :  { %v189_v19 = vpop.f32.mrb[4].mxu0 }
 0x1be   :  { %v5424_v20 = vpop.f32.mrb[5].mxu0  ;;  %v190_v22 = vadd.f32 %v5161_v18, %v189_v19 }
 0x1bf   :  { %v192_v21 = vpop.f32.mrb[6].mxu0 }
 0x1c0   :  { %v193_v23 = vadd.f32 %v5161_v18, %v192_v21  ;;  %v5425_v24 = vpop.f32.mrb[7].mxu0 }
 0x1c2   :  { %v6025_v25 = vpack.c.bf16 %v193_v23, %v190_v22 }
 0x1c4   :  { %202 = vrot.lane.b32.xlu1 %v6025_v25, %s5873_s30  ;;  %198 = vrot.lane.b32.xlu0 %v6025_v25, %s5874_s0  ;;  %v208_v40 = vshrl.u32 %v6025_v25, 16 }
 0x1c8   :  { %482 = vrot.lane.b32.xlu1 %v6025_v25, %s5875_s19  ;;  %200 = vrot.lane.b32.xlu0 %v6025_v25, %s5876_s1 }
 0x236   :  { %v6035_v26 = vpop.permute.xlu0 %198  ;;  %v6039_v27 = vpop.permute.xlu1 %202 }
 0x237   :  { %484 = vrot.lane.b32.xlu0 %v6035_v26, %s5875_s19  ;;  %v217_v35 = vshrl.u32 %v6039_v27, 16  ;;  %v209_v36 = vshrl.u32 %v6035_v26, 16  ;;  %v6059_v43 = vpack.i.b16 %v6035_v26, %v6025_v25 }
 0x239   :  { %v6061_v44 = vpack.i.b16 %v209_v36, %v208_v40  ;;  %v233_v49 = vrot.slane %v6059_v43, %v6055_v42  ;;  %v226_v4 = vcombine.high %v6059_v43, %v6072_v54 }
 0x23a   :  { %v6041_v28 = vpop.permute.xlu0 %200  ;;  %v483_v47 = vpop.permute.xlu1 %482 }
 0x23b   :  { %488 = vrot.lane.b32.xlu0 %v6039_v27, %s5875_s19  ;;  %486 = vrot.lane.b32.xlu1 %v6041_v28, %s5875_s19  ;;  %v216_v32 = vshrl.u32 %v6041_v28, 16  ;;  %v6052_v39 = vpack.i.b16 %v6039_v27, %v6041_v28  ;;  %v299_v51 = vrot.slane %v6061_v44, %v6055_v42  ;;  %v494_v55 = vshrl.u32 %v483_v47, 16 }
 0x23c   :  { %v292_v18 = vcombine.high %v6061_v44, %v6072_v54 }
 0x23d   :  { %v218_v41 = vpack.i.b16 %v217_v35, %v216_v32  ;;  %v248_v46 = vrot.slane %v6052_v39, %v6055_v42  ;;  %v241_v19 = vcombine.high %v6052_v39, %v6072_v54 }
 0x23f   :  { %v314_v48 = vrot.slane %v218_v41, %v6055_v42  ;;  %v256_v57 = vcombine.low %v233_v49, %v248_v46  ;;  %v257_v58 = vcombine.high %v233_v49, %v248_v46  ;;  %v307_v0 = vcombine.high %v218_v41, %v6072_v54 }
 0x241   :  { %v322_v59 = vcombine.low %v299_v51, %v314_v48  ;;  %v323_v60 = vcombine.high %v299_v51, %v314_v48  ;;  %v264_v5 = vrot.slane %v256_v57, %v6074_v56  ;;  %v271_v8 = vrot.slane %v257_v58, %v6074_v56 }
 0x242   :  { %v6092_v20 = vrot.slane %v307_v0, %v6055_v42 }
 0x243   :  { %v330_v9 = vrot.slane %v322_v59, %v6074_v56  ;;  %v337_v10 = vrot.slane %v323_v60, %v6074_v56  ;;  %v358_v30 = vcombine.low %v264_v5, %v271_v8  ;;  %v5165_v51 = vcombine.high %v264_v5, %v271_v8 }
 0x244   :  { %v255_v5 = vrot.slane %v241_v19, %v6055_v42 }
 0x245   :  { %v383_v31 = vcombine.low %v330_v9, %v337_v10  ;;  %v5166_v34 = vcombine.high %v330_v9, %v337_v10  ;;  %v365_v8 = vrot.slane %v358_v30, %v6055_v42  ;;  %v373_v9 = vrot.slane %v5165_v51, %v6055_v42 }
 0x247   :  { %v374_v30 = vcombine.low %v365_v8, %v373_v9 }
 0x2a9   :  { %v485_v50 = vpop.permute.xlu0 %484 }
 0x2aa   :  { %v495_v52 = vshrl.u32 %v485_v50, 16  ;;  %v492_v61 = vpack.i.b16 %v485_v50, %v483_v47 }
 0x2ac   :  { %v496_v2 = vpack.i.b16 %v495_v52, %v494_v55  ;;  %v506_v11 = vcombine.high %v492_v61, %v6072_v54  ;;  %v513_v12 = vrot.slane %v492_v61, %v6055_v42  ;;  %v390_v52 = vrot.slane %v383_v31, %v6055_v42 }
 0x2ad   :  { %v487_v62 = vpop.permute.xlu1 %486  ;;  %v489_v63 = vpop.permute.xlu0 %488 }
 0x2ae   :  { %v502_v3 = vshrl.u32 %v487_v62, 16  ;;  %v500_v6 = vpack.i.b16 %v489_v63, %v487_v62  ;;  %v503_v7 = vshrl.u32 %v489_v63, 16  ;;  %v572_v21 = vcombine.high %v496_v2, %v6072_v54 }
 0x2af   :  { %v579_v32 = vrot.slane %v496_v2, %v6055_v42  ;;  %v520_v35 = vrot.slane %v506_v11, %v6055_v42  ;;  %v398_v62 = vrot.slane %v5166_v34, %v6055_v42 }
 0x2b0   :  { %v504_v13 = vpack.i.b16 %v503_v7, %v502_v3  ;;  %v521_v14 = vcombine.high %v500_v6, %v6072_v54  ;;  %v528_v17 = vrot.slane %v500_v6, %v6055_v42  ;;  %v586_v38 = vrot.slane %v572_v21, %v6055_v42 }
 0x2b1   :  { %v306_v3 = vrot.slane %v292_v18, %v6055_v42  ;;  %v399_v21 = vcombine.low %v390_v52, %v398_v62 }
 0x2b2   :  { %v535_v22 = vrot.slane %v521_v14, %v6055_v42  ;;  %v536_v23 = vcombine.low %v513_v12, %v528_v17  ;;  %v537_v24 = vcombine.high %v513_v12, %v528_v17  ;;  %v587_v29 = vcombine.high %v504_v13, %v6072_v54 }
 0x2b3   :  { %v594_v33 = vrot.slane %v504_v13, %v6055_v42  ;;  %v240_v12 = vrot.slane %v226_v4, %v6055_v42  ;;  %v338_v17 = vcombine.low %v306_v3, %v6092_v20  ;;  %v339_v18 = vcombine.high %v306_v3, %v6092_v20 }
 0x2b4   :  { %v544_v36 = vrot.slane %v536_v23, %v6074_v56  ;;  %v551_v37 = vrot.slane %v537_v24, %v6074_v56  ;;  %v601_v39 = vrot.slane %v587_v29, %v6055_v42  ;;  %v552_v43 = vcombine.low %v520_v35, %v535_v22 }
 0x2b5   :  { %v602_v40 = vcombine.low %v579_v32, %v594_v33  ;;  %v603_v41 = vcombine.high %v579_v32, %v594_v33  ;;  %v553_v44 = vcombine.high %v520_v35, %v535_v22  ;;  %v272_v22 = vcombine.low %v240_v12, %v255_v5 }
 0x2b6   :  { %v638_v45 = vcombine.low %v544_v36, %v551_v37  ;;  %v5169_v46 = vcombine.high %v544_v36, %v551_v37  ;;  %v618_v49 = vcombine.low %v586_v38, %v601_v39  ;;  %v619_v50 = vcombine.high %v586_v38, %v601_v39 }
 0x2b7   :  { %v610_v47 = vrot.slane %v602_v40, %v6074_v56  ;;  %v617_v48 = vrot.slane %v603_v41, %v6074_v56  ;;  %v560_v63 = vrot.slane %v552_v43, %v6074_v56  ;;  %v567_v0 = vrot.slane %v553_v44, %v6074_v56 }
 0x2b8   :  { %v645_v55 = vrot.slane %v638_v45, %v6055_v42  ;;  %v653_v57 = vrot.slane %v5169_v46, %v6055_v42  ;;  %v626_v58 = vrot.slane %v618_v49, %v6074_v56  ;;  %v633_v59 = vrot.slane %v619_v50, %v6074_v56 }
 0x2b9   :  { %v663_v60 = vcombine.low %v610_v47, %v617_v48  ;;  %v5170_v61 = vcombine.high %v610_v47, %v617_v48  ;;  %v688_v19 = vcombine.low %v560_v63, %v567_v0  ;;  %v273_v23 = vcombine.high %v240_v12, %v255_v5 }
 0x2ba   :  { %v654_v2 = vcombine.low %v645_v55, %v653_v57  ;;  %v713_v10 = vcombine.low %v626_v58, %v633_v59  ;;  %v5172_v11 = vcombine.high %v626_v58, %v633_v59  ;;  %v5171_v24 = vcombine.high %v560_v63, %v567_v0 }
 0x2bb   :  { %v670_v6 = vrot.slane %v663_v60, %v6055_v42  ;;  %v678_v7 = vrot.slane %v5170_v61, %v6055_v42  ;;  %v346_v20 = vrot.slane %v338_v17, %v6074_v56  ;;  %v353_v36 = vrot.slane %v339_v18, %v6074_v56 }
 0x2bc   :  { %v661_v13 = vrot.slane %v654_v2, %v6074_v56  ;;  %v720_v31 = vrot.slane %v713_v10, %v6055_v42  ;;  %v728_v4 = vrot.slane %v5172_v11, %v6055_v42  ;;  %v695_v37 = vrot.slane %v688_v19, %v6055_v42 }
 0x2bd   :  { %v679_v14 = vcombine.low %v670_v6, %v678_v7  ;;  %v406_v38 = vrot.slane %v399_v21, %v6074_v56  ;;  %v703_v39 = vrot.slane %v5171_v24, %v6055_v42  ;;  %v280_v44 = vrot.slane %v272_v22, %v6074_v56 }
 0x2be   :  { %v741_v33 = vshrl.u32 %v661_v13, 16  ;;  %v662_v43 = vcombine.high %v661_v13, %v5879_v53  ;;  %v287_v45 = vrot.slane %v273_v23, %v6074_v56  ;;  %v381_v47 = vrot.slane %v374_v30, %v6074_v56 }
 0x2bf   :  { %v686_v29 = vrot.slane %v679_v14, %v6074_v56  ;;  %v729_v49 = vcombine.low %v720_v31, %v728_v4  ;;  %v433_v50 = vcombine.low %v346_v20, %v353_v36  ;;  %v5168_v51 = vcombine.high %v346_v20, %v353_v36 }
 0x2c0   :  { %v462_v55 = vshrl.u32 %v406_v38, 16  ;;  %v747_v57 = vshrl.u32 %v662_v43, 16  ;;  %v704_v58 = vcombine.low %v695_v37, %v703_v39  ;;  %v408_v59 = vcombine.low %v280_v44, %v287_v45 }
 0x2c1   :  { %v740_v32 = vpack.i.b16 %v686_v29, %v661_v13  ;;  %v742_v34 = vshrl.u32 %v686_v29, 16  ;;  %v687_v35 = vcombine.high %v686_v29, %v5879_v53  ;;  %v5167_v60 = vcombine.high %v280_v44, %v287_v45 }
 0x2c2   :  { %v460_v61 = vpack.i.b16 %v406_v38, %v381_v47  ;;  %v461_v62 = vshrl.u32 %v381_v47, 16  ;;  %v736_v0 = vrot.slane %v729_v49, %v6074_v56  ;;  %v440_v2 = vrot.slane %v433_v50, %v6055_v42 }
 0x2c3   :  { %v1047_v40 = vsel %vm1042_vm3, %v740_v32, 0  ;;  %v743_v41 = vpack.i.b16 %v742_v34, %v741_v33  ;;  %v748_v48 = vshrl.u32 %v687_v35, 16  ;;  %v746_v52 = vpack.i.b16 %v687_v35, %v662_v43 }
 0x2c4   :  { %5427 = vmatpush3.bf16.xpose.msra.mxu0 %v1047_v40  ;;  %v448_v3 = vrot.slane %v5168_v51, %v6055_v42  ;;  %v463_v6 = vpack.i.b16 %v462_v55, %v461_v62  ;;  %v407_v7 = vcombine.high %v406_v38, %v5879_v53  ;;  %v711_v8 = vrot.slane %v704_v58, %v6074_v56 }
 0x2c5   :  { %v1093_v46 = vsel %vm1042_vm3, %v743_v41, 0  ;;  %5438 = vmatprep.subr.bf16.mxu0 %v5871_v1  ;;  %v749_v63 = vpack.i.b16 %v748_v48, %v747_v57  ;;  %v1139_v5 = vsel %vm1042_vm3, %v746_v52, 0  ;;  %v415_v9 = vrot.slane %v408_v59, %v6055_v42 }
 0x2c6   :  { %5433 = vmatpush3.bf16.xpose.msra.mxu1 %v1093_v46  ;;  %v423_v10 = vrot.slane %v5167_v60, %v6055_v42  ;;  %v382_v12 = vcombine.high %v381_v47, %v5879_v53  ;;  %v754_v13 = vshrl.u32 %v736_v0, 16  ;;  %v752_v14 = vpack.i.b16 %v736_v0, %v711_v8 }
 0x2c7   :  { %5444 = vmatprep.subr.bf16.mxu1 %v5871_v1  ;;  %v1185_v11 = vsel %vm1042_vm3, %v749_v63, 0  ;;  %v468_v17 = vshrl.u32 %v407_v7, 16  ;;  %v753_v18 = vshrl.u32 %v711_v8, 16  ;;  %v449_v19 = vcombine.low %v440_v2, %v448_v3 }
 0x2c8   :  { %v424_v21 = vcombine.low %v415_v9, %v423_v10  ;;  %v466_v22 = vpack.i.b16 %v407_v7, %v382_v12  ;;  %v467_v23 = vshrl.u32 %v382_v12, 16  ;;  %v737_v29 = vcombine.high %v736_v0, %v5879_v53 }
 0x2c9   :  { %v755_v24 = vpack.i.b16 %v754_v13, %v753_v18  ;;  %v1231_v30 = vsel %vm1042_vm3, %v752_v14, 0  ;;  %v456_v4 = vrot.slane %v449_v19, %v6074_v56  ;;  %v712_v32 = vcombine.high %v711_v8, %v5879_v53 }
 0x2ca   :  { %v469_v31 = vpack.i.b16 %v468_v17, %v467_v23  ;;  %v431_v34 = vrot.slane %v424_v21, %v6074_v56  ;;  %v760_v35 = vshrl.u32 %v737_v29, 16 }
 0x2cb   :  { %5429 = vmatmul.mubr.msk.bf16.vlgmr.msra.gmra.mrb[8].mxu0 %vm1042_vm3, %v460_v61  ;;  %v1277_v33 = vsel %vm1042_vm3, %v755_v24, 0  ;;  %v758_v20 = vpack.i.b16 %v737_v29, %v712_v32  ;;  %v474_v36 = vshrl.u32 %v456_v4, 16  ;;  %v759_v37 = vshrl.u32 %v712_v32, 16 }
 0x2cc   :  { %5439 = vmatpush3.bf16.xpose.msra.mxu0 %v1139_v5  ;;  %5440 = vmatprep.mubr.msk.bf16.mxu0 %vm5872_vm1, %v5871_v1  ;;  %v472_v38 = vpack.i.b16 %v456_v4, %v431_v34  ;;  %v473_v39 = vshrl.u32 %v431_v34, 16  ;;  %v457_v44 = vcombine.high %v456_v4, %v5879_v53  ;;  %v432_v46 = vcombine.high %v431_v34, %v5879_v53 }
 0x2cd   :  { %5435 = vmatmul.mubr.msk.bf16.vlgmr.msra.gmra.mrb[0].mxu1 %vm1042_vm3, %v463_v6  ;;  %5450 = vmatprep.subr.bf16.mxu0 %v5871_v1  ;;  %v761_v40 = vpack.i.b16 %v760_v35, %v759_v37  ;;  %v1323_v41 = vsel %vm1042_vm3, %v758_v20, 0 }
 0x2ce   :  { %5445 = vmatpush3.bf16.xpose.msra.mxu1 %v1185_v11  ;;  %5446 = vmatprep.mubr.msk.bf16.mxu1 %vm5872_vm1, %v5871_v1  ;;  %v475_v43 = vpack.i.b16 %v474_v36, %v473_v39  ;;  %v480_v47 = vshrl.u32 %v457_v44, 16  ;;  %v478_v48 = vpack.i.b16 %v457_v44, %v432_v46  ;;  %v479_v49 = vshrl.u32 %v432_v46, 16 }
 0x2cf   :  { %5456 = vmatprep.subr.bf16.mxu1 %v5871_v1  ;;  %v1369_v45 = vsel %vm1042_vm3, %v761_v40, 0 }
 0x2d0   :  { %v481_v50 = vpack.i.b16 %v480_v47, %v479_v49 }
 0x2d3   :  { %5441 = vmatmul.mubr.msk.bf16.vlgmr.msra.gmra.mrb[12].mxu0 %vm1042_vm3, %v466_v22 }
 0x2d4   :  { %5451 = vmatpush3.bf16.xpose.msra.mxu0 %v1231_v30  ;;  %5452 = vmatprep.mubr.msk.bf16.mxu0 %vm5872_vm1, %v5871_v1 }
 0x2d5   :  { %5447 = vmatmul.mubr.msk.bf16.vlgmr.msra.gmra.mrb[4].mxu1 %vm1042_vm3, %v469_v31  ;;  %5462 = vmatprep.subr.bf16.mxu0 %v5871_v1 }
 0x2d6   :  { %5457 = vmatpush3.bf16.xpose.msra.mxu1 %v1277_v33  ;;  %5458 = vmatprep.mubr.msk.bf16.mxu1 %vm5872_vm1, %v5871_v1 }
 0x2d7   :  { %5468 = vmatprep.subr.bf16.mxu1 %v5871_v1 }
 0x2db   :  { %5453 = vmatmul.mubr.msk.bf16.vlgmr.msra.gmra.mrb[16].mxu0 %vm1042_vm3, %v472_v38 }
 0x2dc   :  { %5463 = vmatpush3.bf16.xpose.msra.mxu0 %v1323_v41  ;;  %5464 = vmatprep.mubr.msk.bf16.mxu0 %vm5872_vm1, %v5871_v1 }
 0x2dd   :  { %5459 = vmatmul.mubr.msk.bf16.vlgmr.msra.gmra.mrb[8].mxu1 %vm1042_vm3, %v475_v43  ;;  %5474 = vmatprep.subr.bf16.mxu0 %v5871_v1 }
 0x2de   :  { %5469 = vmatpush3.bf16.xpose.msra.mxu1 %v1369_v45  ;;  %5470 = vmatprep.mubr.msk.bf16.mxu1 %vm5872_vm1, %v5871_v1 }
 0x2df   :  { %5480 = vmatprep.subr.bf16.mxu1 %v5871_v1 }
 0x2e3   :  { %5465 = vmatmul.mubr.msk.bf16.vlgmr.msra.gmra.mrb[20].mxu0 %vm1042_vm3, %v478_v48 }
 0x2e4   :  { %5476 = vmatprep.mubr.msk.bf16.mxu0 %vm5872_vm1, %v5871_v1 }
 0x2e5   :  { %5471 = vmatmul.mubr.msk.bf16.vlgmr.msra.gmra.mrb[12].mxu1 %vm1042_vm3, %v481_v50 }
 0x2e6   :  { %5482 = vmatprep.mubr.msk.bf16.mxu1 %vm5872_vm1, %v5871_v1 }
 0x39e   :  { %v1083_v51 = vpop.f32.mrb[8].mxu0 }
 0x39f   :  { %v5430_v52 = vpop.f32.mrb[9].mxu0  ;;  %v1411_v55 = vsel %vm1042_vm3, %v1083_v51, -inf }
 0x3a0   :  { %v1129_v57 = vpop.f32.mrb[0].mxu1  ;;  %1412 = vmax.xlane.f32.xlu1 %v1411_v55  ;;  %v1086_v58 = vpop.f32.mrb[10].mxu0 }
 0x3a1   :  { %v5431_v59 = vpop.f32.mrb[11].mxu0  ;;  %v5436_v60 = vpop.f32.mrb[1].mxu1  ;;  %v1414_v61 = vsel %vm1042_vm3, %v1129_v57, -inf }
 0x3a2   :  { %1415 = vmax.xlane.f32.xlu0 %v1414_v61  ;;  %v1132_v62 = vpop.f32.mrb[2].mxu1 }
 0x3a3   :  { %v5437_v63 = vpop.f32.mrb[3].mxu1 }
 0x3a6   :  { %v6193_v0 = vpop.f32.mrb[12].mxu0 }
 0x3a7   :  { %v5442_v2 = vpop.f32.mrb[13].mxu0  ;;  %v1417_v3 = vsel %vm1042_vm3, %v6193_v0, -inf }
 0x3a8   :  { %v1221_v5 = vpop.f32.mrb[4].mxu1  ;;  %1418 = vmax.xlane.f32.xlu0 %v1417_v3  ;;  %v1178_v6 = vpop.f32.mrb[14].mxu0 }
 0x3a9   :  { %v5443_v7 = vpop.f32.mrb[15].mxu0  ;;  %v5448_v8 = vpop.f32.mrb[5].mxu1  ;;  %v1420_v9 = vsel %vm1042_vm3, %v1221_v5, -inf }
 0x3aa   :  { %v1224_v10 = vpop.f32.mrb[6].mxu1  ;;  %1421 = vmax.xlane.f32.xlu1 %v1420_v9 }
 0x3ab   :  { %v5449_v11 = vpop.f32.mrb[7].mxu1 }
 0x3ae   :  { %v1267_v12 = vpop.f32.mrb[16].mxu0 }
 0x3af   :  { %v5454_v13 = vpop.f32.mrb[17].mxu0  ;;  %v1423_v14 = vsel %vm1042_vm3, %v1267_v12, -inf }
 0x3b0   :  { %v1313_v17 = vpop.f32.mrb[8].mxu1  ;;  %1424 = vmax.xlane.f32.xlu0 %v1423_v14  ;;  %v1270_v18 = vpop.f32.mrb[18].mxu0 }
 0x3b1   :  { %v5455_v19 = vpop.f32.mrb[19].mxu0  ;;  %v5460_v21 = vpop.f32.mrb[9].mxu1  ;;  %v1426_v22 = vsel %vm1042_vm3, %v1313_v17, -inf }
 0x3b2   :  { %v1316_v23 = vpop.f32.mrb[10].mxu1  ;;  %1427 = vmax.xlane.f32.xlu1 %v1426_v22 }
 0x3b3   :  { %v5461_v24 = vpop.f32.mrb[11].mxu1 }
 0x3b6   :  { %v1359_v29 = vpop.f32.mrb[20].mxu0 }
 0x3b7   :  { %v5466_v30 = vpop.f32.mrb[21].mxu0  ;;  %v1429_v31 = vsel %vm1042_vm3, %v1359_v29, -inf }
 0x3b8   :  { %v1405_v4 = vpop.f32.mrb[12].mxu1  ;;  %1430 = vmax.xlane.f32.xlu0 %v1429_v31  ;;  %v1362_v32 = vpop.f32.mrb[22].mxu0 }
 0x3b9   :  { %v5467_v33 = vpop.f32.mrb[23].mxu0  ;;  %v5472_v34 = vpop.f32.mrb[13].mxu1  ;;  %v1432_v35 = vsel %vm1042_vm3, %v1405_v4, -inf }
 0x3ba   :  { %v1408_v20 = vpop.f32.mrb[14].mxu1  ;;  %1433 = vmax.xlane.f32.xlu1 %v1432_v35 }
 0x3bb   :  { %v5473_v36 = vpop.f32.mrb[15].mxu1 }
 0x3cb   :  { %764 = vrot.lane.b32.xlu1 %v6035_v26, %s5880_s20 }
 0x3ce   :  { %762 = vrot.lane.b32.xlu0 %v6025_v25, %s5880_s20 }
 0x42d   :  { %v1413_v37 = vpop.xlane.xlu1 %1412 }
 0x42e   :  { %v1435_v38 = vsub.f32 %v1083_v51, %v1413_v37 }
 0x42f   :  { %v1416_v39 = vpop.xlane.xlu0 %1415 }
 0x430   :  { %v1443_v40 = vmul.f32 1.442695, %v1435_v38  ;;  %v1436_v41 = vsub.f32 %v1129_v57, %v1416_v39 }
 0x432   :  { %5751 = vpow2.f32 %v1443_v40  ;;  %v1445_v43 = vmul.f32 1.442695, %v1436_v41 }
 0x434   :  { %5753 = vpow2.f32 %v1445_v43 }
 0x435   :  { %v1419_v25 = vpop.xlane.xlu0 %1418 }
 0x436   :  { %v1437_v50 = vsub.f32 %v6193_v0, %v1419_v25 }
 0x437   :  { %v1422_v47 = vpop.xlane.xlu1 %1421 }
 0x438   :  { %v1438_v48 = vsub.f32 %v1221_v5, %v1422_v47  ;;  %v1447_v58 = vmul.f32 1.442695, %v1437_v50 }
 0x43a   :  { %v1449_v52 = vmul.f32 1.442695, %v1438_v48 }
 0x43c   :  { %v6206_v44 = vpop.eup %5751  ;;  %5755 = vpow2.f32 %v1449_v52 }
 0x43d   :  { %v1459_v45 = vsel %vm1042_vm3, %v6206_v44, 0.0  ;;  %v1425_v49 = vpop.xlane.xlu0 %1424  ;;  %5757 = vpow2.f32 %v1447_v58 }
 0x43e   :  { %v6210_v46 = vpop.eup %5753  ;;  %1460 = vadd.xlane.f32.xlu0 %v1459_v45  ;;  %v1439_v55 = vsub.f32 %v1267_v12, %v1425_v49 }
 0x43f   :  { %v1462_v26 = vsel %vm1042_vm3, %v6210_v46, 0.0  ;;  %v1428_v51 = vpop.xlane.xlu1 %1427 }
 0x440   :  { %1463 = vadd.xlane.f32.xlu1 %v1462_v26  ;;  %v1440_v59 = vsub.f32 %v1313_v17, %v1428_v51  ;;  %v1451_v61 = vmul.f32 1.442695, %v1439_v55 }
 0x442   :  { %5759 = vpow2.f32 %v1451_v61 }
 0x445   :  { %v1431_v57 = vpop.xlane.xlu0 %1430 }
 0x446   :  { %v1441_v62 = vsub.f32 %v1359_v29, %v1431_v57  ;;  %v6219_v3 = vpop.eup %5755 }
 0x447   :  { %v1434_v60 = vpop.xlane.xlu1 %1433  ;;  %v6221_v0 = vpop.eup %5757  ;;  %v1468_v5 = vsel %vm1042_vm3, %v6219_v3, 0.0 }
 0x448   :  { %v1442_v63 = vsub.f32 %v1405_v4, %v1434_v60  ;;  %v1465_v7 = vsel %vm1042_vm3, %v6221_v0, 0.0 }
 0x449   :  { %v763_v17 = vpop.permute.xlu0 %762 }
 0x44a   :  { %v1457_v2 = vmul.f32 1.442695, %v1442_v63  ;;  %v774_v29 = vshrl.u32 %v763_v17, 16 }
 0x44b   :  { %v765_v18 = vpop.permute.xlu1 %764 }
 0x44c   :  { %v6225_v6 = vpop.eup %5759  ;;  %v775_v22 = vshrl.u32 %v765_v18, 16  ;;  %v6243_v24 = vpack.i.b16 %v765_v18, %v763_v17 }
 0x44d   :  { %v1471_v9 = vsel %vm1042_vm3, %v6225_v6, 0.0 }
 0x44e   :  { %v6247_v33 = vpack.i.b16 %v775_v22, %v774_v29  ;;  %v793_v34 = vrot.slane %v6243_v24, %v6055_v42 }
 0x450   :  { %v859_v38 = vrot.slane %v6247_v33, %v6055_v42  ;;  %v852_v29 = vcombine.high %v6247_v33, %v6072_v54 }
 0x451   :  { %766 = vrot.lane.b32.xlu1 %v6041_v28, %s5880_s20  ;;  %v1453_v28 = vmul.f32 1.442695, %v1440_v59 }
 0x452   :  { %v866_v33 = vrot.slane %v852_v29, %v6055_v42 }
 0x453   :  { %5761 = vpow2.f32 %v1453_v28 }
 0x454   :  { %768 = vrot.lane.b32.xlu0 %v6039_v27, %s5880_s20  ;;  %v1455_v27 = vmul.f32 1.442695, %v1441_v62 }
 0x456   :  { %5763 = vpow2.f32 %v1455_v27 }
 0x457   :  { %5765 = vpow2.f32 %v1457_v2 }
 0x45d   :  { %v6229_v8 = vpop.eup %5761 }
 0x45e   :  { %v1474_v11 = vsel %vm1042_vm3, %v6229_v8, 0.0 }
 0x460   :  { %v6233_v10 = vpop.eup %5763 }
 0x461   :  { %v6237_v12 = vpop.eup %5765  ;;  %v1477_v13 = vsel %vm1042_vm3, %v6233_v10, 0.0 }
 0x462   :  { %v1480_v14 = vsel %vm1042_vm3, %v6237_v12, 0.0 }
 0x473   :  { %1469 = vadd.xlane.f32.xlu0 %v1468_v5 }
 0x475   :  { %1466 = vadd.xlane.f32.xlu1 %v1465_v7 }
 0x477   :  { %1472 = vadd.xlane.f32.xlu0 %v1471_v9 }
 0x479   :  { %1475 = vadd.xlane.f32.xlu1 %v1474_v11 }
 0x47b   :  { %1478 = vadd.xlane.f32.xlu0 %v1477_v13 }
 0x47d   :  { %1481 = vadd.xlane.f32.xlu1 %v1480_v14 }
 0x4cb   :  { %v1461_v19 = vpop.xlane.xlu0 %1460 }
 0x4cc   :  { %5767 = vrcp.f32 %v1461_v19 }
 0x4cd   :  { %v1464_v21 = vpop.xlane.xlu1 %1463 }
 0x4ce   :  { %5769 = vrcp.f32 %v1464_v21 }
 0x4cf   :  { %v769_v23 = vpop.permute.xlu0 %768 }
 0x4d0   :  { %v783_v31 = vshrl.u32 %v769_v23, 16 }
 0x4d1   :  { %v767_v30 = vpop.permute.xlu1 %766 }
 0x4d2   :  { %v6245_v4 = vpack.i.b16 %v769_v23, %v767_v30  ;;  %v782_v32 = vshrl.u32 %v767_v30, 16 }
 0x4d4   :  { %v784_v35 = vpack.i.b16 %v783_v31, %v782_v32  ;;  %v808_v20 = vrot.slane %v6245_v4, %v6055_v42  ;;  %v786_v32 = vcombine.high %v6243_v24, %v6072_v54 }
 0x4d6   :  { %v816_v36 = vcombine.low %v793_v34, %v808_v20  ;;  %v817_v37 = vcombine.high %v793_v34, %v808_v20  ;;  %v874_v39 = vrot.slane %v784_v35, %v6055_v42  ;;  %v5768_v60 = vpop.eup %5767  ;;  %v867_v21 = vcombine.high %v784_v35, %v6072_v54 }
 0x4d7   :  { %v1491_v27 = vmul.f32 %v5768_v60, %v6206_v44  ;;  %v800_v24 = vrot.slane %v786_v32, %v6055_v42 }
 0x4d8   :  { %v824_v40 = vrot.slane %v816_v36, %v6074_v56  ;;  %v831_v41 = vrot.slane %v817_v37, %v6074_v56  ;;  %v882_v43 = vcombine.low %v859_v38, %v874_v39  ;;  %v883_v45 = vcombine.high %v859_v38, %v874_v39  ;;  %v5770_v28 = vpop.eup %5769 }
 0x4d9   :  { %v1492_v11 = vmul.f32 %v5770_v28, %v6210_v46  ;;  %v1499_v44 = vpack.c.bf16 %v1491_v27, %v1491_v27  ;;  %v801_v46 = vcombine.high %v6245_v4, %v6072_v54  ;;  %v881_v34 = vrot.slane %v867_v21, %v6055_v42 }
 0x4da   :  { %v918_v26 = vcombine.low %v824_v40, %v831_v41  ;;  %v5173_v25 = vcombine.high %v824_v40, %v831_v41  ;;  %v890_v47 = vrot.slane %v882_v43, %v6074_v56  ;;  %v897_v48 = vrot.slane %v883_v45, %v6074_v56 }
 0x4db   :  { %v1500_v31 = vpack.c.bf16 %v1492_v11, %v1492_v11  ;;  %v815_v35 = vrot.slane %v801_v46, %v6055_v42  ;;  %v898_v20 = vcombine.low %v866_v33, %v881_v34  ;;  %v899_v36 = vcombine.high %v866_v33, %v881_v34 }
 0x4dc   :  { %v925_v49 = vrot.slane %v918_v26, %v6055_v42  ;;  %v933_v50 = vrot.slane %v5173_v25, %v6055_v42  ;;  %v943_v51 = vcombine.low %v890_v47, %v897_v48  ;;  %v5174_v52 = vcombine.high %v890_v47, %v897_v48 }
 0x4dd   :  { %v832_v37 = vcombine.low %v800_v24, %v815_v35  ;;  %v833_v38 = vcombine.high %v800_v24, %v815_v35  ;;  %v906_v39 = vrot.slane %v898_v20, %v6074_v56  ;;  %v913_v40 = vrot.slane %v899_v36, %v6074_v56 }
 0x4de   :  { %v934_v55 = vcombine.low %v925_v49, %v933_v50  ;;  %v950_v57 = vrot.slane %v943_v51, %v6055_v42  ;;  %v958_v58 = vrot.slane %v5174_v52, %v6055_v42 }
 0x4df   :  { %v840_v41 = vrot.slane %v832_v37, %v6074_v56  ;;  %v847_v43 = vrot.slane %v833_v38, %v6074_v56  ;;  %v993_v45 = vcombine.low %v906_v39, %v913_v40  ;;  %v5176_v26 = vcombine.high %v906_v39, %v913_v40 }
 0x4e0   :  { %v941_v59 = vrot.slane %v934_v55, %v6074_v56  ;;  %v959_v61 = vcombine.low %v950_v57, %v958_v58 }
 0x4e1   :  { %v968_v25 = vcombine.low %v840_v41, %v847_v43  ;;  %v5175_v47 = vcombine.high %v840_v41, %v847_v43  ;;  %v1000_v48 = vrot.slane %v993_v45, %v6055_v42  ;;  %v1008_v49 = vrot.slane %v5176_v26, %v6055_v42 }
 0x4e2   :  { %v942_v62 = vcombine.high %v941_v59, %v5879_v53  ;;  %v966_v63 = vrot.slane %v959_v61, %v6074_v56  ;;  %v1021_v5 = vshrl.u32 %v941_v59, 16 }
 0x4e3   :  { %v975_v50 = vrot.slane %v968_v25, %v6055_v42  ;;  %v983_v51 = vrot.slane %v5175_v47, %v6055_v42  ;;  %v1009_v55 = vcombine.low %v1000_v48, %v1008_v49 }
 0x4e4   :  { %v1020_v2 = vpack.i.b16 %v966_v63, %v941_v59  ;;  %v1022_v7 = vshrl.u32 %v966_v63, 16  ;;  %v967_v9 = vcombine.high %v966_v63, %v5879_v53  ;;  %v1027_v13 = vshrl.u32 %v942_v62, 16 }
 0x4e5   :  { %v984_v58 = vcombine.low %v975_v50, %v983_v51  ;;  %v1016_v60 = vrot.slane %v1009_v55, %v6074_v56 }
 0x4e6   :  { %v1512_v14 = vsel %vm1510_vm4, %v1020_v2, 0  ;;  %v1023_v17 = vpack.i.b16 %v1022_v7, %v1021_v5  ;;  %v1026_v18 = vpack.i.b16 %v967_v9, %v942_v62  ;;  %v1028_v19 = vshrl.u32 %v967_v9, 16 }
 0x4e7   :  { %5475 = vmatpush3.bf16.msra.mxu0 %v1512_v14  ;;  %v991_v62 = vrot.slane %v984_v58, %v6074_v56  ;;  %v1034_v28 = vshrl.u32 %v1016_v60, 16  ;;  %v1017_v11 = vcombine.high %v1016_v60, %v5879_v53 }
 0x4e8   :  { %v1558_v22 = vsel %vm1510_vm4, %v1023_v17, 0  ;;  %5486 = vmatprep.subr.bf16.mxu0 %v5871_v1  ;;  %v1029_v23 = vpack.i.b16 %v1028_v19, %v1027_v13  ;;  %v1604_v30 = vsel %vm1510_vm4, %v1026_v18, 0 }
 0x4e9   :  { %5481 = vmatpush3.bf16.msra.mxu1 %v1558_v22  ;;  %v1033_v27 = vshrl.u32 %v991_v62, 16  ;;  %v1032_v18 = vpack.i.b16 %v1016_v60, %v991_v62  ;;  %v992_v19 = vcombine.high %v991_v62, %v5879_v53 }
 0x4ea   :  { %5477 = vmatmul.mubr.msk.bf16.vlgmr.msra.gmra.mrb[24].mxu0 %vm1042_vm3, %v1499_v44  ;;  %5492 = vmatprep.subr.bf16.mxu1 %v5871_v1  ;;  %v1650_v4 = vsel %vm1510_vm4, %v1029_v23, 0 }
 0x4eb   :  { %5487 = vmatpush3.bf16.msra.mxu0 %v1604_v30  ;;  %5488 = vmatprep.mubr.msk.bf16.mxu0 %vm5872_vm1, %v5871_v1  ;;  %v1035_v9 = vpack.i.b16 %v1034_v28, %v1033_v27  ;;  %v1039_v46 = vshrl.u32 %v992_v19, 16  ;;  %v1038_v34 = vpack.i.b16 %v1017_v11, %v992_v19 }
 0x4ec   :  { %5483 = vmatmul.mubr.msk.bf16.vlgmr.msra.gmra.mrb[16].mxu1 %vm1042_vm3, %v1500_v31  ;;  %5498 = vmatprep.subr.bf16.mxu0 %v5871_v1 }
 0x4ed   :  { %5493 = vmatpush3.bf16.msra.mxu1 %v1650_v4  ;;  %5494 = vmatprep.mubr.msk.bf16.mxu1 %vm5872_vm1, %v5871_v1  ;;  %v1742_v22 = vsel %vm1510_vm4, %v1035_v9, 0 }
 0x4ee   :  { %5504 = vmatprep.subr.bf16.mxu1 %v5871_v1 }
 0x500   :  { %v1470_v52 = vpop.xlane.xlu0 %1469 }
 0x501   :  { %5771 = vrcp.f32 %v1470_v52 }
 0x502   :  { %v1467_v57 = vpop.xlane.xlu1 %1466 }
 0x503   :  { %5773 = vrcp.f32 %v1467_v57 }
 0x504   :  { %v1473_v59 = vpop.xlane.xlu0 %1472 }
 0x505   :  { %5775 = vrcp.f32 %v1473_v59 }
 0x506   :  { %v1476_v61 = vpop.xlane.xlu1 %1475 }
 0x507   :  { %5777 = vrcp.f32 %v1476_v61 }
 0x508   :  { %v1479_v7 = vpop.xlane.xlu0 %1478 }
 0x50a   :  { %v1482_v63 = vpop.xlane.xlu1 %1481 }
 0x50b   :  { %v5772_v2 = vpop.eup %5771  ;;  %5779 = vrcp.f32 %v1482_v63 }
 0x50c   :  { %v1494_v5 = vmul.f32 %v5772_v2, %v6219_v3  ;;  %5781 = vrcp.f32 %v1479_v7  ;;  %v1040_v3 = vshrl.u32 %v1017_v11, 16 }
 0x50d   :  { %v5774_v13 = vpop.eup %5773 }
 0x50e   :  { %v1493_v14 = vmul.f32 %v5774_v13, %v6221_v0  ;;  %v1502_v17 = vpack.c.bf16 %v1494_v5, %v1494_v5  ;;  %v1696_v0 = vsel %vm1510_vm4, %v1032_v18, 0  ;;  %v1041_v31 = vpack.i.b16 %v1040_v3, %v1039_v46 }
 0x50f   :  { %v5776_v21 = vpop.eup %5775 }
 0x510   :  { %5495 = vmatmul.mubr.msk.bf16.vlgmr.msra.gmra.mrb[20].mxu1 %vm1042_vm3, %v1502_v17  ;;  %v1501_v44 = vpack.c.bf16 %v1493_v14, %v1493_v14  ;;  %v1495_v30 = vmul.f32 %v5776_v21, %v6225_v6  ;;  %v1788_v6 = vsel %vm1510_vm4, %v1038_v34, 0 }
 0x511   :  { %v5778_v23 = vpop.eup %5777  ;;  %5505 = vmatpush3.bf16.msra.mxu1 %v1742_v22  ;;  %5506 = vmatprep.mubr.msk.bf16.mxu1 %vm5872_vm1, %v5871_v1 }
 0x512   :  { %v1496_v29 = vmul.f32 %v5778_v23, %v6229_v8  ;;  %5489 = vmatmul.mubr.msk.bf16.vlgmr.msra.gmra.mrb[28].mxu0 %vm1042_vm3, %v1501_v44  ;;  %5516 = vmatprep.subr.bf16.mxu1 %v5871_v1  ;;  %v1834_v8 = vsel %vm1510_vm4, %v1041_v31, 0  ;;  %v1503_v33 = vpack.c.bf16 %v1495_v30, %v1495_v30 }
 0x513   :  { %5499 = vmatpush3.bf16.msra.mxu0 %v1696_v0  ;;  %5500 = vmatprep.mubr.msk.bf16.mxu0 %vm5872_vm1, %v5871_v1 }
 0x514   :  { %5510 = vmatprep.subr.bf16.mxu0 %v5871_v1  ;;  %v1504_v32 = vpack.c.bf16 %v1496_v29, %v1496_v29 }
 0x515   :  { %v5780_v4 = vpop.eup %5779 }
 0x516   :  { %v5782_v35 = vpop.eup %5781  ;;  %v1498_v24 = vmul.f32 %v5780_v4, %v6237_v12  ;;  %v5723_v12 = vld [vmem:[%s6976_s6] sm:$0xff]  }
 0x517   :  { %v1497_v20 = vmul.f32 %v5782_v35, %v6233_v10 }
 0x518   :  { %5507 = vmatmul.mubr.msk.bf16.vlgmr.msra.gmra.mrb[24].mxu1 %vm1042_vm3, %v1504_v32  ;;  %v1506_v36 = vpack.c.bf16 %v1498_v24, %v1498_v24 }
 0x519   :  { %5517 = vmatpush3.bf16.msra.mxu1 %v1834_v8  ;;  %5518 = vmatprep.mubr.msk.bf16.mxu1 %vm5872_vm1, %v5871_v1  ;;  %v1505_v37 = vpack.c.bf16 %v1497_v20, %v1497_v20 }
 0x51a   :  { %5501 = vmatmul.mubr.msk.bf16.vlgmr.msra.gmra.mrb[32].mxu0 %vm1042_vm3, %v1503_v33  ;;  %5530 = vmatprep.subr.bf16.mxu1 %v5871_v1 }
 0x51b   :  { %5511 = vmatpush3.bf16.msra.mxu0 %v1788_v6  ;;  %5512 = vmatprep.mubr.msk.bf16.mxu0 %vm5872_vm1, %v5871_v1 }
 0x51c   :  { %5522 = vmatprep.subr.bf16.mxu0 %v5871_v1 }
 0x520   :  { %5519 = vmatmul.mubr.msk.bf16.vlgmr.msra.gmra.mrb[28].mxu1 %vm1042_vm3, %v1506_v36 }
 0x521   :  { %5534 = vmatprep.mubr.msk.bf16.mxu1 %vm5872_vm1, %v5871_v1 }
 0x522   :  { %5513 = vmatmul.mubr.msk.bf16.vlgmr.msra.gmra.mrb[36].mxu0 %vm1042_vm3, %v1505_v37 }
 0x523   :  { %5526 = vmatprep.mubr.msk.bf16.mxu0 %vm5872_vm1, %v5871_v1  ;;  %5523 = vmatpush3.bf16.msra.mxu0 %v5723_v12 }
 0x524   :  { %5524 = vmatprep.subr.bf16.mxu0 %v5871_v1 }
 0x5bd   :  { %v1548_v10 = vpop.f32.mrb[24].mxu0 }
 0x5be   :  { %v5478_v38 = vpop.f32.mrb[25].mxu0  ;;  %v1876_v48 = vpack.c.bf16 %v1548_v10, %v1548_v10 }
 0x5bf   :  { %v1551_v39 = vpop.f32.mrb[26].mxu0  ;;  %v1594_v40 = vpop.f32.mrb[16].mxu1 }
 0x5c0   :  { %v5479_v41 = vpop.f32.mrb[27].mxu0  ;;  %v5484_v43 = vpop.f32.mrb[17].mxu1  ;;  %v1910_v25 = vpack.c.bf16 %v1594_v40, %v1594_v40  ;;  %v1883_v62 = vrot.slane %v1876_v48, %v6055_v42 }
 0x5c1   :  { %v1597_v45 = vpop.f32.mrb[18].mxu1 }
 0x5c2   :  { %v5485_v26 = vpop.f32.mrb[19].mxu1  ;;  %v1917_v55 = vrot.slane %v1910_v25, %v6055_v42 }
 0x5e3   :  { %v1686_v47 = vpop.f32.mrb[20].mxu1 }
 0x5e4   :  { %v1918_v49 = vpack.c.bf16 %v1686_v47, %v1686_v47  ;;  %v5496_v50 = vpop.f32.mrb[21].mxu1 }
 0x5e5   :  { %v1640_v51 = vpop.f32.mrb[28].mxu0  ;;  %v1689_v52 = vpop.f32.mrb[22].mxu1 }
 0x5e6   :  { %v1925_v57 = vrot.slane %v1918_v49, %v6055_v42  ;;  %v1884_v58 = vpack.c.bf16 %v1640_v51, %v1640_v51  ;;  %v5490_v59 = vpop.f32.mrb[29].mxu0  ;;  %v5497_v60 = vpop.f32.mrb[23].mxu1 }
 0x5e7   :  { %v1643_v61 = vpop.f32.mrb[30].mxu0 }
 0x5e8   :  { %v1926_v28 = vcombine.low %v1917_v55, %v1925_v57  ;;  %v1927_v63 = vcombine.high %v1917_v55, %v1925_v57  ;;  %v1891_v27 = vrot.slane %v1884_v58, %v6055_v42  ;;  %v5491_v2 = vpop.f32.mrb[31].mxu0 }
 0x5ea   :  { %v1934_v5 = vrot.slane %v1926_v28, %v6074_v56  ;;  %v1941_v7 = vrot.slane %v1927_v63, %v6074_v56  ;;  %v1892_v9 = vcombine.low %v1883_v62, %v1891_v27  ;;  %v1893_v11 = vcombine.high %v1883_v62, %v1891_v27 }
 0x5eb   :  { %v1778_v13 = vpop.f32.mrb[24].mxu1 }
 0x5ec   :  { %v1942_v14 = vcombine.high %v1934_v5, %v5879_v53  ;;  %v5508_v17 = vpop.f32.mrb[25].mxu1  ;;  %v1900_v18 = vrot.slane %v1892_v9, %v6074_v56  ;;  %v1907_v19 = vrot.slane %v1893_v11, %v6074_v56  ;;  %v1943_v44 = vcombine.high %v1941_v7, %v5879_v53 }
 0x5ed   :  { %v1732_v21 = vpop.f32.mrb[32].mxu0  ;;  %v1781_v22 = vpop.f32.mrb[26].mxu1  ;;  %v2017_v3 = vshrl.u32 %v1934_v5, 16  ;;  %v2033_v23 = vshrl.u32 %v1941_v7, 16  ;;  %v1978_v35 = vpack.c.bf16 %v1778_v13, %v1778_v13 }
 0x5ee   :  { %v5502_v29 = vpop.f32.mrb[33].mxu0  ;;  %v5509_v0 = vpop.f32.mrb[27].mxu1  ;;  %v1908_v46 = vcombine.high %v1900_v18, %v5879_v53  ;;  %v1909_v30 = vcombine.high %v1907_v19, %v5879_v53  ;;  %v2014_v31 = vpack.i.b16 %v1934_v5, %v1900_v18  ;;  %v2016_v32 = vshrl.u32 %v1900_v18, 16 }
 0x5ef   :  { %v1735_v34 = vpop.f32.mrb[34].mxu0  ;;  %v2025_v4 = vshrl.u32 %v1942_v14, 16  ;;  %v2030_v8 = vpack.i.b16 %v1941_v7, %v1907_v19  ;;  %v2032_v33 = vshrl.u32 %v1907_v19, 16  ;;  %v2041_v12 = vshrl.u32 %v1943_v44, 16 }
 0x5f0   :  { %v5503_v24 = vpop.f32.mrb[35].mxu0  ;;  %v2018_v6 = vpack.i.b16 %v2017_v3, %v2016_v32  ;;  %v2022_v20 = vpack.i.b16 %v1942_v14, %v1908_v46  ;;  %v2024_v36 = vshrl.u32 %v1908_v46, 16  ;;  %v2038_v37 = vpack.i.b16 %v1943_v44, %v1909_v30 }
 0x5f1   :  { %v2034_v10 = vpack.i.b16 %v2033_v23, %v2032_v33  ;;  %v2040_v38 = vshrl.u32 %v1909_v30, 16  ;;  %v2076_v39 = vcombine.low %v2014_v31, %v2030_v8  ;;  %v1944_v41 = vpack.c.bf16 %v1732_v21, %v1732_v21 }
 0x5f2   :  { %v2026_v40 = vpack.i.b16 %v2025_v4, %v2024_v36  ;;  %v2084_v45 = vcombine.low %v2022_v20, %v2038_v37  ;;  %v1985_v55 = vrot.slane %v1978_v35, %v6055_v42 }
 0x5f3   :  { %v1870_v43 = vpop.f32.mrb[28].mxu1  ;;  %v2042_v26 = vpack.i.b16 %v2041_v12, %v2040_v38  ;;  %v2126_v48 = vcombine.low %v2018_v6, %v2034_v10  ;;  %v2083_v51 = vrot.slane %v2076_v39, %v6055_v42  ;;  %v1951_v62 = vrot.slane %v1944_v41, %v6055_v42 }
 0x5f4   :  { %v1986_v25 = vpack.c.bf16 %v1870_v43, %v1870_v43  ;;  %v5520_v47 = vpop.f32.mrb[29].mxu1  ;;  %v2091_v52 = vrot.slane %v2084_v45, %v6055_v42 }
 0x5f5   :  { %v1824_v49 = vpop.f32.mrb[36].mxu0  ;;  %v1873_v50 = vpop.f32.mrb[30].mxu1  ;;  %v2134_v61 = vcombine.low %v2026_v40, %v2042_v26  ;;  %v2133_v11 = vrot.slane %v2126_v48, %v6055_v42  ;;  %v5724_v26 = vld [vmem:[%s6976_s6 + $0x8] sm:$0xff]  }
 0x5f6   :  { %v1993_v57 = vrot.slane %v1986_v25, %v6055_v42  ;;  %v1952_v58 = vpack.c.bf16 %v1824_v49, %v1824_v49  ;;  %v5514_v59 = vpop.f32.mrb[37].mxu0  ;;  %v5521_v60 = vpop.f32.mrb[31].mxu1  ;;  %v2108_v63 = vcombine.low %v2083_v51, %v2091_v52  ;;  %5525 = vmatpush3.bf16.msra.mxu0 %v5724_v26 }
 0x5f7   :  { %v1827_v28 = vpop.f32.mrb[38].mxu0  ;;  %v2141_v9 = vrot.slane %v2134_v61, %v6055_v42  ;;  %5538 = vmatprep.subr.bf16.mxu0 %v5871_v1 }
 0x5f8   :  { %v1994_v27 = vcombine.low %v1985_v55, %v1993_v57  ;;  %v1995_v2 = vcombine.high %v1985_v55, %v1993_v57  ;;  %v1959_v5 = vrot.slane %v1952_v58, %v6055_v42  ;;  %v5515_v7 = vpop.f32.mrb[39].mxu0  ;;  %v2115_v48 = vrot.slane %v2108_v63, %v6074_v56 }
 0x5f9   :  { %v2158_v19 = vcombine.low %v2133_v11, %v2141_v9 }
 0x5fa   :  { %v2002_v13 = vrot.slane %v1994_v27, %v6074_v56  ;;  %v2009_v14 = vrot.slane %v1995_v2, %v6074_v56  ;;  %v1960_v17 = vcombine.low %v1951_v62, %v1959_v5  ;;  %v1961_v18 = vcombine.high %v1951_v62, %v1959_v5 }
 0x5fb   :  { %v2165_v55 = vrot.slane %v2158_v19, %v6074_v56 }
 0x5fc   :  { %v2010_v21 = vcombine.high %v2002_v13, %v5879_v53  ;;  %v1968_v22 = vrot.slane %v1960_v17, %v6074_v56  ;;  %v1975_v44 = vrot.slane %v1961_v18, %v6074_v56  ;;  %v2011_v3 = vcombine.high %v2009_v14, %v5879_v53  ;;  %v5193_v18 = vld [vmem:[%s6977_s7] ss:$0 sm:$0xff] }
 0x5fd   :  { %v2049_v23 = vshrl.u32 %v2002_v13, 16  ;;  %v2065_v32 = vshrl.u32 %v2009_v14, 16 }
 0x5fe   :  { %v1976_v29 = vcombine.high %v1968_v22, %v5879_v53  ;;  %v1977_v0 = vcombine.high %v1975_v44, %v5879_v53  ;;  %v2046_v46 = vpack.i.b16 %v2002_v13, %v1968_v22  ;;  %v2048_v30 = vshrl.u32 %v1968_v22, 16 }
 0x5ff   :  { %v2057_v31 = vshrl.u32 %v2010_v21, 16  ;;  %v2062_v34 = vpack.i.b16 %v2009_v14, %v1975_v44  ;;  %v2064_v4 = vshrl.u32 %v1975_v44, 16  ;;  %v2073_v6 = vshrl.u32 %v2011_v3, 16 }
 0x600   :  { %v2050_v8 = vpack.i.b16 %v2049_v23, %v2048_v30  ;;  %v2054_v33 = vpack.i.b16 %v2010_v21, %v1976_v29  ;;  %v2056_v35 = vshrl.u32 %v1976_v29, 16  ;;  %v2070_v24 = vpack.i.b16 %v2011_v3, %v1977_v0 }
 0x601   :  { %v2066_v20 = vpack.i.b16 %v2065_v32, %v2064_v4  ;;  %v2072_v36 = vshrl.u32 %v1977_v0, 16  ;;  %v2092_v37 = vcombine.low %v2046_v46, %v2062_v34 }
 0x602   :  { %v2058_v12 = vpack.i.b16 %v2057_v31, %v2056_v35  ;;  %v2100_v10 = vcombine.low %v2054_v33, %v2070_v24 }
 0x603   :  { %v2074_v38 = vpack.i.b16 %v2073_v6, %v2072_v36  ;;  %v2142_v39 = vcombine.low %v2050_v8, %v2066_v20  ;;  %v2099_v40 = vrot.slane %v2092_v37, %v6055_v42  ;;  %v5726_v20 = vld [vmem:[%s6980_s10 + $0x8] sm:$0xff]  }
 0x604   :  { %v2107_v41 = vrot.slane %v2100_v10, %v6055_v42 }
 0x605   :  { %v2150_v43 = vcombine.low %v2058_v12, %v2074_v38  ;;  %v2149_v25 = vrot.slane %v2142_v39, %v6055_v42 }
 0x606   :  { %v2116_v45 = vcombine.low %v2099_v40, %v2107_v41 }
 0x607   :  { %v2157_v47 = vrot.slane %v2150_v43, %v6055_v42  ;;  %v5197_v43 = vld [vmem:[%s6978_s8] ss:$0 sm:$0xff] }
 0x608   :  { %v2123_v49 = vrot.slane %v2116_v45, %v6074_v56 }
 0x609   :  { %v2166_v50 = vcombine.low %v2149_v25, %v2157_v47  ;;  %v5198_v47 = vld [vmem:[%s6979_s9] ss:$0 sm:$0xff] }
 0x60a   :  { %v2125_v51 = vcombine.high %v2115_v48, %v2123_v49  ;;  %v2124_v52 = vcombine.low %v2115_v48, %v2123_v49 }
 0x60b   :  { %v2173_v57 = vrot.slane %v2166_v50, %v6074_v56 }
 0x60c   :  { %v2179_v60 = vshrl.u32 %v2124_v52, 16  ;;  %v2185_v61 = vshrl.u32 %v2125_v51, 16 }
 0x60d   :  { %v2175_v58 = vcombine.high %v2165_v55, %v2173_v57  ;;  %v2174_v59 = vcombine.low %v2165_v55, %v2173_v57  ;;  %v5728_v55 = vld [vmem:[%s6982_s12 + $0x8] sm:$0xff]   ;;  %v5729_v57 = vld [vmem:[%s6982_s12 + $0x10] sm:$0xff]  }
 0x60f   :  { %v2184_v62 = vpack.i.b16 %v2175_v58, %v2125_v51  ;;  %v2180_v28 = vshrl.u32 %v2174_v59, 16  ;;  %v2186_v27 = vshrl.u32 %v2175_v58, 16  ;;  %v2178_v63 = vpack.i.b16 %v2174_v59, %v2124_v52  ;;  %v5727_v52 = vld [vmem:[%s6982_s12] sm:$0xff]   ;;  %v5730_v58 = vld [vmem:[%s6982_s12 + $0x18] sm:$0xff]  }
 0x610   :  { %v5731_v59 = vld [vmem:[%s6982_s12 + $0x20] sm:$0xff]  }
 0x611   :  { %2190 = vrot.lane.b32.xlu1 %v2184_v62, %s5881_s24  ;;  %v2181_v2 = vpack.i.b16 %v2180_v28, %v2179_v60  ;;  %v2187_v5 = vpack.i.b16 %v2186_v27, %v2185_v61  ;;  %v5732_v60 = vld [vmem:[%s6982_s12 + $0x28] sm:$0xff]   ;;  %v5733_v61 = vld [vmem:[%s6982_s12 + $0x30] sm:$0xff]   ;;  %v5734_v62 = vld [vmem:[%s6982_s12 + $0x38] sm:$0xff]  }
 0x612   :  { %v5199_v28 = vld [vmem:[%s6981_s11] ss:$0 sm:$0xff] }
 0x613   :  { %2188 = vrot.lane.b32.xlu0 %v2181_v2, %s5882_s25 }
 0x615   :  { %2192 = vrot.lane.b32.xlu1 %v2187_v5, %s5883_s26 }
 0x683   :  { %v2191_v7 = vpop.permute.xlu1 %2190 }
 0x685   :  { %v2189_v9 = vpop.permute.xlu0 %2188 }
 0x686   :  { %v2196_v11 = vsel %vm1042_vm3, %v2178_v63, %v2189_v9 }
 0x687   :  { %v2193_v13 = vpop.permute.xlu1 %2192  ;;  %v2198_v14 = vsel %vm79_vm0, %v2196_v11, %v2191_v7 }
 0x688   :  { %v2201_v17 = vsel %vm2199_vm5, %v2198_v14, %v2193_v13 }
 0x689   :  { %5527 = vmatmul.mubr.msk.bf16.vlgmr.msra.gmra.mrb[40].mxu0 %vm151_vm2, %v2201_v17 }
 0x68a   :  { %5554 = vmatprep.mubr.msk.bf16.mxu0 %vm5872_vm1, %v5871_v1  ;;  %5539 = vmatpush3.bf16.msra.mxu0 %v5727_v52 }
 0x68b   :  { %5540 = vmatprep.subr.bf16.mxu0 %v5871_v1 }
 0x68e   :  { %5541 = vmatpush3.bf16.msra.mxu0 %v5728_v55 }
 0x68f   :  { %5542 = vmatprep.subr.bf16.mxu0 %v5871_v1 }
 0x692   :  { %5543 = vmatpush3.bf16.msra.mxu0 %v5729_v57 }
 0x693   :  { %5544 = vmatprep.subr.bf16.mxu0 %v5871_v1 }
 0x696   :  { %5545 = vmatpush3.bf16.msra.mxu0 %v5730_v58 }
 0x697   :  { %5546 = vmatprep.subr.bf16.mxu0 %v5871_v1 }
 0x69a   :  { %5547 = vmatpush3.bf16.msra.mxu0 %v5731_v59 }
 0x69b   :  { %5548 = vmatprep.subr.bf16.mxu0 %v5871_v1 }
 0x69e   :  { %5549 = vmatpush3.bf16.msra.mxu0 %v5732_v60 }
 0x69f   :  { %5550 = vmatprep.subr.bf16.mxu0 %v5871_v1 }
 0x6a2   :  { %5551 = vmatpush3.bf16.msra.mxu0 %v5733_v61 }
 0x6a3   :  { %5552 = vmatprep.subr.bf16.mxu0 %v5871_v1 }
 0x6a6   :  { %5553 = vmatpush3.bf16.msra.mxu0 %v5734_v62 }
 0x6a7   :  { %5584 = vmatprep.subr.bf16.mxu0 %v5871_v1 }
 0x75c   :  { %v2261_v19 = vpop.f32.mrb[40].mxu0 }
 0x75d   :  { %v2262_v21 = vadd.f32 %v5193_v18, %v2261_v19  ;;  %v5528_v22 = vpop.f32.mrb[41].mxu0 }
 0x75e   :  { %v2264_v44 = vpop.f32.mrb[42].mxu0 }
 0x75f   :  { %v2265_v3 = vadd.f32 %v5193_v18, %v2264_v44  ;;  %v5529_v23 = vpop.f32.mrb[43].mxu0  ;;  %v2268_v29 = vadd.f32 %v2262_v21, %v6013_v15 }
 0x761   :  { %v2272_v0 = vsel %vm151_vm2, %v2268_v29, 0.0  ;;  %v2269_v46 = vadd.f32 %v2265_v3, %v6015_v16  ;;  %v5725_v16 = vld [vmem:[%s6980_s10] sm:$0xff]  }
 0x762   :  { %2273 = vadd.xlane.f32.xlu0 %v2272_v0  ;;  %5531 = vmatpush3.bf16.msra.mxu1 %v5725_v16 }
 0x763   :  { %v2275_v30 = vsel %vm151_vm2, %v2269_v46, 0.0  ;;  %5532 = vmatprep.subr.bf16.mxu1 %v5871_v1 }
 0x764   :  { %2276 = vadd.xlane.f32.xlu1 %v2275_v30 }
 0x766   :  { %5533 = vmatpush3.bf16.msra.mxu1 %v5726_v20 }
 0x767   :  { %5558 = vmatprep.subr.bf16.mxu1 %v5871_v1 }
 0x7ef   :  { %v2274_v31 = vpop.xlane.xlu0 %2273 }
 0x7f0   :  { %v2279_v32 = vmul.f32 0.03125, %v2274_v31 }
 0x7f1   :  { %v2277_v34 = vpop.xlane.xlu1 %2276 }
 0x7f2   :  { %v2281_v4 = vsub.f32 %v2268_v29, %v2279_v32  ;;  %v2280_v8 = vmul.f32 0.03125, %v2277_v34 }
 0x7f4   :  { %v2282_v33 = vsub.f32 %v2269_v46, %v2280_v8  ;;  %v2283_v35 = vmul.f32 %v2281_v4, %v2281_v4 }
 0x7f6   :  { %v2285_v24 = vsel %vm151_vm2, %v2283_v35, 0.0  ;;  %v2284_v6 = vmul.f32 %v2282_v33, %v2282_v33 }
 0x7f7   :  { %2286 = vadd.xlane.f32.xlu0 %v2285_v24 }
 0x7f8   :  { %v2288_v15 = vsel %vm151_vm2, %v2284_v6, 0.0 }
 0x7fb   :  { %2289 = vadd.xlane.f32.xlu0 %v2288_v15 }
 0x884   :  { %v2287_v36 = vpop.xlane.xlu0 %2286 }
 0x885   :  { %v2291_v37 = vmul.f32 0.03125, %v2287_v36 }
 0x887   :  { %v2293_v12 = vadd.f32 1e-05, %v2291_v37 }
 0x888   :  { %v2290_v10 = vpop.xlane.xlu0 %2289 }
 0x889   :  { %5783 = vrsqrt.f32 %v2293_v12  ;;  %v2292_v38 = vmul.f32 0.03125, %v2290_v10 }
 0x88b   :  { %v2294_v39 = vadd.f32 1e-05, %v2292_v38 }
 0x88d   :  { %5785 = vrsqrt.f32 %v2294_v39 }
 0x893   :  { %v5784_v40 = vpop.eup %5783 }
 0x894   :  { %v2297_v41 = vmul.f32 %v5784_v40, %v2281_v4 }
 0x896   :  { %v2305_v26 = vmul.f32 %v5197_v43, %v2297_v41 }
 0x897   :  { %v5786_v45 = vpop.eup %5785 }
 0x898   :  { %v2298_v25 = vmul.f32 %v5786_v45, %v2282_v33  ;;  %v6415_v49 = vadd.f32 %v5198_v47, %v2305_v26 }
 0x89a   :  { %v2306_v48 = vmul.f32 %v5197_v43, %v2298_v25 }
 0x89c   :  { %v6417_v50 = vadd.f32 %v5198_v47, %v2306_v48 }
 0x89e   :  { %v2315_v51 = vpack.c.bf16 %v6417_v50, %v6415_v49 }
 0x8a0   :  { %5535 = vmatmul.mubr.msk.bf16.vlgmr.msra.gmra.mrb[32].mxu1 %vm151_vm2, %v2315_v51 }
 0x8a1   :  { %5562 = vmatprep.mubr.msk.bf16.mxu1 %vm5872_vm1, %v5871_v1 }
 0x973   :  { %v2376_v27 = vpop.f32.mrb[32].mxu1 }
 0x974   :  { %v2377_v63 = vadd.f32 %v5199_v28, %v2376_v27  ;;  %v5536_v2 = vpop.f32.mrb[33].mxu1  ;;  %v5203_v27 = vld [vmem:[%s6983_s13] ss:$0 sm:$0xff] }
 0x975   :  { %v2379_v5 = vpop.f32.mrb[34].mxu1 }
 0x976   :  { %v2385_v7 = vmul.f32 0.70710677, %v2377_v63  ;;  %v2380_v9 = vadd.f32 %v5199_v28, %v2379_v5  ;;  %v5537_v11 = vpop.f32.mrb[35].mxu1  ;;  %v2383_v58 = vmul.f32 0.5, %v2377_v63 }
 0x978   :  { %v2387_v13 = vand.u32 2147483647, %v2385_v7  ;;  %v2386_v14 = vmul.f32 0.70710677, %v2380_v9  ;;  %vm2427_vm6 = vcmp.ge.f32.partialorder %v2385_v7, 0.0  ;;  %v2384_v59 = vmul.f32 0.5, %v2380_v9 }
 0x97a   :  { %v2389_v17 = vmul.f32 0.3275911, %v2387_v13  ;;  %v2388_v18 = vand.u32 2147483647, %v2386_v14  ;;  %v2415_v44 = vsub.f32 0.0, %v2387_v13  ;;  %vm2428_vm7 = vcmp.ge.f32.partialorder %v2386_v14, 0.0 }
 0x97c   :  { %v2391_v19 = vadd.f32 1.0, %v2389_v17  ;;  %v2390_v21 = vmul.f32 0.3275911, %v2388_v18  ;;  %v2416_v3 = vsub.f32 0.0, %v2388_v18  ;;  %v2417_v29 = vmul.f32 %v2415_v44, %v2387_v13 }
 0x97e   :  { %5787 = vrcp.f32 %v2391_v19  ;;  %v2392_v22 = vadd.f32 1.0, %v2390_v21  ;;  %v2418_v31 = vmul.f32 %v2416_v3, %v2388_v18  ;;  %v2419_v32 = vmul.f32 1.442695, %v2417_v29 }
 0x980   :  { %5789 = vrcp.f32 %v2392_v22  ;;  %v2421_v35 = vmul.f32 1.442695, %v2418_v31 }
 0x981   :  { %5791 = vpow2.f32 %v2419_v32 }
 0x982   :  { %5793 = vpow2.f32 %v2421_v35 }
 0x988   :  { %v5788_v23 = vpop.eup %5787 }
 0x989   :  { %v2397_v0 = vmul.f32 1.0614054, %v5788_v23 }
 0x98a   :  { %v5790_v46 = vpop.eup %5789 }
 0x98b   :  { %v2399_v30 = vadd.f32 -1.4531521, %v2397_v0  ;;  %v2398_v34 = vmul.f32 1.0614054, %v5790_v46  ;;  %v5792_v39 = vpop.eup %5791 }
 0x98c   :  { %v5794_v45 = vpop.eup %5793 }
 0x98d   :  { %v2401_v4 = vmul.f32 %v5788_v23, %v2399_v30  ;;  %v2400_v8 = vadd.f32 -1.4531521, %v2398_v34  ;;  %v5736_v30 = vld [vmem:[%s6974_s4 + $0x18] sm:$0xff]  }
 0x98f   :  { %v2403_v33 = vadd.f32 1.4214138, %v2401_v4  ;;  %v2402_v24 = vmul.f32 %v5790_v46, %v2400_v8 }
 0x991   :  { %v2405_v6 = vmul.f32 %v5788_v23, %v2403_v33  ;;  %v2404_v15 = vadd.f32 1.4214138, %v2402_v24  ;;  %v5212_v24 = vld [vmem:[%s6984_s14] ss:$0 sm:$0xff] }
 0x993   :  { %v2407_v16 = vadd.f32 -0.28449672, %v2405_v6  ;;  %v2406_v20 = vmul.f32 %v5790_v46, %v2404_v15 }
 0x995   :  { %v2409_v36 = vmul.f32 %v5788_v23, %v2407_v16  ;;  %v2408_v37 = vadd.f32 -0.28449672, %v2406_v20 }
 0x997   :  { %v2411_v12 = vadd.f32 0.2548296, %v2409_v36  ;;  %v2410_v10 = vmul.f32 %v5790_v46, %v2408_v37  ;;  %v5213_v36 = vld [vmem:[%s6985_s15] ss:$0 sm:$0xff] }
 0x999   :  { %v2413_v38 = vmul.f32 %v5788_v23, %v2411_v12  ;;  %v2412_v40 = vadd.f32 0.2548296, %v2410_v10 }
 0x99b   :  { %v2423_v41 = vmul.f32 %v5792_v39, %v2413_v38  ;;  %v2414_v43 = vmul.f32 %v5790_v46, %v2412_v40  ;;  %v5219_v39 = vld [vmem:[%s6975_s5 + $0x1] ss:$0 sm:$0xff] }
 0x99d   :  { %v2425_v26 = vsub.f32 1.0, %v2423_v41  ;;  %v2424_v25 = vmul.f32 %v5794_v45, %v2414_v43 }
 0x99f   :  { %v2429_v47 = vsub.f32 0.0, %v2425_v26  ;;  %v2426_v48 = vsub.f32 1.0, %v2424_v25 }
 0x9a1   :  { %v2431_v51 = vsel %vm2427_vm6, %v2425_v26, %v2429_v47  ;;  %v2430_v52 = vsub.f32 0.0, %v2426_v48 }
 0x9a2   :  { %v2433_v55 = vadd.f32 1.0, %v2431_v51 }
 0x9a3   :  { %v2432_v57 = vsel %vm2428_vm7, %v2426_v48, %v2430_v52 }
 0x9a4   :  { %v2434_v60 = vadd.f32 1.0, %v2432_v57  ;;  %v2435_v61 = vmul.f32 %v2433_v55, %v2383_v58 }
 0x9a6   :  { %v2436_v62 = vmul.f32 %v2434_v60, %v2384_v59 }
 0x9a8   :  { %v2437_v28 = vpack.c.bf16 %v2436_v62, %v2435_v61 }
 0x9aa   :  { %5555 = vmatmul.mubr.bf16.vlgmr.msra.gmra.mrb[44].mxu0 %v2437_v28 }
 0x9ab   :  { %5586 = vmatprep.mubr.msk.bf16.mxu0 %vm5872_vm1, %v5871_v1 }
 0xa7d   :  { %v2543_v2 = vpop.f32.mrb[44].mxu0 }
 0xa7e   :  { %v2544_v5 = vadd.f32 %v5203_v27, %v2543_v2  ;;  %v5556_v7 = vpop.f32.mrb[45].mxu0 }
 0xa7f   :  { %v2546_v11 = vpop.f32.mrb[46].mxu0 }
 0xa80   :  { %v2547_v13 = vadd.f32 %v5203_v27, %v2546_v11  ;;  %v5557_v14 = vpop.f32.mrb[47].mxu0  ;;  %v2550_v63 = vadd.f32 %v2544_v5, %v6415_v49 }
 0xa82   :  { %v2554_v9 = vsel %vm151_vm2, %v2550_v63, 0.0  ;;  %v2551_v17 = vadd.f32 %v2547_v13, %v6417_v50  ;;  %v5735_v50 = vld [vmem:[%s6974_s4 + $0x10] sm:$0xff]  }
 0xa83   :  { %2555 = vadd.xlane.f32.xlu1 %v2554_v9  ;;  %5559 = vmatpush3.bf16.msra.mxu1 %v5735_v50 }
 0xa84   :  { %v2557_v18 = vsel %vm151_vm2, %v2551_v17, 0.0  ;;  %5560 = vmatprep.subr.bf16.mxu1 %v5871_v1 }
 0xa85   :  { %2558 = vadd.xlane.f32.xlu0 %v2557_v18 }
 0xa87   :  { %5561 = vmatpush3.bf16.msra.mxu1 %v5736_v30 }
 0xa88   :  { %5566 = vmatprep.subr.bf16.mxu1 %v5871_v1 }
 0xb10   :  { %v2556_v19 = vpop.xlane.xlu1 %2555 }
 0xb11   :  { %v2560_v21 = vmul.f32 0.03125, %v2556_v19 }
 0xb12   :  { %v2559_v22 = vpop.xlane.xlu0 %2558 }
 0xb13   :  { %v2562_v44 = vsub.f32 %v2550_v63, %v2560_v21  ;;  %v2561_v3 = vmul.f32 0.03125, %v2559_v22 }
 0xb15   :  { %v2563_v23 = vsub.f32 %v2551_v17, %v2561_v3  ;;  %v2564_v29 = vmul.f32 %v2562_v44, %v2562_v44 }
 0xb17   :  { %v2566_v0 = vsel %vm151_vm2, %v2564_v29, 0.0  ;;  %v2565_v46 = vmul.f32 %v2563_v23, %v2563_v23 }
 0xb18   :  { %2567 = vadd.xlane.f32.xlu1 %v2566_v0 }
 0xb19   :  { %v2569_v49 = vsel %vm151_vm2, %v2565_v46, 0.0 }
 0xb1a   :  { %2570 = vadd.xlane.f32.xlu0 %v2569_v49 }
 0xba5   :  { %v2568_v31 = vpop.xlane.xlu1 %2567 }
 0xba6   :  { %v2572_v32 = vmul.f32 0.03125, %v2568_v31 }
 0xba7   :  { %v2571_v34 = vpop.xlane.xlu0 %2570 }
 0xba8   :  { %v2574_v4 = vadd.f32 1e-05, %v2572_v32  ;;  %v2573_v8 = vmul.f32 0.03125, %v2571_v34 }
 0xbaa   :  { %5795 = vrsqrt.f32 %v2574_v4  ;;  %v2575_v33 = vadd.f32 1e-05, %v2573_v8 }
 0xbac   :  { %5797 = vrsqrt.f32 %v2575_v33 }
 0xbb4   :  { %v5796_v35 = vpop.eup %5795 }
 0xbb5   :  { %v2578_v6 = vmul.f32 %v5796_v35, %v2562_v44 }
 0xbb6   :  { %v5798_v15 = vpop.eup %5797 }
 0xbb7   :  { %v2586_v16 = vmul.f32 %v5212_v24, %v2578_v6  ;;  %v2579_v20 = vmul.f32 %v5798_v15, %v2563_v23 }
 0xbb9   :  { %v2587_v37 = vmul.f32 %v5212_v24, %v2579_v20  ;;  %v6484_v12 = vadd.f32 %v5213_v36, %v2586_v16 }
 0xbbb   :  { %v6486_v10 = vadd.f32 %v5213_v36, %v2587_v37 }
 0xbbd   :  { %v2596_v38 = vpack.c.bf16 %v6486_v10, %v6484_v12 }
 0xbbf   :  { %5563 = vmatmul.mubr.msk.bf16.vlgmr.msra.gmra.mrb[36].mxu1 %vm151_vm2, %v2596_v38 }
 0xbc0   :  { %5568 = vmatprep.mubr.msk.bf16.mxu1 %vm5872_vm1, %v5871_v1 }
 0xc92   :  { %v2659_v40 = vpop.f32.mrb[36].mxu1 }
 0xc93   :  { %v5564_v41 = vpop.f32.mrb[37].mxu1  ;;  %v2660_v45 = vadd.f32 %v5219_v39, %v2659_v40 }
 0xc94   :  { %v2662_v43 = vpop.f32.mrb[38].mxu1 }
 0xc95   :  { %v2663_v26 = vadd.f32 %v5219_v39, %v2662_v43  ;;  %v5565_v25 = vpop.f32.mrb[39].mxu1 }
 0xc97   :  { %v6496_v47 = vpack.c.bf16 %v2663_v26, %v2660_v45 }
 0xc99   :  { %2670 = vrot.lane.b32.xlu0 %v6496_v47, %s5876_s1  ;;  %2668 = vrot.lane.b32.xlu1 %v6496_v47, %s5874_s0  ;;  %v2678_v59 = vshrl.u32 %v6496_v47, 16 }
 0xc9d   :  { %2672 = vrot.lane.b32.xlu1 %v6496_v47, %s5873_s30 }
 0xca1   :  { %2946 = vrot.lane.b32.xlu1 %v6496_v47, %s5875_s19 }
 0xd0b   :  { %v6506_v48 = vpop.permute.xlu0 %2670  ;;  %v6508_v51 = vpop.permute.xlu1 %2668 }
 0xd0c   :  { %2950 = vrot.lane.b32.xlu1 %v6506_v48, %s5875_s19  ;;  %2948 = vrot.lane.b32.xlu0 %v6508_v51, %s5875_s19  ;;  %v2686_v57 = vshrl.u32 %v6506_v48, 16  ;;  %v2679_v58 = vshrl.u32 %v6508_v51, 16  ;;  %v2676_v28 = vpack.i.b16 %v6508_v51, %v6496_v47 }
 0xd0e   :  { %v2680_v62 = vpack.i.b16 %v2679_v58, %v2678_v59  ;;  %v2697_v7 = vrot.slane %v2676_v28, %v6055_v42  ;;  %v2690_v17 = vcombine.high %v2676_v28, %v6072_v54 }
 0xd0f   :  { %v6514_v52 = vpop.permute.xlu1 %2672 }
 0xd10   :  { %2952 = vrot.lane.b32.xlu0 %v6514_v52, %s5875_s19  ;;  %v2687_v55 = vshrl.u32 %v6514_v52, 16  ;;  %v2684_v61 = vpack.i.b16 %v6514_v52, %v6506_v48  ;;  %v2763_v5 = vrot.slane %v2680_v62, %v6055_v42  ;;  %v2756_v21 = vcombine.high %v2680_v62, %v6072_v54 }
 0xd11   :  { %v6546_v50 = vrot.slane %v2690_v17, %v6055_v42 }
 0xd12   :  { %v2688_v60 = vpack.i.b16 %v2687_v55, %v2686_v57  ;;  %v2712_v2 = vrot.slane %v2684_v61, %v6055_v42  ;;  %v2705_v11 = vcombine.high %v2684_v61, %v6072_v54  ;;  %v2770_v34 = vrot.slane %v2756_v21, %v6055_v42 }
 0xd13   :  { %v2947_v19 = vpop.permute.xlu1 %2946 }
 0xd14   :  { %v2778_v27 = vrot.slane %v2688_v60, %v6055_v42  ;;  %v2720_v63 = vcombine.low %v2697_v7, %v2712_v2  ;;  %v2721_v9 = vcombine.high %v2697_v7, %v2712_v2  ;;  %v2771_v18 = vcombine.high %v2688_v60, %v6072_v54 }
 0xd15   :  { %v6535_v22 = vrot.slane %v2705_v11, %v6055_v42  ;;  %v2958_v30 = vshrl.u32 %v2947_v19, 16 }
 0xd16   :  { %v2786_v13 = vcombine.low %v2763_v5, %v2778_v27  ;;  %v2787_v14 = vcombine.high %v2763_v5, %v2778_v27  ;;  %v6540_v29 = vrot.slane %v2720_v63, %v6074_v56  ;;  %v6543_v0 = vrot.slane %v2721_v9, %v6074_v56 }
 0xd17   :  { %v6549_v31 = vrot.slane %v2771_v18, %v6055_v42  ;;  %v2736_v4 = vcombine.low %v6546_v50, %v6535_v22  ;;  %v2737_v24 = vcombine.high %v6546_v50, %v6535_v22 }
 0xd18   :  { %v2794_v44 = vrot.slane %v2786_v13, %v6074_v56  ;;  %v2801_v3 = vrot.slane %v2787_v14, %v6074_v56  ;;  %v2822_v6 = vcombine.low %v6540_v29, %v6543_v0  ;;  %v5223_v20 = vcombine.high %v6540_v29, %v6543_v0 }
 0xd19   :  { %v2802_v39 = vcombine.low %v2770_v34, %v6549_v31  ;;  %v2803_v45 = vcombine.high %v2770_v34, %v6549_v31 }
 0xd1a   :  { %v2847_v8 = vcombine.low %v2794_v44, %v2801_v3  ;;  %v5224_v36 = vcombine.high %v2794_v44, %v2801_v3 }
 0xd1c   :  { %v2854_v26 = vrot.slane %v2847_v8, %v6055_v42  ;;  %v2862_v61 = vrot.slane %v5224_v36, %v6055_v42 }
 0xd7e   :  { %v2949_v23 = vpop.permute.xlu0 %2948  ;;  %v2951_v32 = vpop.permute.xlu1 %2950 }
 0xd7f   :  { %v2956_v46 = vpack.i.b16 %v2949_v23, %v2947_v19  ;;  %v2959_v49 = vshrl.u32 %v2949_v23, 16  ;;  %v2966_v37 = vshrl.u32 %v2951_v32, 16 }
 0xd81   :  { %v2960_v33 = vpack.i.b16 %v2959_v49, %v2958_v30  ;;  %v2970_v15 = vcombine.high %v2956_v46, %v6072_v54  ;;  %v2977_v40 = vrot.slane %v2956_v46, %v6055_v42 }
 0xd82   :  { %v2953_v35 = vpop.permute.xlu0 %2952 }
 0xd83   :  { %v2964_v16 = vpack.i.b16 %v2953_v35, %v2951_v32  ;;  %v2967_v38 = vshrl.u32 %v2953_v35, 16  ;;  %v3036_v25 = vcombine.high %v2960_v33, %v6072_v54  ;;  %v2984_v57 = vrot.slane %v2970_v15, %v6055_v42 }
 0xd84   :  { %v3043_v62 = vrot.slane %v2960_v33, %v6055_v42  ;;  %v2810_v33 = vrot.slane %v2802_v39, %v6074_v56  ;;  %v2829_v35 = vrot.slane %v2822_v6, %v6055_v42  ;;  %v2837_v15 = vrot.slane %v5223_v20, %v6055_v42 }
 0xd85   :  { %v2985_v41 = vcombine.high %v2964_v16, %v6072_v54  ;;  %v2992_v43 = vrot.slane %v2964_v16, %v6055_v42  ;;  %v2968_v55 = vpack.i.b16 %v2967_v38, %v2966_v37  ;;  %v3050_v13 = vrot.slane %v3036_v25, %v6055_v42 }
 0xd87   :  { %v2999_v58 = vrot.slane %v2985_v41, %v6055_v42  ;;  %v3000_v59 = vcombine.low %v2977_v40, %v2992_v43  ;;  %v3001_v60 = vcombine.high %v2977_v40, %v2992_v43  ;;  %v3051_v28 = vcombine.high %v2968_v55, %v6072_v54 }
 0xd88   :  { %v3058_v27 = vrot.slane %v2968_v55, %v6055_v42  ;;  %v2817_v41 = vrot.slane %v2803_v45, %v6074_v56  ;;  %v2863_v55 = vcombine.low %v2854_v26, %v2862_v61  ;;  %v2751_v45 = vrot.slane %v2737_v24, %v6074_v56 }
 0xd89   :  { %v3008_v2 = vrot.slane %v3000_v59, %v6074_v56  ;;  %v3015_v5 = vrot.slane %v3001_v60, %v6074_v56  ;;  %v3016_v7 = vcombine.low %v2984_v57, %v2999_v58  ;;  %v3017_v11 = vcombine.high %v2984_v57, %v2999_v58 }
 0xd8a   :  { %v3065_v14 = vrot.slane %v3051_v28, %v6055_v42  ;;  %v3066_v63 = vcombine.low %v3043_v62, %v3058_v27  ;;  %v3067_v9 = vcombine.high %v3043_v62, %v3058_v27  ;;  %v2744_v58 = vrot.slane %v2736_v4, %v6074_v56 }
 0xd8b   :  { %v3024_v17 = vrot.slane %v3016_v7, %v6074_v56  ;;  %v3031_v18 = vrot.slane %v3017_v11, %v6074_v56  ;;  %v3102_v19 = vcombine.low %v3008_v2, %v3015_v5  ;;  %v5227_v21 = vcombine.high %v3008_v2, %v3015_v5 }
 0xd8c   :  { %v3074_v44 = vrot.slane %v3066_v63, %v6074_v56  ;;  %v3081_v3 = vrot.slane %v3067_v9, %v6074_v56  ;;  %v3082_v23 = vcombine.low %v3050_v13, %v3065_v14  ;;  %v3083_v29 = vcombine.high %v3050_v13, %v3065_v14 }
 0xd8d   :  { %v3109_v0 = vrot.slane %v3102_v19, %v6055_v42  ;;  %v3117_v46 = vrot.slane %v5227_v21, %v6055_v42  ;;  %v3152_v49 = vcombine.low %v3024_v17, %v3031_v18  ;;  %v5229_v30 = vcombine.high %v3024_v17, %v3031_v18 }
 0xd8e   :  { %v3090_v31 = vrot.slane %v3082_v23, %v6074_v56  ;;  %v3097_v32 = vrot.slane %v3083_v29, %v6074_v56  ;;  %v3127_v34 = vcombine.low %v3074_v44, %v3081_v3  ;;  %v5228_v8 = vcombine.high %v3074_v44, %v3081_v3 }
 0xd8f   :  { %v3118_v16 = vcombine.low %v3109_v0, %v3117_v46  ;;  %v3159_v43 = vrot.slane %v3152_v49, %v6055_v42  ;;  %v3167_v39 = vrot.slane %v5229_v30, %v6055_v42  ;;  %v2838_v59 = vcombine.low %v2829_v35, %v2837_v15 }
 0xd90   :  { %v3134_v36 = vrot.slane %v3127_v34, %v6055_v42  ;;  %v3142_v37 = vrot.slane %v5228_v8, %v6055_v42  ;;  %v3177_v38 = vcombine.low %v3090_v31, %v3097_v32  ;;  %v5230_v40 = vcombine.high %v3090_v31, %v3097_v32 }
 0xd91   :  { %v3125_v25 = vrot.slane %v3118_v16, %v6074_v56  ;;  %v2897_v62 = vcombine.low %v2810_v33, %v2817_v41  ;;  %v5226_v28 = vcombine.high %v2810_v33, %v2817_v41  ;;  %v2870_v5 = vrot.slane %v2863_v55, %v6074_v56 }
 0xd92   :  { %v3184_v6 = vrot.slane %v3177_v38, %v6055_v42  ;;  %v3192_v20 = vrot.slane %v5230_v40, %v6055_v42  ;;  %v3143_v57 = vcombine.low %v3134_v36, %v3142_v37  ;;  %v3168_v4 = vcombine.low %v3159_v43, %v3167_v39 }
 0xd93   :  { %v6606_v26 = vcombine.high %v3125_v25, %v5879_v53  ;;  %v2872_v7 = vcombine.low %v2744_v58, %v2751_v45  ;;  %v5225_v11 = vcombine.high %v2744_v58, %v2751_v45  ;;  %v2845_v50 = vrot.slane %v2838_v59, %v6074_v56 }
 0xd94   :  { %v3150_v60 = vrot.slane %v3143_v57, %v6074_v56  ;;  %v3193_v61 = vcombine.low %v3184_v6, %v3192_v20  ;;  %v2904_v9 = vrot.slane %v2897_v62, %v6055_v42  ;;  %v2912_v17 = vrot.slane %v5226_v28, %v6055_v42 }
 0xd95   :  { %v3211_v22 = vshrl.u32 %v6606_v26, 16  ;;  %v3205_v19 = vshrl.u32 %v3125_v25, 16  ;;  %v2871_v21 = vcombine.high %v2870_v5, %v5879_v53  ;;  %v3175_v44 = vrot.slane %v3168_v4, %v6074_v56 }
 0xd96   :  { %v3204_v27 = vpack.i.b16 %v3150_v60, %v3125_v25  ;;  %v3151_v2 = vcombine.high %v3150_v60, %v5879_v53  ;;  %v3206_v14 = vshrl.u32 %v3150_v60, 16  ;;  %v6615_v63 = vrot.slane %v3193_v61, %v6074_v56 }
 0xd97   :  { %v2879_v3 = vrot.slane %v2872_v7, %v6055_v42  ;;  %v2887_v23 = vrot.slane %v5225_v11, %v6055_v42  ;;  %v2846_v46 = vcombine.high %v2845_v50, %v5879_v53  ;;  %v2924_v30 = vpack.i.b16 %v2870_v5, %v2845_v50 }
 0xd98   :  { %v3510_v24 = vsel %vm1042_vm3, %v3204_v27, 0  ;;  %v3212_v13 = vshrl.u32 %v3151_v2, 16  ;;  %v3207_v0 = vpack.i.b16 %v3206_v14, %v3205_v19  ;;  %v3218_v49 = vshrl.u32 %v6615_v63, 16 }
 0xd99   :  { %5567 = vmatpush3.bf16.xpose.msra.mxu1 %v3510_v24  ;;  %v2932_v31 = vshrl.u32 %v2871_v21, 16  ;;  %v3217_v32 = vshrl.u32 %v3175_v44, 16  ;;  %v2913_v34 = vcombine.low %v2904_v9, %v2912_v17  ;;  %v2888_v8 = vcombine.low %v2879_v3, %v2887_v23 }
 0xd9a   :  { %v3213_v18 = vpack.i.b16 %v3212_v13, %v3211_v22  ;;  %5572 = vmatprep.subr.bf16.mxu1 %v5871_v1  ;;  %v3556_v33 = vsel %vm1042_vm3, %v3207_v0, 0  ;;  %v2931_v35 = vshrl.u32 %v2846_v46, 16  ;;  %v3201_v16 = vcombine.high %v6615_v63, %v5879_v53 }
 0xd9b   :  { %v3219_v15 = vpack.i.b16 %v3218_v49, %v3217_v32  ;;  %v2926_v37 = vshrl.u32 %v2870_v5, 16  ;;  %v2920_v38 = vrot.slane %v2913_v34, %v6074_v56  ;;  %v3176_v40 = vcombine.high %v3175_v44, %v5879_v53 }
 0xd9c   :  { %v3648_v29 = vsel %vm1042_vm3, %v3213_v18, 0  ;;  %v2933_v36 = vpack.i.b16 %v2932_v31, %v2931_v35  ;;  %v2925_v41 = vshrl.u32 %v2845_v50, 16  ;;  %v3210_v25 = vpack.i.b16 %v3151_v2, %v6606_v26 }
 0xd9d   :  { %5585 = vmatpush3.bf16.xpose.msra.mxu0 %v3648_v29  ;;  %v3740_v43 = vsel %vm1042_vm3, %v3219_v15, 0  ;;  %v2895_v55 = vrot.slane %v2888_v8, %v6074_v56  ;;  %v3224_v39 = vshrl.u32 %v3201_v16, 16  ;;  %v2938_v20 = vshrl.u32 %v2920_v38, 16 }
 0xd9e   :  { %5596 = vmatprep.subr.bf16.mxu0 %v5871_v1  ;;  %v2927_v6 = vpack.i.b16 %v2926_v37, %v2925_v41  ;;  %v3223_v57 = vshrl.u32 %v3176_v40, 16  ;;  %v3602_v58 = vsel %vm1042_vm3, %v3210_v25, 0  ;;  %v2921_v60 = vcombine.high %v2920_v38, %v5879_v53 }
 0xd9f   :  { %v2937_v45 = vshrl.u32 %v2895_v55, 16  ;;  %v3216_v62 = vpack.i.b16 %v6615_v63, %v3175_v44  ;;  %v2896_v28 = vcombine.high %v2895_v55, %v5879_v53  ;;  %v2930_v27 = vpack.i.b16 %v2871_v21, %v2846_v46 }
 0xda0   :  { %5569 = vmatmul.mubr.msk.bf16.vlgmr.msra.gmra.mrb[40].mxu1 %vm1042_vm3, %v2924_v30  ;;  %v3225_v59 = vpack.i.b16 %v3224_v39, %v3223_v57  ;;  %v2944_v2 = vshrl.u32 %v2921_v60, 16  ;;  %v3222_v11 = vpack.i.b16 %v3201_v16, %v3176_v40  ;;  %v2936_v22 = vpack.i.b16 %v2920_v38, %v2895_v55 }
 0xda1   :  { %5573 = vmatpush3.bf16.xpose.msra.mxu1 %v3556_v33  ;;  %5574 = vmatprep.mubr.msk.bf16.mxu1 %vm5872_vm1, %v5871_v1  ;;  %v2939_v26 = vpack.i.b16 %v2938_v20, %v2937_v45  ;;  %v3694_v5 = vsel %vm1042_vm3, %v3216_v62, 0  ;;  %v2943_v4 = vshrl.u32 %v2896_v28, 16  ;;  %v2942_v24 = vpack.i.b16 %v2921_v60, %v2896_v28 }
 0xda2   :  { %5578 = vmatprep.subr.bf16.mxu1 %v5871_v1  ;;  %v3832_v61 = vsel %vm1042_vm3, %v3225_v59, 0  ;;  %v3786_v50 = vsel %vm1042_vm3, %v3222_v11, 0 }
 0xda3   :  { %v2945_v7 = vpack.i.b16 %v2944_v2, %v2943_v4 }
 0xda4   :  { %5587 = vmatmul.mubr.msk.bf16.vlgmr.msra.gmra.mrb[48].mxu0 %vm1042_vm3, %v2933_v36 }
 0xda5   :  { %5597 = vmatpush3.bf16.xpose.msra.mxu0 %v3740_v43  ;;  %5598 = vmatprep.mubr.msk.bf16.mxu0 %vm5872_vm1, %v5871_v1 }
 0xda6   :  { %5608 = vmatprep.subr.bf16.mxu0 %v5871_v1 }
 0xda8   :  { %5575 = vmatmul.mubr.msk.bf16.vlgmr.msra.gmra.mrb[44].mxu1 %vm1042_vm3, %v2927_v6 }
 0xda9   :  { %5579 = vmatpush3.bf16.xpose.msra.mxu1 %v3602_v58  ;;  %5580 = vmatprep.mubr.msk.bf16.mxu1 %vm5872_vm1, %v5871_v1 }
 0xdaa   :  { %5590 = vmatprep.subr.bf16.mxu1 %v5871_v1 }
 0xdac   :  { %5599 = vmatmul.mubr.msk.bf16.vlgmr.msra.gmra.mrb[52].mxu0 %vm1042_vm3, %v2939_v26 }
 0xdad   :  { %5609 = vmatpush3.bf16.xpose.msra.mxu0 %v3832_v61  ;;  %5610 = vmatprep.mubr.msk.bf16.mxu0 %vm5872_vm1, %v5871_v1 }
 0xdae   :  { %5620 = vmatprep.subr.bf16.mxu0 %v5871_v1 }
 0xdb0   :  { %5581 = vmatmul.mubr.msk.bf16.vlgmr.msra.gmra.mrb[48].mxu1 %vm1042_vm3, %v2930_v27 }
 0xdb1   :  { %5591 = vmatpush3.bf16.xpose.msra.mxu1 %v3694_v5  ;;  %5592 = vmatprep.mubr.msk.bf16.mxu1 %vm5872_vm1, %v5871_v1 }
 0xdb2   :  { %5602 = vmatprep.subr.bf16.mxu1 %v5871_v1 }
 0xdb4   :  { %5611 = vmatmul.mubr.msk.bf16.vlgmr.msra.gmra.mrb[56].mxu0 %vm1042_vm3, %v2945_v7 }
 0xdb5   :  { %5622 = vmatprep.mubr.msk.bf16.mxu0 %vm5872_vm1, %v5871_v1 }
 0xdb8   :  { %5593 = vmatmul.mubr.msk.bf16.vlgmr.msra.gmra.mrb[52].mxu1 %vm1042_vm3, %v2936_v22 }
 0xdb9   :  { %5603 = vmatpush3.bf16.xpose.msra.mxu1 %v3786_v50  ;;  %5604 = vmatprep.mubr.msk.bf16.mxu1 %vm5872_vm1, %v5871_v1 }
 0xdba   :  { %5614 = vmatprep.subr.bf16.mxu1 %v5871_v1 }
 0xdc0   :  { %5605 = vmatmul.mubr.msk.bf16.vlgmr.msra.gmra.mrb[56].mxu1 %vm1042_vm3, %v2942_v24 }
 0xdc1   :  { %5616 = vmatprep.mubr.msk.bf16.mxu1 %vm5872_vm1, %v5871_v1 }
 0xe73   :  { %v3546_v13 = vpop.f32.mrb[40].mxu1 }
 0xe74   :  { %v5570_v14 = vpop.f32.mrb[41].mxu1  ;;  %v3874_v63 = vsel %vm1042_vm3, %v3546_v13, -inf }
 0xe75   :  { %3875 = vmax.xlane.f32.xlu1 %v3874_v63  ;;  %v3549_v9 = vpop.f32.mrb[42].mxu1 }
 0xe76   :  { %v5571_v17 = vpop.f32.mrb[43].mxu1 }
 0xe77   :  { %v6674_v18 = vpop.f32.mrb[48].mxu0 }
 0xe78   :  { %v5588_v19 = vpop.f32.mrb[49].mxu0  ;;  %v3883_v21 = vsel %vm1042_vm3, %v6674_v18, -inf }
 0xe79   :  { %3884 = vmax.xlane.f32.xlu1 %v3883_v21  ;;  %v3687_v44 = vpop.f32.mrb[50].mxu0 }
 0xe7a   :  { %v5589_v3 = vpop.f32.mrb[51].mxu0 }
 0xe7b   :  { %v3592_v23 = vpop.f32.mrb[44].mxu1 }
 0xe7c   :  { %v5576_v29 = vpop.f32.mrb[45].mxu1  ;;  %v3877_v0 = vsel %vm1042_vm3, %v3592_v23, -inf }
 0xe7d   :  { %3878 = vmax.xlane.f32.xlu0 %v3877_v0  ;;  %v3595_v46 = vpop.f32.mrb[46].mxu1 }
 0xe7e   :  { %v5577_v49 = vpop.f32.mrb[47].mxu1 }
 0xe7f   :  { %v6679_v30 = vpop.f32.mrb[52].mxu0 }
 0xe80   :  { %v5600_v31 = vpop.f32.mrb[53].mxu0  ;;  %v3889_v32 = vsel %vm1042_vm3, %v6679_v30, -inf }
 0xe81   :  { %3890 = vmax.xlane.f32.xlu1 %v3889_v32  ;;  %v3779_v34 = vpop.f32.mrb[54].mxu0 }
 0xe82   :  { %v5601_v8 = vpop.f32.mrb[55].mxu0 }
 0xe83   :  { %v3638_v33 = vpop.f32.mrb[48].mxu1 }
 0xe84   :  { %v5582_v35 = vpop.f32.mrb[49].mxu1  ;;  %v3880_v15 = vsel %vm1042_vm3, %v3638_v33, -inf }
 0xe85   :  { %3881 = vmax.xlane.f32.xlu0 %v3880_v15  ;;  %v3641_v16 = vpop.f32.mrb[50].mxu1 }
 0xe86   :  { %v5583_v36 = vpop.f32.mrb[51].mxu1 }
 0xe87   :  { %v3868_v37 = vpop.f32.mrb[56].mxu0 }
 0xe88   :  { %v5612_v38 = vpop.f32.mrb[57].mxu0  ;;  %v3895_v40 = vsel %vm1042_vm3, %v3868_v37, -inf }
 0xe89   :  { %3896 = vmax.xlane.f32.xlu1 %v3895_v40  ;;  %v3871_v41 = vpop.f32.mrb[58].mxu0 }
 0xe8a   :  { %v5613_v43 = vpop.f32.mrb[59].mxu0 }
 0xe8b   :  { %v3730_v25 = vpop.f32.mrb[52].mxu1 }
 0xe8c   :  { %v5594_v55 = vpop.f32.mrb[53].mxu1  ;;  %v3886_v39 = vsel %vm1042_vm3, %v3730_v25, -inf }
 0xe8d   :  { %3887 = vmax.xlane.f32.xlu0 %v3886_v39  ;;  %v3733_v6 = vpop.f32.mrb[54].mxu1 }
 0xe8e   :  { %v5595_v20 = vpop.f32.mrb[55].mxu1 }
 0xe93   :  { %v3822_v57 = vpop.f32.mrb[56].mxu1 }
 0xe94   :  { %v5606_v58 = vpop.f32.mrb[57].mxu1  ;;  %v3892_v45 = vsel %vm1042_vm3, %v3822_v57, -inf }
 0xe95   :  { %3893 = vmax.xlane.f32.xlu0 %v3892_v45  ;;  %v3825_v59 = vpop.f32.mrb[58].mxu1 }
 0xe96   :  { %v5607_v26 = vpop.f32.mrb[59].mxu1 }
 0xe9a   :  { %3228 = vrot.lane.b32.xlu1 %v6508_v51, %s5880_s20 }
 0xeab   :  { %3226 = vrot.lane.b32.xlu0 %v6496_v47, %s5880_s20 }
 0xf02   :  { %v3876_v60 = vpop.xlane.xlu1 %3875 }
 0xf03   :  { %v3898_v61 = vsub.f32 %v3546_v13, %v3876_v60 }
 0xf05   :  { %v3906_v62 = vmul.f32 1.442695, %v3898_v61 }
 0xf06   :  { %v3885_v47 = vpop.xlane.xlu1 %3884 }
 0xf07   :  { %5799 = vpow2.f32 %v3906_v62  ;;  %v3901_v22 = vsub.f32 %v6674_v18, %v3885_v47 }
 0xf09   :  { %v3912_v24 = vmul.f32 1.442695, %v3901_v22 }
 0xf0a   :  { %v3879_v28 = vpop.xlane.xlu0 %3878 }
 0xf0b   :  { %v3899_v27 = vsub.f32 %v3592_v23, %v3879_v28 }
 0xf0d   :  { %v3908_v2 = vmul.f32 1.442695, %v3899_v27 }
 0xf0e   :  { %v3891_v19 = vpop.xlane.xlu1 %3890 }
 0xf0f   :  { %5801 = vpow2.f32 %v3908_v2  ;;  %v3903_v44 = vsub.f32 %v6679_v30, %v3891_v19 }
 0xf10   :  { %5803 = vpow2.f32 %v3912_v24 }
 0xf11   :  { %v6691_v5 = vpop.eup %5799 }
 0xf12   :  { %v3922_v4 = vsel %vm1042_vm3, %v6691_v5, 0.0  ;;  %v3882_v11 = vpop.xlane.xlu0 %3881 }
 0xf13   :  { %3923 = vadd.xlane.f32.xlu0 %v3922_v4  ;;  %v3900_v63 = vsub.f32 %v3638_v33, %v3882_v11 }
 0xf15   :  { %v3910_v21 = vmul.f32 1.442695, %v3900_v63 }
 0xf16   :  { %v3897_v3 = vpop.xlane.xlu1 %3896 }
 0xf17   :  { %v3905_v23 = vsub.f32 %v3868_v37, %v3897_v3 }
 0xf19   :  { %v6695_v7 = vpop.eup %5801  ;;  %v3920_v29 = vmul.f32 1.442695, %v3905_v23 }
 0xf1a   :  { %v3925_v51 = vsel %vm1042_vm3, %v6695_v7, 0.0  ;;  %v3888_v50 = vpop.xlane.xlu0 %3887  ;;  %v6705_v18 = vpop.eup %5803 }
 0xf1b   :  { %3926 = vadd.xlane.f32.xlu1 %v3925_v51  ;;  %v3902_v13 = vsub.f32 %v3730_v25, %v3888_v50  ;;  %v3931_v0 = vsel %vm1042_vm3, %v6705_v18, 0.0  ;;  %v3229_v36 = vpop.permute.xlu1 %3228 }
 0xf1c   :  { %v3239_v25 = vshrl.u32 %v3229_v36, 16 }
 0xf1d   :  { %v3914_v9 = vmul.f32 1.442695, %v3902_v13 }
 0xf1f   :  { %5805 = vpow2.f32 %v3914_v9 }
 0xf20   :  { %5807 = vpow2.f32 %v3910_v21 }
 0xf22   :  { %v3894_v14 = vpop.xlane.xlu0 %3893 }
 0xf23   :  { %v3904_v17 = vsub.f32 %v3822_v57, %v3894_v14 }
 0xf26   :  { %v3227_v16 = vpop.permute.xlu0 %3226 }
 0xf27   :  { %v3238_v40 = vshrl.u32 %v3227_v16, 16  ;;  %v3236_v43 = vpack.i.b16 %v3229_v36, %v3227_v16 }
 0xf29   :  { %3232 = vrot.lane.b32.xlu0 %v6514_v52, %s5880_s20  ;;  %v3918_v52 = vmul.f32 1.442695, %v3904_v17  ;;  %v6709_v46 = vpop.eup %5805  ;;  %v3240_v57 = vpack.i.b16 %v3239_v25, %v3238_v40  ;;  %v3257_v58 = vrot.slane %v3236_v43, %v6055_v42  ;;  %v3250_v16 = vcombine.high %v3236_v43, %v6072_v54 }
 0xf2a   :  { %v6711_v49 = vpop.eup %5807  ;;  %v3934_v30 = vsel %vm1042_vm3, %v6709_v46, 0.0 }
 0xf2b   :  { %5809 = vpow2.f32 %v3918_v52  ;;  %v3928_v34 = vsel %vm1042_vm3, %v6711_v49, 0.0  ;;  %v3323_v61 = vrot.slane %v3240_v57, %v6055_v42 }
 0xf2c   :  { %3230 = vrot.lane.b32.xlu1 %v6506_v48, %s5880_s20  ;;  %v3916_v48 = vmul.f32 1.442695, %v3903_v44 }
 0xf2e   :  { %5811 = vpow2.f32 %v3916_v48 }
 0xf2f   :  { %5813 = vpow2.f32 %v3920_v29  ;;  %v3316_v29 = vcombine.high %v3240_v57, %v6072_v54 }
 0xf35   :  { %v6715_v31 = vpop.eup %5809 }
 0xf36   :  { %v3940_v32 = vsel %vm1042_vm3, %v6715_v31, 0.0 }
 0xf38   :  { %v6721_v8 = vpop.eup %5811 }
 0xf39   :  { %v3937_v33 = vsel %vm1042_vm3, %v6721_v8, 0.0  ;;  %v6725_v35 = vpop.eup %5813 }
 0xf3a   :  { %v3943_v15 = vsel %vm1042_vm3, %v6725_v35, 0.0 }
 0xf48   :  { %3932 = vadd.xlane.f32.xlu0 %v3931_v0 }
 0xf4c   :  { %3935 = vadd.xlane.f32.xlu0 %v3934_v30 }
 0xf50   :  { %3941 = vadd.xlane.f32.xlu0 %v3940_v32  ;;  %3929 = vadd.xlane.f32.xlu1 %v3928_v34 }
 0xf54   :  { %3938 = vadd.xlane.f32.xlu1 %v3937_v33 }
 0xf58   :  { %3944 = vadd.xlane.f32.xlu1 %v3943_v15 }
 0xfa0   :  { %v3924_v37 = vpop.xlane.xlu0 %3923 }
 0xfa1   :  { %5815 = vrcp.f32 %v3924_v37 }
 0xfa4   :  { %v3233_v41 = vpop.permute.xlu0 %3232 }
 0xfa5   :  { %v3247_v39 = vshrl.u32 %v3233_v41, 16 }
 0xfa8   :  { %v3927_v38 = vpop.xlane.xlu1 %3926 }
 0xfa9   :  { %5817 = vrcp.f32 %v3927_v38 }
 0xfab   :  { %v5816_v21 = vpop.eup %5815 }
 0xfac   :  { %v3231_v55 = vpop.permute.xlu1 %3230  ;;  %v3954_v0 = vmul.f32 %v5816_v21, %v6691_v5  ;;  %v3330_v5 = vrot.slane %v3316_v29, %v6055_v42 }
 0xfad   :  { %v3244_v6 = vpack.i.b16 %v3233_v41, %v3231_v55  ;;  %v3246_v20 = vshrl.u32 %v3231_v55, 16 }
 0xfaf   :  { %v3248_v45 = vpack.i.b16 %v3247_v39, %v3246_v20  ;;  %v3272_v59 = vrot.slane %v3244_v6, %v6055_v42  ;;  %v3265_v30 = vcombine.high %v3244_v6, %v6072_v54  ;;  %v3962_v20 = vpack.c.bf16 %v3954_v0, %v3954_v0 }
 0xfb1   :  { %v3280_v26 = vcombine.low %v3257_v58, %v3272_v59  ;;  %v3281_v60 = vcombine.high %v3257_v58, %v3272_v59  ;;  %v3338_v62 = vrot.slane %v3248_v45, %v6055_v42  ;;  %v3331_v52 = vcombine.high %v3248_v45, %v6072_v54 }
 0xfb2   :  { %v3279_v39 = vrot.slane %v3265_v30, %v6055_v42 }
 0xfb3   :  { %v3288_v28 = vrot.slane %v3280_v26, %v6074_v56  ;;  %v3295_v27 = vrot.slane %v3281_v60, %v6074_v56  ;;  %v3346_v2 = vcombine.low %v3323_v61, %v3338_v62  ;;  %v3347_v4 = vcombine.high %v3323_v61, %v3338_v62  ;;  %v5818_v48 = vpop.eup %5817 }
 0xfb4   :  { %v3955_v36 = vmul.f32 %v5818_v48, %v6695_v7  ;;  %v3345_v37 = vrot.slane %v3331_v52, %v6055_v42  ;;  %v3264_v7 = vrot.slane %v3250_v16, %v6055_v42 }
 0xfb5   :  { %v3382_v51 = vcombine.low %v3288_v28, %v3295_v27  ;;  %v5231_v47 = vcombine.high %v3288_v28, %v3295_v27  ;;  %v3354_v11 = vrot.slane %v3346_v2, %v6074_v56  ;;  %v3361_v22 = vrot.slane %v3347_v4, %v6074_v56 }
 0xfb6   :  { %v3362_v43 = vcombine.low %v3330_v5, %v3345_v37  ;;  %v3363_v57 = vcombine.high %v3330_v5, %v3345_v37  ;;  %v3963_v45 = vpack.c.bf16 %v3955_v36, %v3955_v36  ;;  %v3296_v59 = vcombine.low %v3264_v7, %v3279_v39 }
 0xfb7   :  { %v3389_v50 = vrot.slane %v3382_v51, %v6055_v42  ;;  %v3397_v24 = vrot.slane %v5231_v47, %v6055_v42  ;;  %v3407_v13 = vcombine.low %v3354_v11, %v3361_v22  ;;  %v5232_v14 = vcombine.high %v3354_v11, %v3361_v22 }
 0xfb8   :  { %v3297_v26 = vcombine.high %v3264_v7, %v3279_v39  ;;  %v3370_v61 = vrot.slane %v3362_v43, %v6074_v56  ;;  %v3377_v62 = vrot.slane %v3363_v57, %v6074_v56  ;;  %v3304_v28 = vrot.slane %v3296_v59, %v6074_v56  ;;  %v5737_v59 = vld [vmem:[%s6976_s6 + $0x10] sm:$0xff]  }
 0xfb9   :  { %v3398_v63 = vcombine.low %v3389_v50, %v3397_v24  ;;  %v3414_v9 = vrot.slane %v3407_v13, %v6055_v42  ;;  %v3422_v17 = vrot.slane %v5232_v14, %v6055_v42 }
 0xfba   :  { %v3311_v27 = vrot.slane %v3297_v26, %v6074_v56  ;;  %v3457_v2 = vcombine.low %v3370_v61, %v3377_v62  ;;  %v5234_v4 = vcombine.high %v3370_v61, %v3377_v62 }
 0xfbb   :  { %v3405_v19 = vrot.slane %v3398_v63, %v6074_v56  ;;  %v3423_v44 = vcombine.low %v3414_v9, %v3422_v17 }
 0xfbc   :  { %v3432_v51 = vcombine.low %v3304_v28, %v3311_v27  ;;  %v5233_v47 = vcombine.high %v3304_v28, %v3311_v27  ;;  %v3464_v11 = vrot.slane %v3457_v2, %v6055_v42  ;;  %v3472_v22 = vrot.slane %v5234_v4, %v6055_v42 }
 0xfbd   :  { %v3406_v3 = vcombine.high %v3405_v19, %v5879_v53  ;;  %v3430_v23 = vrot.slane %v3423_v44, %v6074_v56  ;;  %v3485_v34 = vshrl.u32 %v3405_v19, 16 }
 0xfbe   :  { %v3439_v50 = vrot.slane %v3432_v51, %v6055_v42  ;;  %v3447_v24 = vrot.slane %v5233_v47, %v6055_v42  ;;  %v3473_v14 = vcombine.low %v3464_v11, %v3472_v22 }
 0xfbf   :  { %v3484_v32 = vpack.i.b16 %v3430_v23, %v3405_v19  ;;  %v3486_v33 = vshrl.u32 %v3430_v23, 16  ;;  %v3431_v15 = vcombine.high %v3430_v23, %v5879_v53  ;;  %v3491_v38 = vshrl.u32 %v3406_v3, 16 }
 0xfc0   :  { %v3448_v63 = vcombine.low %v3439_v50, %v3447_v24  ;;  %v3480_v9 = vrot.slane %v3473_v14, %v6074_v56 }
 0xfc1   :  { %v3974_v40 = vsel %vm1510_vm4, %v3484_v32, 0  ;;  %v3487_v41 = vpack.i.b16 %v3486_v33, %v3485_v34  ;;  %v3490_v25 = vpack.i.b16 %v3431_v15, %v3406_v3  ;;  %v3492_v55 = vshrl.u32 %v3431_v15, 16 }
 0xfc2   :  { %5615 = vmatpush3.bf16.msra.mxu1 %v3974_v40  ;;  %v3455_v17 = vrot.slane %v3448_v63, %v6074_v56  ;;  %v3498_v21 = vshrl.u32 %v3480_v9, 16  ;;  %v3481_v34 = vcombine.high %v3480_v9, %v5879_v53 }
 0xfc3   :  { %v4020_v6 = vsel %vm1510_vm4, %v3487_v41, 0  ;;  %5626 = vmatprep.subr.bf16.mxu1 %v5871_v1  ;;  %v3493_v54 = vpack.i.b16 %v3492_v55, %v3491_v38  ;;  %v4066_v58 = vsel %vm1510_vm4, %v3490_v25, 0 }
 0xfc4   :  { %5621 = vmatpush3.bf16.msra.mxu0 %v4020_v6  ;;  %v3497_v44 = vshrl.u32 %v3455_v17, 16  ;;  %v3504_v16 = vshrl.u32 %v3481_v34, 16  ;;  %v3496_v37 = vpack.i.b16 %v3480_v9, %v3455_v17 }
 0xfc5   :  { %5617 = vmatmul.mubr.msk.bf16.vlgmr.msra.gmra.mrb[60].mxu1 %vm1042_vm3, %v3962_v20  ;;  %5632 = vmatprep.subr.bf16.mxu0 %v5871_v1  ;;  %v4112_v60 = vsel %vm1510_vm4, %v3493_v54, 0 }
 0xfc6   :  { %5627 = vmatpush3.bf16.msra.mxu1 %v4066_v58  ;;  %5628 = vmatprep.mubr.msk.bf16.mxu1 %vm5872_vm1, %v5871_v1  ;;  %v3499_v29 = vpack.i.b16 %v3498_v21, %v3497_v44  ;;  %v4158_v39 = vsel %vm1510_vm4, %v3496_v37, 0 }
 0xfc7   :  { %5623 = vmatmul.mubr.msk.bf16.vlgmr.msra.gmra.mrb[60].mxu0 %vm1042_vm3, %v3963_v45  ;;  %5638 = vmatprep.subr.bf16.mxu1 %v5871_v1 }
 0xfc8   :  { %5633 = vmatpush3.bf16.msra.mxu0 %v4112_v60  ;;  %5634 = vmatprep.mubr.msk.bf16.mxu0 %vm5872_vm1, %v5871_v1  ;;  %v4204_v30 = vsel %vm1510_vm4, %v3499_v29, 0 }
 0xfc9   :  { %5644 = vmatprep.subr.bf16.mxu0 %v5871_v1 }
 0xfd5   :  { %v3933_v13 = vpop.xlane.xlu0 %3932 }
 0xfd6   :  { %5819 = vrcp.f32 %v3933_v13 }
 0xfd9   :  { %v3936_v3 = vpop.xlane.xlu0 %3935 }
 0xfdd   :  { %v3930_v19 = vpop.xlane.xlu1 %3929  ;;  %v3942_v33 = vpop.xlane.xlu0 %3941 }
 0xfde   :  { %5821 = vrcp.f32 %v3930_v19 }
 0xfe0   :  { %v5820_v52 = vpop.eup %5819 }
 0xfe1   :  { %v3957_v48 = vmul.f32 %v5820_v52, %v6705_v18  ;;  %v3939_v23 = vpop.xlane.xlu1 %3938  ;;  %v3456_v18 = vcombine.high %v3455_v17, %v5879_v53 }
 0xfe2   :  { %5823 = vrcp.f32 %v3939_v23 }
 0xfe3   :  { %5825 = vrcp.f32 %v3936_v3  ;;  %v3965_v0 = vpack.c.bf16 %v3957_v48, %v3957_v48  ;;  %v3503_v38 = vshrl.u32 %v3456_v18, 16 }
 0xfe5   :  { %5635 = vmatmul.mubr.msk.bf16.vlgmr.msra.gmra.mrb[64].mxu0 %vm1042_vm3, %v3965_v0  ;;  %v3945_v32 = vpop.xlane.xlu1 %3944  ;;  %v3505_v5 = vpack.i.b16 %v3504_v16, %v3503_v38 }
 0xfe6   :  { %5645 = vmatpush3.bf16.msra.mxu0 %v4204_v30  ;;  %5827 = vrcp.f32 %v3945_v32  ;;  %5646 = vmatprep.mubr.msk.bf16.mxu0 %vm5872_vm1, %v5871_v1 }
 0xfe7   :  { %5656 = vmatprep.subr.bf16.mxu0 %v5871_v1  ;;  %5829 = vrcp.f32 %v3942_v33  ;;  %v4296_v54 = vsel %vm1510_vm4, %v3505_v5, 0 }
 0xfe8   :  { %v5822_v15 = vpop.eup %5821 }
 0xfe9   :  { %v3956_v36 = vmul.f32 %v5822_v15, %v6711_v49 }
 0xfeb   :  { %v3964_v41 = vpack.c.bf16 %v3956_v36, %v3956_v36 }
 0xfec   :  { %v5824_v40 = vpop.eup %5823 }
 0xfed   :  { %v5826_v25 = vpop.eup %5825  ;;  %v3959_v55 = vmul.f32 %v5824_v40, %v6721_v8  ;;  %5629 = vmatmul.mubr.msk.bf16.vlgmr.msra.gmra.mrb[64].mxu1 %vm1042_vm3, %v3964_v41  ;;  %v3502_v8 = vpack.i.b16 %v3481_v34, %v3456_v18 }
 0xfee   :  { %5639 = vmatpush3.bf16.msra.mxu1 %v4158_v39  ;;  %5640 = vmatprep.mubr.msk.bf16.mxu1 %vm5872_vm1, %v5871_v1  ;;  %v3958_v49 = vmul.f32 %v5826_v25, %v6709_v46 }
 0xfef   :  { %v3967_v6 = vpack.c.bf16 %v3959_v55, %v3959_v55  ;;  %5650 = vmatprep.subr.bf16.mxu1 %v5871_v1  ;;  %v4250_v46 = vsel %vm1510_vm4, %v3502_v8, 0 }
 0xff0   :  { %v5828_v20 = vpop.eup %5827  ;;  %v3966_v43 = vpack.c.bf16 %v3958_v49, %v3958_v49 }
 0xff1   :  { %5647 = vmatmul.mubr.msk.bf16.vlgmr.msra.gmra.mrb[68].mxu0 %vm1042_vm3, %v3967_v6  ;;  %v3961_v7 = vmul.f32 %v5828_v20, %v6725_v35  ;;  %v5830_v57 = vpop.eup %5829 }
 0xff2   :  { %5657 = vmatpush3.bf16.msra.mxu0 %v4296_v54  ;;  %5658 = vmatprep.mubr.msk.bf16.mxu0 %vm5872_vm1, %v5871_v1  ;;  %v3960_v45 = vmul.f32 %v5830_v57, %v6715_v31 }
 0xff3   :  { %5670 = vmatprep.subr.bf16.mxu0 %v5871_v1  ;;  %v3969_v58 = vpack.c.bf16 %v3961_v7, %v3961_v7 }
 0xff4   :  { %v3968_v35 = vpack.c.bf16 %v3960_v45, %v3960_v45 }
 0xff5   :  { %5641 = vmatmul.mubr.msk.bf16.vlgmr.msra.gmra.mrb[68].mxu1 %vm1042_vm3, %v3966_v43 }
 0xff6   :  { %5651 = vmatpush3.bf16.msra.mxu1 %v4250_v46  ;;  %5652 = vmatprep.mubr.msk.bf16.mxu1 %vm5872_vm1, %v5871_v1 }
 0xff7   :  { %5662 = vmatprep.subr.bf16.mxu1 %v5871_v1 }
 0xff9   :  { %5659 = vmatmul.mubr.msk.bf16.vlgmr.msra.gmra.mrb[72].mxu0 %vm1042_vm3, %v3969_v58 }
 0xffa   :  { %5674 = vmatprep.mubr.msk.bf16.mxu0 %vm5872_vm1, %v5871_v1 }
 0xffd   :  { %5653 = vmatmul.mubr.msk.bf16.vlgmr.msra.gmra.mrb[72].mxu1 %vm1042_vm3, %v3968_v35 }
 0xffe   :  { %5666 = vmatprep.mubr.msk.bf16.mxu1 %vm5872_vm1, %v5871_v1  ;;  %5663 = vmatpush3.bf16.msra.mxu1 %v5737_v59 }
 0xfff   :  { %5664 = vmatprep.subr.bf16.mxu1 %v5871_v1 }
0x1098   :  { %v4010_v31 = vpop.f32.mrb[60].mxu1 }
0x1099   :  { %v5618_v26 = vpop.f32.mrb[61].mxu1  ;;  %v4338_v9 = vpack.c.bf16 %v4010_v31, %v4010_v31 }
0x109a   :  { %v4013_v60 = vpop.f32.mrb[62].mxu1  ;;  %v4056_v61 = vpop.f32.mrb[60].mxu0 }
0x109b   :  { %v5619_v62 = vpop.f32.mrb[63].mxu1  ;;  %v5624_v28 = vpop.f32.mrb[61].mxu0  ;;  %v4372_v4 = vpack.c.bf16 %v4056_v61, %v4056_v61  ;;  %v4345_v3 = vrot.slane %v4338_v9, %v6055_v42 }
0x109c   :  { %v4059_v27 = vpop.f32.mrb[62].mxu0 }
0x109d   :  { %v5625_v2 = vpop.f32.mrb[63].mxu0  ;;  %v4379_v50 = vrot.slane %v4372_v4, %v6055_v42 }
0x10b8   :  { %v4148_v51 = vpop.f32.mrb[64].mxu0 }
0x10b9   :  { %v4380_v47 = vpack.c.bf16 %v4148_v51, %v4148_v51  ;;  %v5636_v11 = vpop.f32.mrb[65].mxu0 }
0x10ba   :  { %v4151_v22 = vpop.f32.mrb[66].mxu0 }
0x10bb   :  { %v4387_v24 = vrot.slane %v4380_v47, %v6055_v42  ;;  %v5637_v13 = vpop.f32.mrb[67].mxu0 }
0x10bd   :  { %v4388_v14 = vcombine.low %v4379_v50, %v4387_v24  ;;  %v4389_v63 = vcombine.high %v4379_v50, %v4387_v24 }
0x10bf   :  { %v4396_v44 = vrot.slane %v4388_v14, %v6074_v56  ;;  %v4403_v0 = vrot.slane %v4389_v63, %v6074_v56 }
0x10c0   :  { %v4102_v17 = vpop.f32.mrb[64].mxu1 }
0x10c1   :  { %v4346_v19 = vpack.c.bf16 %v4102_v17, %v4102_v17  ;;  %v5630_v21 = vpop.f32.mrb[65].mxu1  ;;  %v4404_v33 = vcombine.high %v4396_v44, %v5879_v53  ;;  %v4405_v37 = vcombine.high %v4403_v0, %v5879_v53  ;;  %v4479_v38 = vshrl.u32 %v4396_v44, 16 }
0x10c2   :  { %v4105_v52 = vpop.f32.mrb[66].mxu1  ;;  %v4495_v40 = vshrl.u32 %v4403_v0, 16 }
0x10c3   :  { %v4353_v48 = vrot.slane %v4346_v19, %v6055_v42  ;;  %v5631_v23 = vpop.f32.mrb[67].mxu1  ;;  %v4487_v20 = vshrl.u32 %v4404_v33, 16  ;;  %v4503_v59 = vshrl.u32 %v4405_v37, 16 }
0x10c4   :  { %v4240_v29 = vpop.f32.mrb[68].mxu0 }
0x10c5   :  { %v5648_v30 = vpop.f32.mrb[69].mxu0  ;;  %v4354_v32 = vcombine.low %v4345_v3, %v4353_v48  ;;  %v4355_v34 = vcombine.high %v4345_v3, %v4353_v48  ;;  %v4440_v8 = vpack.c.bf16 %v4240_v29, %v4240_v29 }
0x10c6   :  { %v4243_v18 = vpop.f32.mrb[70].mxu0 }
0x10c7   :  { %v5649_v15 = vpop.f32.mrb[71].mxu0  ;;  %v4362_v16 = vrot.slane %v4354_v32, %v6074_v56  ;;  %v4369_v36 = vrot.slane %v4355_v34, %v6074_v56  ;;  %v4447_v11 = vrot.slane %v4440_v8, %v6055_v42 }
0x10c8   :  { %v4194_v41 = vpop.f32.mrb[68].mxu1 }
0x10c9   :  { %v4370_v25 = vcombine.high %v4362_v16, %v5879_v53  ;;  %v4371_v55 = vcombine.high %v4369_v36, %v5879_v53  ;;  %v4476_v5 = vpack.i.b16 %v4396_v44, %v4362_v16  ;;  %v4478_v39 = vshrl.u32 %v4362_v16, 16  ;;  %v5642_v6 = vpop.f32.mrb[69].mxu1 }
0x10ca   :  { %v4492_v49 = vpack.i.b16 %v4403_v0, %v4369_v36  ;;  %v4494_v54 = vshrl.u32 %v4369_v36, 16  ;;  %v4197_v7 = vpop.f32.mrb[70].mxu1  ;;  %v4406_v13 = vpack.c.bf16 %v4194_v41, %v4194_v41 }
0x10cb   :  { %v4480_v43 = vpack.i.b16 %v4479_v38, %v4478_v39  ;;  %v4484_v57 = vpack.i.b16 %v4404_v33, %v4370_v25  ;;  %v4486_v46 = vshrl.u32 %v4370_v25, 16  ;;  %v4500_v58 = vpack.i.b16 %v4405_v37, %v4371_v55  ;;  %v5643_v45 = vpop.f32.mrb[71].mxu1 }
0x10cc   :  { %v4332_v35 = vpop.f32.mrb[72].mxu0  ;;  %v4496_v31 = vpack.i.b16 %v4495_v40, %v4494_v54  ;;  %v4502_v26 = vshrl.u32 %v4371_v55, 16  ;;  %v4538_v60 = vcombine.low %v4476_v5, %v4492_v49  ;;  %v4413_v30 = vrot.slane %v4406_v13, %v6055_v42 }
0x10cd   :  { %v5660_v61 = vpop.f32.mrb[73].mxu0  ;;  %v4488_v62 = vpack.i.b16 %v4487_v20, %v4486_v46  ;;  %v4448_v28 = vpack.c.bf16 %v4332_v35, %v4332_v35  ;;  %v4546_v2 = vcombine.low %v4484_v57, %v4500_v58 }
0x10ce   :  { %v4335_v27 = vpop.f32.mrb[74].mxu0  ;;  %v4504_v4 = vpack.i.b16 %v4503_v59, %v4502_v26  ;;  %v4588_v47 = vcombine.low %v4480_v43, %v4496_v31  ;;  %v4545_v50 = vrot.slane %v4538_v60, %v6055_v42  ;;  %v5738_v60 = vld [vmem:[%s6976_s6 + $0x18] sm:$0xff]  }
0x10cf   :  { %v5661_v51 = vpop.f32.mrb[75].mxu0  ;;  %v4455_v22 = vrot.slane %v4448_v28, %v6055_v42  ;;  %v4553_v24 = vrot.slane %v4546_v2, %v6055_v42  ;;  %5665 = vmatpush3.bf16.msra.mxu1 %v5738_v60  ;;  %v5263_v60 = vld [vmem:[%s6979_s9 + $0x1] ss:$0 sm:$0xff] }
0x10d0   :  { %v4286_v14 = vpop.f32.mrb[72].mxu1  ;;  %v4596_v63 = vcombine.low %v4488_v62, %v4504_v4  ;;  %v4595_v3 = vrot.slane %v4588_v47, %v6055_v42  ;;  %5678 = vmatprep.subr.bf16.mxu1 %v5871_v1 }
0x10d1   :  { %v4456_v9 = vcombine.low %v4447_v11, %v4455_v22  ;;  %v4457_v17 = vcombine.high %v4447_v11, %v4455_v22  ;;  %v4414_v19 = vpack.c.bf16 %v4286_v14, %v4286_v14  ;;  %v5654_v21 = vpop.f32.mrb[73].mxu1  ;;  %v4570_v44 = vcombine.low %v4545_v50, %v4553_v24 }
0x10d2   :  { %v4289_v52 = vpop.f32.mrb[74].mxu1  ;;  %v4603_v48 = vrot.slane %v4596_v63, %v6055_v42 }
0x10d3   :  { %v4464_v23 = vrot.slane %v4456_v9, %v6074_v56  ;;  %v4421_v29 = vrot.slane %v4414_v19, %v6055_v42  ;;  %v5655_v0 = vpop.f32.mrb[75].mxu1  ;;  %v4471_v34 = vrot.slane %v4457_v17, %v6074_v56  ;;  %v4577_v2 = vrot.slane %v4570_v44, %v6074_v56 }
0x10d4   :  { %v4620_v32 = vcombine.low %v4595_v3, %v4603_v48  ;;  %v5256_v0 = vld [vmem:[%s6977_s7 + $0x1] ss:$0 sm:$0xff] }
0x10d5   :  { %v4422_v18 = vcombine.low %v4413_v30, %v4421_v29  ;;  %v4423_v33 = vcombine.high %v4413_v30, %v4421_v29  ;;  %v4472_v15 = vcombine.high %v4464_v23, %v5879_v53  ;;  %v4473_v37 = vcombine.high %v4471_v34, %v5879_v53 }
0x10d6   :  { %v4511_v38 = vshrl.u32 %v4464_v23, 16  ;;  %v4527_v39 = vshrl.u32 %v4471_v34, 16  ;;  %v4627_v22 = vrot.slane %v4620_v32, %v6074_v56 }
0x10d7   :  { %v4430_v16 = vrot.slane %v4422_v18, %v6074_v56  ;;  %v4437_v36 = vrot.slane %v4423_v33, %v6074_v56  ;;  %v4519_v5 = vshrl.u32 %v4472_v15, 16  ;;  %v4535_v43 = vshrl.u32 %v4473_v37, 16 }
0x10d9   :  { %v4438_v40 = vcombine.high %v4430_v16, %v5879_v53  ;;  %v4439_v41 = vcombine.high %v4437_v36, %v5879_v53  ;;  %v4508_v25 = vpack.i.b16 %v4464_v23, %v4430_v16  ;;  %v4510_v55 = vshrl.u32 %v4430_v16, 16 }
0x10da   :  { %v4524_v6 = vpack.i.b16 %v4471_v34, %v4437_v36  ;;  %v4526_v20 = vshrl.u32 %v4437_v36, 16 }
0x10db   :  { %v4512_v49 = vpack.i.b16 %v4511_v38, %v4510_v55  ;;  %v4516_v54 = vpack.i.b16 %v4472_v15, %v4438_v40  ;;  %v4518_v8 = vshrl.u32 %v4438_v40, 16  ;;  %v4532_v7 = vpack.i.b16 %v4473_v37, %v4439_v41 }
0x10dc   :  { %v4528_v57 = vpack.i.b16 %v4527_v39, %v4526_v20  ;;  %v4534_v46 = vshrl.u32 %v4439_v41, 16  ;;  %v4554_v58 = vcombine.low %v4508_v25, %v4524_v6 }
0x10dd   :  { %v4520_v45 = vpack.i.b16 %v4519_v5, %v4518_v8  ;;  %v4562_v35 = vcombine.low %v4516_v54, %v4532_v7  ;;  %v5740_v54 = vld [vmem:[%s6980_s10 + $0x18] sm:$0xff]  }
0x10de   :  { %v4536_v59 = vpack.i.b16 %v4535_v43, %v4534_v46  ;;  %v4604_v31 = vcombine.low %v4512_v49, %v4528_v57  ;;  %v4561_v53 = vrot.slane %v4554_v58, %v6055_v42 }
0x10df   :  { %v4569_v26 = vrot.slane %v4562_v35, %v6055_v42 }
0x10e0   :  { %v4612_v61 = vcombine.low %v4520_v45, %v4536_v59  ;;  %v4611_v28 = vrot.slane %v4604_v31, %v6055_v42  ;;  %v5262_v59 = vld [vmem:[%s6978_s8 + $0x1] ss:$0 sm:$0xff] }
0x10e1   :  { %v4578_v62 = vcombine.low %v4561_v53, %v4569_v26 }
0x10e2   :  { %v4619_v27 = vrot.slane %v4612_v61, %v6055_v42 }
0x10e3   :  { %v4585_v4 = vrot.slane %v4578_v62, %v6074_v56 }
0x10e4   :  { %v4628_v51 = vcombine.low %v4611_v28, %v4619_v27 }
0x10e5   :  { %v4587_v47 = vcombine.high %v4577_v2, %v4585_v4  ;;  %v4586_v11 = vcombine.low %v4577_v2, %v4585_v4  ;;  %v5741_v2 = vld [vmem:[%s6982_s12 + $0x40] sm:$0xff]   ;;  %v5742_v4 = vld [vmem:[%s6982_s12 + $0x48] sm:$0xff]  }
0x10e6   :  { %v4635_v50 = vrot.slane %v4628_v51, %v6074_v56  ;;  %v5743_v51 = vld [vmem:[%s6982_s12 + $0x50] sm:$0xff]  }
0x10e7   :  { %v4641_v14 = vshrl.u32 %v4586_v11, 16  ;;  %v4647_v63 = vshrl.u32 %v4587_v47, 16 }
0x10e8   :  { %v4637_v24 = vcombine.high %v4627_v22, %v4635_v50  ;;  %v4636_v13 = vcombine.low %v4627_v22, %v4635_v50  ;;  %v5746_v22 = vld [vmem:[%s6982_s12 + $0x68] sm:$0xff]   ;;  %v5747_v50 = vld [vmem:[%s6982_s12 + $0x70] sm:$0xff]  }
0x10ea   :  { %v4646_v9 = vpack.i.b16 %v4637_v24, %v4587_v47  ;;  %v4642_v17 = vshrl.u32 %v4636_v13, 16  ;;  %v4648_v42 = vshrl.u32 %v4637_v24, 16  ;;  %v4640_v19 = vpack.i.b16 %v4636_v13, %v4586_v11  ;;  %v5744_v47 = vld [vmem:[%s6982_s12 + $0x58] sm:$0xff]   ;;  %v5745_v11 = vld [vmem:[%s6982_s12 + $0x60] sm:$0xff]  }
0x10eb   :  { %v5748_v24 = vld [vmem:[%s6982_s12 + $0x78] sm:$0xff]   ;;  %v5269_v13 = vld [vmem:[%s6981_s11 + $0x1] ss:$0 sm:$0xff] }
0x10ec   :  { %4652 = vrot.lane.b32.xlu1 %v4646_v9, %s5881_s24  ;;  %v4643_v21 = vpack.i.b16 %v4642_v17, %v4641_v14  ;;  %v4649_v44 = vpack.i.b16 %v4648_v42, %v4647_v63 }
0x10ee   :  { %4650 = vrot.lane.b32.xlu0 %v4643_v21, %s5882_s25 }
0x10f0   :  { %4654 = vrot.lane.b32.xlu1 %v4649_v44, %s5883_s26 }
0x115e   :  { %v4653_v52 = vpop.permute.xlu1 %4652 }
0x1160   :  { %v4651_v3 = vpop.permute.xlu0 %4650 }
0x1161   :  { %v4658_v56 = vsel %vm1042_vm3, %v4640_v19, %v4651_v3 }
0x1162   :  { %v4655_v48 = vpop.permute.xlu1 %4654  ;;  %v4660_v23 = vsel %vm79_vm0, %v4658_v56, %v4653_v52 }
0x1163   :  { %v4662_v29 = vsel %vm2199_vm5, %v4660_v23, %v4655_v48 }
0x1164   :  { %5667 = vmatmul.mubr.msk.bf16.vlgmr.msra.gmra.mrb[76].mxu1 %vm151_vm2, %v4662_v29 }
0x1165   :  { %5694 = vmatprep.mubr.msk.bf16.mxu1 %vm5872_vm1, %v5871_v1  ;;  %5679 = vmatpush3.bf16.msra.mxu1 %v5741_v2 }
0x1166   :  { %5680 = vmatprep.subr.bf16.mxu1 %v5871_v1 }
0x1169   :  { %5681 = vmatpush3.bf16.msra.mxu1 %v5742_v4 }
0x116a   :  { %5682 = vmatprep.subr.bf16.mxu1 %v5871_v1 }
0x116d   :  { %5683 = vmatpush3.bf16.msra.mxu1 %v5743_v51 }
0x116e   :  { %5684 = vmatprep.subr.bf16.mxu1 %v5871_v1 }
0x1171   :  { %5685 = vmatpush3.bf16.msra.mxu1 %v5744_v47 }
0x1172   :  { %5686 = vmatprep.subr.bf16.mxu1 %v5871_v1 }
0x1175   :  { %5687 = vmatpush3.bf16.msra.mxu1 %v5745_v11 }
0x1176   :  { %5688 = vmatprep.subr.bf16.mxu1 %v5871_v1 }
0x1179   :  { %5689 = vmatpush3.bf16.msra.mxu1 %v5746_v22  ;;  %v5290_v22 = vld [vmem:[%s6983_s13 + $0x1] ss:$0 sm:$0xff] }
0x117a   :  { %5690 = vmatprep.subr.bf16.mxu1 %v5871_v1 }
0x117d   :  { %5691 = vmatpush3.bf16.msra.mxu1 %v5747_v50 }
0x117e   :  { %5692 = vmatprep.subr.bf16.mxu1 %v5871_v1 }
0x1181   :  { %5693 = vmatpush3.bf16.msra.mxu1 %v5748_v24 }
0x1237   :  { %v4724_v30 = vpop.f32.mrb[76].mxu1 }
0x1238   :  { %v4725_v32 = vadd.f32 %v5256_v0, %v4724_v30  ;;  %v5668_v34 = vpop.f32.mrb[77].mxu1 }
0x1239   :  { %v4727_v18 = vpop.f32.mrb[78].mxu1 }
0x123a   :  { %v4728_v33 = vadd.f32 %v5256_v0, %v4727_v18  ;;  %v5669_v15 = vpop.f32.mrb[79].mxu1  ;;  %v4731_v16 = vadd.f32 %v4725_v32, %v6484_v12 }
0x123c   :  { %v4737_v36 = vsel %vm151_vm2, %v4731_v16, 0.0  ;;  %v4732_v37 = vadd.f32 %v4728_v33, %v6486_v10  ;;  %v5739_v10 = vld [vmem:[%s6980_s10 + $0x10] sm:$0xff]  }
0x123d   :  { %4738 = vadd.xlane.f32.xlu0 %v4737_v36  ;;  %5671 = vmatpush3.bf16.msra.mxu0 %v5739_v10 }
0x123e   :  { %v4740_v38 = vsel %vm151_vm2, %v4732_v37, 0.0  ;;  %5672 = vmatprep.subr.bf16.mxu0 %v5871_v1 }
0x123f   :  { %4741 = vadd.xlane.f32.xlu1 %v4740_v38 }
0x1241   :  { %5673 = vmatpush3.bf16.msra.mxu0 %v5740_v54 }
0x1242   :  { %5698 = vmatprep.subr.bf16.mxu0 %v5871_v1 }
0x12ca   :  { %v4739_v40 = vpop.xlane.xlu0 %4738 }
0x12cb   :  { %v4743_v41 = vmul.f32 0.03125, %v4739_v40 }
0x12cc   :  { %v4742_v25 = vpop.xlane.xlu1 %4741 }
0x12cd   :  { %v4745_v55 = vsub.f32 %v4731_v16, %v4743_v41  ;;  %v4744_v5 = vmul.f32 0.03125, %v4742_v25 }
0x12cf   :  { %v4746_v39 = vsub.f32 %v4732_v37, %v4744_v5  ;;  %v4747_v6 = vmul.f32 %v4745_v55, %v4745_v55 }
0x12d1   :  { %v4749_v20 = vsel %vm151_vm2, %v4747_v6, 0.0  ;;  %v4748_v49 = vmul.f32 %v4746_v39, %v4746_v39 }
0x12d2   :  { %4750 = vadd.xlane.f32.xlu0 %v4749_v20 }
0x12d3   :  { %v4752_v12 = vsel %vm151_vm2, %v4748_v49, 0.0 }
0x12d6   :  { %4753 = vadd.xlane.f32.xlu0 %v4752_v12 }
0x135f   :  { %v4751_v8 = vpop.xlane.xlu0 %4750 }
0x1360   :  { %v4755_v7 = vmul.f32 0.03125, %v4751_v8 }
0x1362   :  { %v4757_v43 = vadd.f32 1e-05, %v4755_v7 }
0x1363   :  { %v4754_v57 = vpop.xlane.xlu0 %4753 }
0x1364   :  { %5831 = vrsqrt.f32 %v4757_v43  ;;  %v4756_v46 = vmul.f32 0.03125, %v4754_v57 }
0x1366   :  { %v4758_v58 = vadd.f32 1e-05, %v4756_v46 }
0x1368   :  { %5833 = vrsqrt.f32 %v4758_v58 }
0x136e   :  { %v5832_v45 = vpop.eup %5831 }
0x136f   :  { %v4761_v35 = vmul.f32 %v5832_v45, %v4745_v55 }
0x1371   :  { %v4769_v53 = vmul.f32 %v5262_v59, %v4761_v35 }
0x1372   :  { %v5834_v31 = vpop.eup %5833 }
0x1373   :  { %v4762_v26 = vmul.f32 %v5834_v31, %v4746_v39  ;;  %v6889_v62 = vadd.f32 %v5263_v60, %v4769_v53 }
0x1375   :  { %v4770_v61 = vmul.f32 %v5262_v59, %v4762_v26 }
0x1377   :  { %v6891_v28 = vadd.f32 %v5263_v60, %v4770_v61 }
0x1379   :  { %v4779_v27 = vpack.c.bf16 %v6891_v28, %v6889_v62 }
0x137b   :  { %5675 = vmatmul.mubr.msk.bf16.vlgmr.msra.gmra.mrb[76].mxu0 %vm151_vm2, %v4779_v27 }
0x137c   :  { %5702 = vmatprep.mubr.msk.bf16.mxu0 %vm5872_vm1, %v5871_v1 }
0x144e   :  { %v4842_v14 = vpop.f32.mrb[76].mxu0 }
0x144f   :  { %v4843_v63 = vadd.f32 %v5269_v13, %v4842_v14  ;;  %v5676_v9 = vpop.f32.mrb[77].mxu0 }
0x1450   :  { %v4845_v17 = vpop.f32.mrb[78].mxu0 }
0x1451   :  { %v4851_v42 = vmul.f32 0.70710677, %v4843_v63  ;;  %v4846_v19 = vadd.f32 %v5269_v13, %v4845_v17  ;;  %v5677_v21 = vpop.f32.mrb[79].mxu0  ;;  %v4849_v27 = vmul.f32 0.5, %v4843_v63 }
0x1453   :  { %v4853_v44 = vand.u32 2147483647, %v4851_v42  ;;  %v4852_v52 = vmul.f32 0.70710677, %v4846_v19  ;;  %vm4893_vm8 = vcmp.ge.f32.partialorder %v4851_v42, 0.0  ;;  %v4850_v2 = vmul.f32 0.5, %v4846_v19 }
0x1455   :  { %v4855_v3 = vmul.f32 0.3275911, %v4853_v44  ;;  %v4854_v56 = vand.u32 2147483647, %v4852_v52  ;;  %v4881_v0 = vsub.f32 0.0, %v4853_v44  ;;  %vm4894_vm9 = vcmp.ge.f32.partialorder %v4852_v52, 0.0 }
0x1457   :  { %v4857_v48 = vadd.f32 1.0, %v4855_v3  ;;  %v4856_v23 = vmul.f32 0.3275911, %v4854_v56  ;;  %v4882_v30 = vsub.f32 0.0, %v4854_v56  ;;  %v4883_v34 = vmul.f32 %v4881_v0, %v4853_v44 }
0x1459   :  { %5835 = vrcp.f32 %v4857_v48  ;;  %v4858_v29 = vadd.f32 1.0, %v4856_v23  ;;  %v4884_v16 = vmul.f32 %v4882_v30, %v4854_v56  ;;  %v4885_v36 = vmul.f32 1.442695, %v4883_v34 }
0x145b   :  { %5837 = vrcp.f32 %v4858_v29  ;;  %v4887_v25 = vmul.f32 1.442695, %v4884_v16 }
0x145c   :  { %5839 = vpow2.f32 %v4885_v36 }
0x145d   :  { %5841 = vpow2.f32 %v4887_v25 }
0x1463   :  { %v5836_v32 = vpop.eup %5835 }
0x1464   :  { %v4863_v18 = vmul.f32 1.0614054, %v5836_v32 }
0x1465   :  { %v5838_v33 = vpop.eup %5837 }
0x1466   :  { %v4865_v15 = vadd.f32 -1.4531521, %v4863_v18  ;;  %v4864_v37 = vmul.f32 1.0614054, %v5838_v33  ;;  %v5840_v7 = vpop.eup %5839 }
0x1467   :  { %v5842_v58 = vpop.eup %5841 }
0x1468   :  { %v4867_v38 = vmul.f32 %v5836_v32, %v4865_v15  ;;  %v4866_v40 = vadd.f32 -1.4531521, %v4864_v37 }
0x146a   :  { %v4869_v41 = vadd.f32 1.4214138, %v4867_v38  ;;  %v4868_v55 = vmul.f32 %v5838_v33, %v4866_v40  ;;  %v5301_v38 = vld [vmem:[%s6984_s14 + $0x1] ss:$0 sm:$0xff] }
0x146c   :  { %v4871_v5 = vmul.f32 %v5836_v32, %v4869_v41  ;;  %v4870_v39 = vadd.f32 1.4214138, %v4868_v55 }
0x146e   :  { %v4873_v6 = vadd.f32 -0.28449672, %v4871_v5  ;;  %v4872_v20 = vmul.f32 %v5838_v33, %v4870_v39 }
0x1470   :  { %v4875_v49 = vmul.f32 %v5836_v32, %v4873_v6  ;;  %v4874_v12 = vadd.f32 -0.28449672, %v4872_v20 }
0x1472   :  { %v4877_v10 = vadd.f32 0.2548296, %v4875_v49  ;;  %v4876_v54 = vmul.f32 %v5838_v33, %v4874_v12 }
0x1474   :  { %v4879_v8 = vmul.f32 %v5836_v32, %v4877_v10  ;;  %v4878_v43 = vadd.f32 0.2548296, %v4876_v54  ;;  %v5750_v32 = vld [vmem:[%s6986_s16 + $0x8] sm:$0xff]  }
0x1476   :  { %v4889_v57 = vmul.f32 %v5840_v7, %v4879_v8  ;;  %v4880_v46 = vmul.f32 %v5838_v33, %v4878_v43 }
0x1478   :  { %v4891_v45 = vsub.f32 1.0, %v4889_v57  ;;  %v4890_v35 = vmul.f32 %v5842_v58, %v4880_v46  ;;  %v5303_v57 = vld [vmem:[%s6987_s17] ss:$0 sm:$0xff] }
0x147a   :  { %v4895_v59 = vsub.f32 0.0, %v4891_v45  ;;  %v4892_v31 = vsub.f32 1.0, %v4890_v35 }
0x147c   :  { %v4897_v53 = vsel %vm4893_vm8, %v4891_v45, %v4895_v59  ;;  %v4896_v26 = vsub.f32 0.0, %v4892_v31 }
0x147d   :  { %v4899_v60 = vadd.f32 1.0, %v4897_v53 }
0x147e   :  { %v4898_v61 = vsel %vm4894_vm9, %v4892_v31, %v4896_v26 }
0x147f   :  { %v4900_v4 = vadd.f32 1.0, %v4898_v61  ;;  %v4901_v51 = vmul.f32 %v4899_v60, %v4849_v27 }
0x1481   :  { %v4902_v47 = vmul.f32 %v4900_v4, %v4850_v2 }
0x1483   :  { %v4903_v11 = vpack.c.bf16 %v4902_v47, %v4901_v51 }
0x1485   :  { %5695 = vmatmul.mubr.bf16.vlgmr.msra.gmra.mrb[80].mxu1 %v4903_v11 }
0x1558   :  { %v5011_v50 = vpop.f32.mrb[80].mxu1 }
0x1559   :  { %v5012_v24 = vadd.f32 %v5290_v22, %v5011_v50  ;;  %v5696_v13 = vpop.f32.mrb[81].mxu1 }
0x155a   :  { %v5014_v14 = vpop.f32.mrb[82].mxu1 }
0x155b   :  { %v5015_v9 = vadd.f32 %v5290_v22, %v5014_v14  ;;  %v5697_v17 = vpop.f32.mrb[83].mxu1  ;;  %v5018_v42 = vadd.f32 %v5012_v24, %v6889_v62 }
0x155d   :  { %v5024_v63 = vsel %vm151_vm2, %v5018_v42, 0.0  ;;  %v5019_v19 = vadd.f32 %v5015_v9, %v6891_v28  ;;  %v5749_v28 = vld [vmem:[%s6986_s16] sm:$0xff]  }
0x155e   :  { %5025 = vadd.xlane.f32.xlu1 %v5024_v63  ;;  %5699 = vmatpush3.bf16.msra.mxu0 %v5749_v28 }
0x155f   :  { %v5027_v21 = vsel %vm151_vm2, %v5019_v19, 0.0  ;;  %5700 = vmatprep.subr.bf16.mxu0 %v5871_v1  ;;  %v5302_v1 = vld [vmem:[%s6985_s15 + $0x1] ss:$0 sm:$0xff]  ;;  %s5884_s15 = smov [#allocation2]  }
0x1560   :  { %5028 = vadd.xlane.f32.xlu0 %v5027_v21  ;;  %s5150_s9 = sshll.u32 %s5884_s15, 4  ;;  %s5151_s9 = int_to_ptr.vmem [resolvable:$true] %s5150_s9 }
0x1561   :  { %s5847_s3 = scalar_lea.vmem %s5151_s9, 32  ;;  %p5852_p1 = scmp.lt.s32.totalorder %s5151_s9, %s5151_s9 }
0x1562   :  { %5701 = vmatpush3.bf16.msra.mxu0 %v5750_v32  ;;  %p5848_p0 = scmp.ne.s32.totalorder %s5151_s9, %s5847_s3  ;;  %p5853_p2 = scmp.lt.s32.totalorder %s5847_s3, %s5847_s3 }
0x1564   :  { %p5854_p3 = por %p5853_p2, %p5852_p1 }
0x1566   :  { %p5855_p4 = pnand %p5854_p3, %p5848_p0 }
0x15eb   :  { %v5026_v44 = vpop.xlane.xlu1 %5025 }
0x15ec   :  { %v5030_v52 = vmul.f32 0.03125, %v5026_v44 }
0x15ed   :  { %v5029_v3 = vpop.xlane.xlu0 %5028 }
0x15ee   :  { %v5032_v56 = vsub.f32 %v5018_v42, %v5030_v52  ;;  %v5031_v48 = vmul.f32 0.03125, %v5029_v3 }
0x15f0   :  { %v5033_v23 = vsub.f32 %v5019_v19, %v5031_v48  ;;  %v5034_v29 = vmul.f32 %v5032_v56, %v5032_v56 }
0x15f2   :  { %v5036_v0 = vsel %vm151_vm2, %v5034_v29, 0.0  ;;  %v5035_v30 = vmul.f32 %v5033_v23, %v5033_v23 }
0x15f3   :  { %5037 = vadd.xlane.f32.xlu1 %v5036_v0 }
0x15f4   :  { %v5039_v62 = vsel %vm151_vm2, %v5035_v30, 0.0 }
0x15f5   :  { %5040 = vadd.xlane.f32.xlu0 %v5039_v62 }
0x1680   :  { %v5038_v34 = vpop.xlane.xlu1 %5037 }
0x1681   :  { %v5042_v18 = vmul.f32 0.03125, %v5038_v34 }
0x1682   :  { %v5041_v33 = vpop.xlane.xlu0 %5040 }
0x1683   :  { %v5044_v15 = vadd.f32 1e-05, %v5042_v18  ;;  %v5043_v16 = vmul.f32 0.03125, %v5041_v33 }
0x1685   :  { %5843 = vrsqrt.f32 %v5044_v15  ;;  %v5045_v36 = vadd.f32 1e-05, %v5043_v16 }
0x1687   :  { %5845 = vrsqrt.f32 %v5045_v36 }
0x168f   :  { %v5844_v37 = vpop.eup %5843 }
0x1690   :  { %v5048_v40 = vmul.f32 %v5844_v37, %v5032_v56 }
0x1691   :  { %v5846_v41 = vpop.eup %5845 }
0x1692   :  { %v5056_v25 = vmul.f32 %v5301_v38, %v5048_v40  ;;  %v5049_v55 = vmul.f32 %v5846_v41, %v5033_v23 }
0x1694   :  { %v5064_v5 = vadd.f32 %v5302_v1, %v5056_v25  ;;  %v5057_v39 = vmul.f32 %v5301_v38, %v5049_v55 }
0x1696   :  { %v5066_v6 = vpack.c.bf16 %v5064_v5, %v5064_v5  ;;  %v5065_v20 = vadd.f32 %v5302_v1, %v5057_v39 }
0x1698   :  { %v5081_v49 = vunpack.c.l.b16 %v5066_v6  ;;  %v5067_v12 = vpack.c.bf16 %v5065_v20, %v5065_v20 }
0x169a   :  { %v5082_v10 = vunpack.c.l.b16 %v5067_v12  ;;  %v5083_v54 = vrot.slane %v5081_v49, 7 }
0x169c   :  { %v5084_v8 = vrot.slane %v5082_v10, 6 }
0x169e   :  { %v5086_v7 = vsel %vm5085_vm10, %v5084_v8, %v5083_v54 }
0x169f   :  { %v5087_v43 = vpack.c.b16 %v5086_v7, %v5086_v7 }
0x16a1   :  { %5703 = vmatmul.mubr.msk.bf16.vlgmr.msra.gmra.mrb[80].mxu0 %vm151_vm2, %v5087_v43 }
0x1774   :  { %v5137_v46 = vpop.f32.mrb[80].mxu0 }
0x1775   :  { %v5138_v58 = vadd.f32 %v5303_v57, %v5137_v46  ;;  %v5704_v45 = vpop.f32.mrb[81].mxu0 }
0x1776   :  { %v5140_v35 = vpop.f32.mrb[82].mxu0 }
0x1777   :  { %5143 = vst [vmem:[#allocation2] sm:$0x3] %v5138_v58  ;;  %v5705_v59 = vpop.f32.mrb[83].mxu0 }
0x1778   :  { %5858 = shalt.err (!%p5855_p4)
}
0x1779   :  { %s5859_s17 = scalar_lea.hbm %s6988_s18, 32 }
0x177a   :  { %p5860_p5 = scmp.ne.s32.totalorder %s6988_s18, %s5859_s17  ;;  %p5863_p6 = scmp.lt.u32.totalorder %s5859_s17, %s6988_s18 }
0x177c   :  { %p5865_p7 = pnand %p5863_p6, %p5860_p5 }
0x177e   :  { %5868 = shalt.err (!%p5865_p7)
}
0x177f   :  { %5153 = dma.vmem_to_hbm [thread:$0]  %s5151_s9, 32, %s6988_s18, [#allocation3]  }
0x1780   :  { %5869 = dma.done.wait [#allocation3], 32  }
0x1781   :  { %5870 = vsyncadd [#allocation3], 4294967264 }
0x1782   :  { %5157 = vsyncpa [#allocation3], 1 }

</bundles_post_ra>
